<compile_context>
chip_gen: v6e
topology: v6e:2x2x1
jax: 0.10.0
libtpu: 0.0.40
codegen_flags: <defaults>
</compile_context>

<pallas_src>
import functools

import jax
import jax.numpy as jnp
from jax.experimental import pallas as pl
from jax.experimental.pallas import tpu as pltpu


def _round_up(x, m):
    return (x + m - 1) // m * m


@functools.lru_cache(maxsize=1)
def _mxu_tiles():
    """Generation-aware matmul tile defaults (256 for v6e/v7x, 128 for v5e and older)."""
    try:
        kind = jax.devices()[0].device_kind.lower()
    except Exception:
        kind = ""
    if ("v6" in kind) or ("v7" in kind):
        return 256, 256
    return 128, 128


def _choose_tk(K):
    """K tiling: a single full-K step when it fits VMEM; otherwise the largest 128-multiple
    tile that divides round_up(K, 128) (no wasted zero-multiplies for K like 3200)."""
    if K <= 2048:
        return K, K
    Kp = _round_up(K, 128)
    tk = 128
    for cand in range(1024, 127, -128):
        if Kp % cand == 0:
            tk = cand
            break
    return tk, Kp


# ----------------------------------------------------------------------------
# Pallas kernel 1: tiled matmul (bf16 in, f32 acc) + bias + fused activation
#   act: 0 = none, 1 = relu, 2 = sigmoid
# ----------------------------------------------------------------------------
def _apply_act(y, act):
    if act == 1:
        return jnp.maximum(y, 0.0)
    if act == 2:
        return jax.nn.sigmoid(y)
    return y


def _matmul_single_k_kernel(a_ref, b_ref, bias_ref, o_ref, *, act):
    y = jnp.dot(a_ref[...], b_ref[...], preferred_element_type=jnp.float32)
    o_ref[...] = _apply_act(y + bias_ref[...], act).astype(o_ref.dtype)


def _matmul_kernel(a_ref, b_ref, bias_ref, o_ref, acc_ref, *, act):
    @pl.when(pl.program_id(2) == 0)
    def _():
        acc_ref[...] = jnp.zeros_like(acc_ref)

    acc_ref[...] += jnp.dot(a_ref[...], b_ref[...],
                            preferred_element_type=jnp.float32)

    @pl.when(pl.program_id(2) == pl.num_programs(2) - 1)
    def _():
        o_ref[...] = _apply_act(acc_ref[...] + bias_ref[...], act).astype(o_ref.dtype)


def matmul_bias_act(a, b, bias, act=0):
    """(M,K) @ (K,N) + bias[N] with fused activation.  bf16 MXU inputs, f32 accumulation.

    No host-side padding in the common path: ragged M/N boundary blocks only produce values
    in rows/cols outside the logical output; K is either a single full-extent step or a
    128-multiple tile dividing the (rare, zero-padded) Kp."""
    M, K = a.shape
    K2, N = b.shape
    assert K == K2
    tm_def, tn_def = _mxu_tiles()
    tm = M if M <= tm_def else tm_def
    tn = N if N <= tn_def else tn_def
    tk, Kp = _choose_tk(K)

    a = a.astype(jnp.bfloat16)
    b = b.astype(jnp.bfloat16)
    if Kp != K:  # rare fallback: multi-step K that is not a multiple of 128
        a = jnp.pad(a, ((0, 0), (0, Kp - K)))
        b = jnp.pad(b, ((0, Kp - K), (0, 0)))
    bias2 = bias.reshape(1, N).astype(jnp.float32)

    ksteps = Kp // tk
    if ksteps == 1:
        # Common path: one full-K MXU step per output tile, no accumulator scratch.
        return pl.pallas_call(
            functools.partial(_matmul_single_k_kernel, act=act),
            out_shape=jax.ShapeDtypeStruct((M, N), jnp.float32),
            grid_spec=pltpu.PrefetchScalarGridSpec(
                num_scalar_prefetch=0,
                grid=(pl.cdiv(M, tm), pl.cdiv(N, tn)),
                in_specs=[
                    pl.BlockSpec((tm, Kp), lambda i, j: (i, 0)),
                    pl.BlockSpec((Kp, tn), lambda i, j: (0, j)),
                    pl.BlockSpec((1, tn), lambda i, j: (0, j)),
                ],
                out_specs=pl.BlockSpec((tm, tn), lambda i, j: (i, j)),
            ),
            compiler_params=pltpu.CompilerParams(
                dimension_semantics=("parallel", "parallel")),
        )(a, b, bias2)

    grid = (pl.cdiv(M, tm), pl.cdiv(N, tn), ksteps)
    return pl.pallas_call(
        functools.partial(_matmul_kernel, act=act),
        out_shape=jax.ShapeDtypeStruct((M, N), jnp.float32),
        grid_spec=pltpu.PrefetchScalarGridSpec(
            num_scalar_prefetch=0,
            grid=grid,
            in_specs=[
                pl.BlockSpec((tm, tk), lambda i, j, k: (i, k)),
                pl.BlockSpec((tk, tn), lambda i, j, k: (k, j)),
                pl.BlockSpec((1, tn), lambda i, j, k: (0, j)),
            ],
            out_specs=pl.BlockSpec((tm, tn), lambda i, j, k: (i, j)),
            scratch_shapes=[pltpu.VMEM((tm, tn), jnp.float32)],
        ),
        compiler_params=pltpu.CompilerParams(
            dimension_semantics=("parallel", "parallel", "arbitrary")),
    )(a, b, bias2)


# ----------------------------------------------------------------------------
# Pallas kernels 2-4: tiled BatchNorm2d (training-mode batch stats), two-pass
#   pass 1: column sums             -> mean
#   pass 2: centered sum-of-squares -> var  (avoids E[x^2]-E[x]^2 cancellation)
#   pass 3: normalize (+ fused ReLU)
# ----------------------------------------------------------------------------
def _col_sum_kernel(x_ref, o_ref, *, rows, rb):
    i = pl.program_id(0)

    @pl.when(i == 0)
    def _():
        o_ref[...] = jnp.zeros_like(o_ref)

    x = x_ref[...]
    rid = i * rb + jax.lax.broadcasted_iota(jnp.int32, x.shape, 0)
    x = jnp.where(rid < rows, x, 0.0)
    o_ref[...] += jnp.sum(x, axis=0, keepdims=True)


def _col_centered_sq_kernel(x_ref, mu_ref, o_ref, *, rows, rb):
    i = pl.program_id(0)

    @pl.when(i == 0)
    def _():
        o_ref[...] = jnp.zeros_like(o_ref)

    d = x_ref[...] - mu_ref[...]
    rid = i * rb + jax.lax.broadcasted_iota(jnp.int32, d.shape, 0)
    d = jnp.where(rid < rows, d, 0.0)
    o_ref[...] += jnp.sum(d * d, axis=0, keepdims=True)


def _bn_norm_kernel(x_ref, scale_ref, shift_ref, o_ref, *, act):
    y = x_ref[...] * scale_ref[...] + shift_ref[...]
    if act == 1:
        y = jnp.maximum(y, 0.0)
    o_ref[...] = y


def _bn_row_block(rows, cols, target_bytes=2 * 1024 * 1024):
    rb = max(8, (target_bytes // max(cols * 4, 1)) // 8 * 8)
    rb = min(rb, 2048)
    if rb >= rows:
        return int(rows)      # single full-extent block (always a legal block shape)
    return int(rb)            # multiple of 8; ragged boundary handled by Pallas + masks


def batch_norm_nhwc(x, gamma, beta, act=0, eps=1e-5):
    """TimeDistributed(nn.BatchNorm2d) in training mode on NHWC data (stats over N,H,W).

    The tensor is viewed as (N, H*W*C) so the kernels see lane-dense tiles; per-channel
    statistics are recovered with a tiny (H*W, C) fold on the host side."""
    N, H, W, C = x.shape
    rows, cols = N, H * W * C
    count = float(N * H * W)
    x2 = x.reshape(rows, cols)
    rb = _bn_row_block(rows, cols)
    grid = (pl.cdiv(rows, rb),)

    def _reduce(kernel, *extra):
        return pl.pallas_call(
            functools.partial(kernel, rows=rows, rb=rb),
            out_shape=jax.ShapeDtypeStruct((1, cols), jnp.float32),
            grid_spec=pltpu.PrefetchScalarGridSpec(
                num_scalar_prefetch=0,
                grid=grid,
                in_specs=[pl.BlockSpec((rb, cols), lambda i: (i, 0))]
                + [pl.BlockSpec((1, cols), lambda i: (0, 0))] * len(extra),
                out_specs=pl.BlockSpec((1, cols), lambda i: (0, 0)),
            ),
            compiler_params=pltpu.CompilerParams(
                dimension_semantics=("arbitrary",)),
        )(x2, *extra)

    col_sum = _reduce(_col_sum_kernel)                             # (1, H*W*C)
    mean_c = col_sum.reshape(H * W, C).sum(axis=0) / count         # (C,)
    mu_row = jnp.tile(mean_c, H * W).reshape(1, cols)
    col_sq = _reduce(_col_centered_sq_kernel, mu_row)              # (1, H*W*C)
    var_c = col_sq.reshape(H * W, C).sum(axis=0) / count           # biased var (PyTorch training)
    scale_c = gamma * jax.lax.rsqrt(var_c + eps)
    shift_c = beta - mean_c * scale_c
    scale_row = jnp.tile(scale_c, H * W).reshape(1, cols)
    shift_row = jnp.tile(shift_c, H * W).reshape(1, cols)

    y = pl.pallas_call(
        functools.partial(_bn_norm_kernel, act=act),
        out_shape=jax.ShapeDtypeStruct((rows, cols), jnp.float32),
        grid_spec=pltpu.PrefetchScalarGridSpec(
            num_scalar_prefetch=0,
            grid=grid,
            in_specs=[pl.BlockSpec((rb, cols), lambda i: (i, 0)),
                      pl.BlockSpec((1, cols), lambda i: (0, 0)),
                      pl.BlockSpec((1, cols), lambda i: (0, 0))],
            out_specs=pl.BlockSpec((rb, cols), lambda i: (i, 0)),
        ),
        compiler_params=pltpu.CompilerParams(
            dimension_semantics=("parallel",)),
    )(x2, scale_row, shift_row)
    return y.reshape(N, H, W, C)


# ----------------------------------------------------------------------------
# Conv2d (NHWC) = im2col glue + Pallas matmul with fused bias/activation
# ----------------------------------------------------------------------------
def conv2d_nhwc(x, w, b, stride, pad, act=0):
    """x: (N, H, W, Cin) NHWC;  w: (Cout, Cin, kh, kw) PyTorch layout; returns NHWC f32."""
    N, H, W, Cin = x.shape
    Cout, _, kh, kw = w.shape
    xb = x.astype(jnp.bfloat16)                                   # halve im2col HBM traffic
    xp = jnp.pad(xb, ((0, 0), (pad, pad), (pad, pad), (0, 0)))
    Ho = (H + 2 * pad - kh) // stride + 1
    Wo = (W + 2 * pad - kw) // stride + 1
    cols = []
    for dy in range(kh):
        for dx in range(kw):
            cols.append(xp[:, dy:dy + stride * Ho:stride, dx:dx + stride * Wo:stride, :])
    patches = jnp.stack(cols, axis=3)                             # (N, Ho, Wo, kh*kw, Cin)
    patches = patches.reshape(N * Ho * Wo, kh * kw * Cin)
    wmat = w.transpose(2, 3, 1, 0).reshape(kh * kw * Cin, Cout)   # rows = (dy, dx, ci)
    out = matmul_bias_act(patches, wmat, b, act=act)              # (N*Ho*Wo, Cout) f32
    return out.reshape(N, Ho, Wo, Cout)


# ----------------------------------------------------------------------------
# Pallas kernel 5: fused ConvLSTM recurrent step
#   one (rows, 9*hid) @ (9*hid, 4*hid) MXU matmul + hoisted x-gates +
#   sigmoid/tanh + cell update, all in VMEM
# ----------------------------------------------------------------------------
def _convlstm_step_kernel(hpat_ref, wh_ref, gx_ref, c_ref, h_out, c_out, *, hid):
    gates = jnp.dot(hpat_ref[...], wh_ref[...],
                    preferred_element_type=jnp.float32) + gx_ref[...]
    # Gate order matches the reference ConvLSTM: i, f, o, g.
    i = jax.nn.sigmoid(gates[:, 0 * hid:1 * hid])
    f = jax.nn.sigmoid(gates[:, 1 * hid:2 * hid])
    o = jax.nn.sigmoid(gates[:, 2 * hid:3 * hid])
    g = jnp.tanh(gates[:, 3 * hid:4 * hid])
    c = f * c_ref[...] + i * g
    c_out[...] = c
    h_out[...] = o * jnp.tanh(c)


def conv_lstm_layer(x, B, T, w, b, in_dim, hid):
    """Single-layer ConvLSTM (batch_first, zero init state, all steps returned).

    x: (B*T, H, W, in_dim) NHWC.  The input->gate convolution (W_x * x + bias) is computed
    for ALL T frames in one large matmul before the recurrence; the per-step loop (lax.scan)
    only runs the fused recurrent kernel on the small (B*H*W, hid) state."""
    BT, H, W, _ = x.shape
    rows = B * H * W
    # PyTorch ConvLSTM weight layout: (4*hid, in_dim + hid, 3, 3); gate order i, f, o, g.
    wx = w[:, :in_dim]
    wh = w[:, in_dim:]
    whm = wh.transpose(2, 3, 1, 0).reshape(9 * hid, 4 * hid).astype(jnp.bfloat16)

    # Hoisted x-path over all frames: (B*T*H*W, 9*in_dim) @ (9*in_dim, 4*hid) + bias.
    gx = conv2d_nhwc(x, wx, b, stride=1, pad=1, act=0)            # (B*T, H, W, 4*hid)
    gx = gx.reshape(B, T, H, W, 4 * hid).transpose(1, 0, 2, 3, 4).reshape(T, rows, 4 * hid)

    rb = rows if rows <= 2048 else 2048                           # full block at small shapes
    step_fn = pl.pallas_call(
        functools.partial(_convlstm_step_kernel, hid=hid),
        out_shape=(jax.ShapeDtypeStruct((rows, hid), jnp.float32),
                   jax.ShapeDtypeStruct((rows, hid), jnp.float32)),
        grid_spec=pltpu.PrefetchScalarGridSpec(
            num_scalar_prefetch=0,
            grid=(pl.cdiv(rows, rb),),
            in_specs=[
                pl.BlockSpec((rb, 9 * hid), lambda r: (r, 0)),
                pl.BlockSpec((9 * hid, 4 * hid), lambda r: (0, 0)),
                pl.BlockSpec((rb, 4 * hid), lambda r: (r, 0)),
                pl.BlockSpec((rb, hid), lambda r: (r, 0)),
            ],
            out_specs=[pl.BlockSpec((rb, hid), lambda r: (r, 0)),
                       pl.BlockSpec((rb, hid), lambda r: (r, 0))],
        ),
        compiler_params=pltpu.CompilerParams(
            dimension_semantics=("parallel",)),
    )

    def step(carry, gx_t):
        h, c = carry
        hp = jnp.pad(h.reshape(B, H, W, hid), ((0, 0), (1, 1), (1, 1), (0, 0)))
        pats = [hp[:, dy:dy + H, dx:dx + W, :] for dy in range(3) for dx in range(3)]
        hpat = jnp.stack(pats, axis=3).reshape(rows, 9 * hid).astype(jnp.bfloat16)
        h_new, c_new = step_fn(hpat, whm, gx_t, c)
        return (h_new, c_new), h_new

    h0 = jnp.zeros((rows, hid), jnp.float32)
    c0 = jnp.zeros((rows, hid), jnp.float32)
    _, hs = jax.lax.scan(step, (h0, c0), gx)                      # (T, rows, hid)
    hs = hs.reshape(T, B, H, W, hid).transpose(1, 0, 2, 3, 4)
    return hs.reshape(B * T, H, W, hid)


# ----------------------------------------------------------------------------
# EncoderLSTM forward
# ----------------------------------------------------------------------------
@jax.jit
def encoder_lstm_forward(params, x):
    """EncoderLSTM.forward: x (B, T, C, H, W) -> flattened latent (B, T*16*H'*W')."""
    B, T, C, H, W = x.shape
    xf = x.transpose(0, 1, 3, 4, 2).reshape(B * T, H, W, C)       # NHWC at the module boundary
    # encoderCNN: TD(Conv 11x11/4) + ReLU (fused) -> TD(Conv 5x5/2) -> TD(BN64) + ReLU (fused)
    h1 = conv2d_nhwc(xf, params['enc_conv1_w'], params['enc_conv1_b'], 4, 4, act=1)
    h2 = conv2d_nhwc(h1, params['enc_conv2_w'], params['enc_conv2_b'], 2, 2, act=0)
    h2 = batch_norm_nhwc(h2, params['enc_bn0_g'], params['enc_bn0_b'], act=1)
    H2, W2 = h2.shape[1], h2.shape[2]
    # ConvLSTM(64->32) + TD(BN32)
    l1 = conv_lstm_layer(h2, B, T, params['enc_lstm1_w'], params['enc_lstm1_b'], 64, 32)
    l1 = batch_norm_nhwc(l1, params['enc_bn1_g'], params['enc_bn1_b'], act=0)
    # ConvLSTM(32->16) + TD(BN16)
    l2 = conv_lstm_layer(l1, B, T, params['enc_lstm2_w'], params['enc_lstm2_b'], 32, 16)
    l2 = batch_norm_nhwc(l2, params['enc_bn2_g'], params['enc_bn2_b'], act=0)
    # nn.Flatten(): must match PyTorch's (T, C, H, W) flatten order -> boundary transpose.
    lat = l2.reshape(B, T, H2, W2, 16).transpose(0, 1, 4, 2, 3).reshape(B, -1)
    return lat


# ----------------------------------------------------------------------------
# Deterministic parameter init (shapes from the PyTorch __init__)
# ----------------------------------------------------------------------------
def init_params(key, num_channels):
    keys = iter(jax.random.split(key, 16))

    def conv_w(shape):
        fan_in = shape[1] * shape[2] * shape[3]
        return (jax.random.normal(next(keys), shape, jnp.float32)
                / jnp.sqrt(float(fan_in)))

    def bias(n):
        return jax.random.normal(next(keys), (n,), jnp.float32) * 0.01

    def bn(c):
        return jnp.ones((c,), jnp.float32), jnp.zeros((c,), jnp.float32)

    p = {}
    p['enc_conv1_w'] = conv_w((128, num_channels, 11, 11)); p['enc_conv1_b'] = bias(128)
    p['enc_conv2_w'] = conv_w((64, 128, 5, 5));             p['enc_conv2_b'] = bias(64)
    p['enc_bn0_g'], p['enc_bn0_b'] = bn(64)
    p['enc_lstm1_w'] = conv_w((4 * 32, 64 + 32, 3, 3));     p['enc_lstm1_b'] = bias(4 * 32)
    p['enc_bn1_g'], p['enc_bn1_b'] = bn(32)
    p['enc_lstm2_w'] = conv_w((4 * 16, 32 + 16, 3, 3));     p['enc_lstm2_b'] = bias(4 * 16)
    p['enc_bn2_g'], p['enc_bn2_b'] = bn(16)
    return p


if __name__ == "__main__":
    # Small test config (original model: B x 138 x C x 120 x 120).
    B, T, C, H, W = 2, 4, 2, 16, 16
    x = jax.random.uniform(jax.random.PRNGKey(0), (B, T, C, H, W), jnp.float32)
    params = init_params(jax.random.PRNGKey(1), C)

    latent = jax.block_until_ready(encoder_lstm_forward(params, x))

    H1 = (H + 2 * 4 - 11) // 4 + 1          # 11x11, stride 4, pad 4
    H2 = (H1 + 2 * 2 - 5) // 2 + 1          # 5x5, stride 2, pad 2
    assert latent.shape == (B, T * 16 * H2 * H2), latent.shape
    assert bool(jnp.all(jnp.isfinite(latent)))
    print("KERNEL_OK")
</pallas_src>

<mosaic_0001>
module attributes {stable_mosaic.version = 11 : i64} {
  func.func @_matmul_single_k_kernel(%arg0: i32, %arg1: i32, %arg2: memref<128x242xbf16, #tpu.memory_space<vmem>>, %arg3: memref<242x128xbf16, #tpu.memory_space<vmem>>, %arg4: memref<1x128xf32, #tpu.memory_space<vmem>>, %arg5: memref<128x128xf32, #tpu.memory_space<vmem>>) attributes {dimension_semantics = [#tpu.dimension_semantics<parallel>, #tpu.dimension_semantics<parallel>], iteration_bounds = array<i64: 1, 1>, scalar_prefetch = 0 : i64, scratch_operands = 0 : i64, tpu.core_type = #tpu.core_type<tc>, window_params = [{transform_indices = @transform_0, window_bounds = array<i64: 128, 242>}, {transform_indices = @transform_1, window_bounds = array<i64: 242, 128>}, {transform_indices = @transform_2, window_bounds = array<i64: 1, 128>}, {transform_indices = @transform_3, window_bounds = array<i64: 128, 128>}]} {
    %c0 = arith.constant 0 : index
    %c0_0 = arith.constant 0 : index
    %0 = vector.load %arg2[%c0, %c0_0] : memref<128x242xbf16, #tpu.memory_space<vmem>>, vector<128x242xbf16>
    %c0_1 = arith.constant 0 : index
    %c0_2 = arith.constant 0 : index
    %1 = vector.load %arg3[%c0_1, %c0_2] : memref<242x128xbf16, #tpu.memory_space<vmem>>, vector<242x128xbf16>
    %cst = arith.constant dense<0.000000e+00> : vector<128x128xf32>
    %2 = tpu.matmul %0, %1, %cst {dimension_numbers = #tpu.dot_dimension_numbers<[1], [0], [0], [1], [0, 0, 1, 1], [], []>} : vector<128x242xbf16>, vector<242x128xbf16>, vector<128x128xf32> -> vector<128x128xf32>
    %c0_3 = arith.constant 0 : index
    %c0_4 = arith.constant 0 : index
    %3 = vector.load %arg4[%c0_3, %c0_4] : memref<1x128xf32, #tpu.memory_space<vmem>>, vector<1x128xf32>
    %4 = vector.broadcast %3 : vector<1x128xf32> to vector<128x128xf32>
    %5 = arith.addf %2, %4 : vector<128x128xf32>
    %cst_5 = arith.constant 0.000000e+00 : f32
    %6 = vector.broadcast %cst_5 : f32 to vector<128x128xf32>
    %7 = arith.maximumf %5, %6 : vector<128x128xf32>
    %c0_6 = arith.constant 0 : index
    %c0_7 = arith.constant 0 : index
    %8 = vector.load %arg5[%c0_6, %c0_7] : memref<128x128xf32, #tpu.memory_space<vmem>>, vector<128x128xf32>
    tpu.vector_store %arg5[%c0_6, %c0_7], %7 {strides = array<i32>} : memref<128x128xf32, #tpu.memory_space<vmem>>, vector<128x128xf32>,
    return
  }
  func.func @transform_0(%arg0: i32, %arg1: i32) -> (i32, i32) {
    %c0_i32 = arith.constant 0 : i32
    %c0_i32_0 = arith.constant 0 : i32
    return %arg0, %c0_i32 : i32, i32
  }
  func.func @transform_1(%arg0: i32, %arg1: i32) -> (i32, i32) {
    %c0_i32 = arith.constant 0 : i32
    %c0_i32_0 = arith.constant 0 : i32
    return %c0_i32, %arg1 : i32, i32
  }
  func.func @transform_2(%arg0: i32, %arg1: i32) -> (i32, i32) {
    %c0_i32 = arith.constant 0 : i32
    %c0_i32_0 = arith.constant 0 : i32
    return %c0_i32, %arg1 : i32, i32
  }
  func.func @transform_3(%arg0: i32, %arg1: i32) -> (i32, i32) {
    %c0_i32 = arith.constant 0 : i32
    return %arg0, %arg1 : i32, i32
  }
}

module attributes {stable_mosaic.version = 11 : i64} {
  func.func @_matmul_kernel(%arg0: i32, %arg1: i32, %arg2: i32, %arg3: memref<32x640xbf16, #tpu.memory_space<vmem>>, %arg4: memref<640x64xbf16, #tpu.memory_space<vmem>>, %arg5: memref<1x64xf32, #tpu.memory_space<vmem>>, %arg6: memref<32x64xf32, #tpu.memory_space<vmem>>, %arg7: memref<32x64xf32, #tpu.memory_space<vmem>>) attributes {dimension_semantics = [#tpu.dimension_semantics<parallel>, #tpu.dimension_semantics<parallel>, #tpu.dimension_semantics<arbitrary>], iteration_bounds = array<i64: 1, 1, 5>, scalar_prefetch = 0 : i64, scratch_operands = 1 : i64, tpu.core_type = #tpu.core_type<tc>, window_params = [{transform_indices = @transform_0, window_bounds = array<i64: 32, 640>}, {transform_indices = @transform_1, window_bounds = array<i64: 640, 64>}, {transform_indices = @transform_2, window_bounds = array<i64: 1, 64>}, {transform_indices = @transform_3, window_bounds = array<i64: 32, 64>}]} {
    %c0_i32 = arith.constant 0 : i32
    %0 = arith.cmpi eq, %arg2, %c0_i32 : i32
    %1 = arith.extui %0 : i1 to i32
    %c0_i32_0 = arith.constant 0 : i32
    %2 = arith.cmpi ne, %1, %c0_i32_0 : i32
    scf.if %2 {
      %cst_9 = arith.constant 0.000000e+00 : f32
      %12 = vector.broadcast %cst_9 : f32 to vector<32x64xf32>
      %c0_10 = arith.constant 0 : index
      %c0_11 = arith.constant 0 : index
      %13 = vector.load %arg7[%c0_10, %c0_11] : memref<32x64xf32, #tpu.memory_space<vmem>>, vector<32x64xf32>
      tpu.vector_store %arg7[%c0_10, %c0_11], %12 {strides = array<i32>} : memref<32x64xf32, #tpu.memory_space<vmem>>, vector<32x64xf32>,
    } else {
    }
    %c0 = arith.constant 0 : index
    %c0_1 = arith.constant 0 : index
    %3 = vector.load %arg7[%c0, %c0_1] : memref<32x64xf32, #tpu.memory_space<vmem>>, vector<32x64xf32>
    %c0_2 = arith.constant 0 : index
    %c0_3 = arith.constant 0 : index
    %4 = vector.load %arg3[%c0_2, %c0_3] : memref<32x640xbf16, #tpu.memory_space<vmem>>, vector<32x640xbf16>
    %c0_4 = arith.constant 0 : index
    %c0_5 = arith.constant 0 : index
    %5 = vector.load %arg4[%c0_4, %c0_5] : memref<640x64xbf16, #tpu.memory_space<vmem>>, vector<640x64xbf16>
    %cst = arith.constant dense<0.000000e+00> : vector<32x64xf32>
    %6 = tpu.matmul %4, %5, %cst {dimension_numbers = #tpu.dot_dimension_numbers<[1], [0], [0], [1], [0, 0, 1, 1], [], []>} : vector<32x640xbf16>, vector<640x64xbf16>, vector<32x64xf32> -> vector<32x64xf32>
    %7 = arith.addf %3, %6 : vector<32x64xf32>
    %c0_6 = arith.constant 0 : index
    %c0_7 = arith.constant 0 : index
    %8 = vector.load %arg7[%c0_6, %c0_7] : memref<32x64xf32, #tpu.memory_space<vmem>>, vector<32x64xf32>
    tpu.vector_store %arg7[%c0_6, %c0_7], %7 {strides = array<i32>} : memref<32x64xf32, #tpu.memory_space<vmem>>, vector<32x64xf32>,
    %c4_i32 = arith.constant 4 : i32
    %9 = arith.cmpi eq, %arg2, %c4_i32 : i32
    %10 = arith.extui %9 : i1 to i32
    %c0_i32_8 = arith.constant 0 : i32
    %11 = arith.cmpi ne, %10, %c0_i32_8 : i32
    scf.if %11 {
      %c0_9 = arith.constant 0 : index
      %c0_10 = arith.constant 0 : index
      %12 = vector.load %arg7[%c0_9, %c0_10] : memref<32x64xf32, #tpu.memory_space<vmem>>, vector<32x64xf32>
      %c0_11 = arith.constant 0 : index
      %c0_12 = arith.constant 0 : index
      %13 = vector.load %arg5[%c0_11, %c0_12] : memref<1x64xf32, #tpu.memory_space<vmem>>, vector<1x64xf32>
      %14 = vector.broadcast %13 : vector<1x64xf32> to vector<32x64xf32>
      %15 = arith.addf %12, %14 : vector<32x64xf32>
      %c0_13 = arith.constant 0 : index
      %c0_14 = arith.constant 0 : index
      %16 = vector.load %arg6[%c0_13, %c0_14] : memref<32x64xf32, #tpu.memory_space<vmem>>, vector<32x64xf32>
      tpu.vector_store %arg6[%c0_13, %c0_14], %15 {strides = array<i32>} : memref<32x64xf32, #tpu.memory_space<vmem>>, vector<32x64xf32>,
    } else {
    }
    return
  }
  func.func @transform_0(%arg0: i32, %arg1: i32, %arg2: i32) -> (i32, i32) {
    %c0_i32 = arith.constant 0 : i32
    return %arg0, %arg2 : i32, i32
  }
  func.func @transform_1(%arg0: i32, %arg1: i32, %arg2: i32) -> (i32, i32) {
    %c0_i32 = arith.constant 0 : i32
    return %arg2, %arg1 : i32, i32
  }
  func.func @transform_2(%arg0: i32, %arg1: i32, %arg2: i32) -> (i32, i32) {
    %c0_i32 = arith.constant 0 : i32
    %c0_i32_0 = arith.constant 0 : i32
    return %c0_i32, %arg1 : i32, i32
  }
  func.func @transform_3(%arg0: i32, %arg1: i32, %arg2: i32) -> (i32, i32) {
    %c0_i32 = arith.constant 0 : i32
    return %arg0, %arg1 : i32, i32
  }
}

module attributes {stable_mosaic.version = 11 : i64} {
  func.func @_col_sum_kernel(%arg0: i32, %arg1: memref<8x256xf32, #tpu.memory_space<vmem>>, %arg2: memref<1x256xf32, #tpu.memory_space<vmem>>) attributes {dimension_semantics = [#tpu.dimension_semantics<arbitrary>], iteration_bounds = array<i64: 1>, scalar_prefetch = 0 : i64, scratch_operands = 0 : i64, tpu.core_type = #tpu.core_type<tc>, window_params = [{transform_indices = @transform_0, window_bounds = array<i64: 8, 256>}, {pipeline_mode = #tpu.pipeline_mode<synchronous>, transform_indices = @transform_1, window_bounds = array<i64: 1, 256>}]} {
    %c0_i32 = arith.constant 0 : i32
    %0 = arith.cmpi eq, %arg0, %c0_i32 : i32
    %1 = arith.extui %0 : i1 to i32
    %c0_i32_0 = arith.constant 0 : i32
    %2 = arith.cmpi ne, %1, %c0_i32_0 : i32
    scf.if %2 {
      %cst_8 = arith.constant 0.000000e+00 : f32
      %17 = vector.broadcast %cst_8 : f32 to vector<1x256xf32>
      %c0_9 = arith.constant 0 : index
      %c0_10 = arith.constant 0 : index
      %18 = vector.load %arg2[%c0_9, %c0_10] : memref<1x256xf32, #tpu.memory_space<vmem>>, vector<1x256xf32>
      tpu.vector_store %arg2[%c0_9, %c0_10], %17 {strides = array<i32>} : memref<1x256xf32, #tpu.memory_space<vmem>>, vector<1x256xf32>,
    } else {
    }
    %c0 = arith.constant 0 : index
    %c0_1 = arith.constant 0 : index
    %3 = vector.load %arg1[%c0, %c0_1] : memref<8x256xf32, #tpu.memory_space<vmem>>, vector<8x256xf32>
    %c8_i32 = arith.constant 8 : i32
    %4 = arith.muli %arg0, %c8_i32 : i32
    %5 = tpu.iota {dimensions = array<i32: 0>} : vector<8x256xi32>
    %6 = vector.broadcast %4 : i32 to vector<8x256xi32>
    %7 = arith.addi %6, %5 : vector<8x256xi32>
    %c8_i32_2 = arith.constant 8 : i32
    %8 = vector.broadcast %c8_i32_2 : i32 to vector<8x256xi32>
    %9 = arith.cmpi slt, %7, %8 : vector<8x256xi32>
    %cst = arith.constant 0.000000e+00 : f32
    %10 = vector.broadcast %cst : f32 to vector<8x256xf32>
    %11 = arith.select %9, %3, %10 : vector<8x256xi1>, vector<8x256xf32>
    %c0_3 = arith.constant 0 : index
    %c0_4 = arith.constant 0 : index
    %12 = vector.load %arg2[%c0_3, %c0_4] : memref<1x256xf32, #tpu.memory_space<vmem>>, vector<1x256xf32>
    %cst_5 = arith.constant dense<0.000000e+00> : vector<256xf32>
    %13 = vector.multi_reduction <add>, %11, %cst_5 [0] : vector<8x256xf32> to vector<256xf32>
    %14 = vector.shape_cast %13 : vector<256xf32> to vector<1x256xf32>
    %15 = arith.addf %12, %14 : vector<1x256xf32>
    %c0_6 = arith.constant 0 : index
    %c0_7 = arith.constant 0 : index
    %16 = vector.load %arg2[%c0_6, %c0_7] : memref<1x256xf32, #tpu.memory_space<vmem>>, vector<1x256xf32>
    tpu.vector_store %arg2[%c0_6, %c0_7], %15 {strides = array<i32>} : memref<1x256xf32, #tpu.memory_space<vmem>>, vector<1x256xf32>,
    return
  }
  func.func @transform_0(%arg0: i32) -> (i32, i32) {
    %c0_i32 = arith.constant 0 : i32
    %c0_i32_0 = arith.constant 0 : i32
    return %arg0, %c0_i32 : i32, i32
  }
  func.func @transform_1(%arg0: i32) -> (i32, i32) {
    %c0_i32 = arith.constant 0 : i32
    %c0_i32_0 = arith.constant 0 : i32
    %c0_i32_1 = arith.constant 0 : i32
    return %c0_i32, %c0_i32_0 : i32, i32
  }
}

module attributes {stable_mosaic.version = 11 : i64} {
  func.func @_bn_norm_kernel(%arg0: i32, %arg1: memref<8x256xf32, #tpu.memory_space<vmem>>, %arg2: memref<1x256xf32, #tpu.memory_space<vmem>>, %arg3: memref<1x256xf32, #tpu.memory_space<vmem>>, %arg4: memref<8x256xf32, #tpu.memory_space<vmem>>) attributes {dimension_semantics = [#tpu.dimension_semantics<parallel>], iteration_bounds = array<i64: 1>, scalar_prefetch = 0 : i64, scratch_operands = 0 : i64, tpu.core_type = #tpu.core_type<tc>, window_params = [{transform_indices = @transform_0, window_bounds = array<i64: 8, 256>}, {pipeline_mode = #tpu.pipeline_mode<synchronous>, transform_indices = @transform_1, window_bounds = array<i64: 1, 256>}, {pipeline_mode = #tpu.pipeline_mode<synchronous>, transform_indices = @transform_2, window_bounds = array<i64: 1, 256>}, {transform_indices = @transform_3, window_bounds = array<i64: 8, 256>}]} {
    %c0 = arith.constant 0 : index
    %c0_0 = arith.constant 0 : index
    %0 = vector.load %arg1[%c0, %c0_0] : memref<8x256xf32, #tpu.memory_space<vmem>>, vector<8x256xf32>
    %c0_1 = arith.constant 0 : index
    %c0_2 = arith.constant 0 : index
    %1 = vector.load %arg2[%c0_1, %c0_2] : memref<1x256xf32, #tpu.memory_space<vmem>>, vector<1x256xf32>
    %2 = vector.broadcast %1 : vector<1x256xf32> to vector<8x256xf32>
    %3 = arith.mulf %0, %2 : vector<8x256xf32>
    %c0_3 = arith.constant 0 : index
    %c0_4 = arith.constant 0 : index
    %4 = vector.load %arg3[%c0_3, %c0_4] : memref<1x256xf32, #tpu.memory_space<vmem>>, vector<1x256xf32>
    %5 = vector.broadcast %4 : vector<1x256xf32> to vector<8x256xf32>
    %6 = arith.addf %3, %5 : vector<8x256xf32>
    %cst = arith.constant 0.000000e+00 : f32
    %7 = vector.broadcast %cst : f32 to vector<8x256xf32>
    %8 = arith.maximumf %6, %7 : vector<8x256xf32>
    %c0_5 = arith.constant 0 : index
    %c0_6 = arith.constant 0 : index
    %9 = vector.load %arg4[%c0_5, %c0_6] : memref<8x256xf32, #tpu.memory_space<vmem>>, vector<8x256xf32>
    tpu.vector_store %arg4[%c0_5, %c0_6], %8 {strides = array<i32>} : memref<8x256xf32, #tpu.memory_space<vmem>>, vector<8x256xf32>,
    return
  }
  func.func @transform_0(%arg0: i32) -> (i32, i32) {
    %c0_i32 = arith.constant 0 : i32
    %c0_i32_0 = arith.constant 0 : i32
    return %arg0, %c0_i32 : i32, i32
  }
  func.func @transform_1(%arg0: i32) -> (i32, i32) {
    %c0_i32 = arith.constant 0 : i32
    %c0_i32_0 = arith.constant 0 : i32
    %c0_i32_1 = arith.constant 0 : i32
    return %c0_i32, %c0_i32_0 : i32, i32
  }
  func.func @transform_2(%arg0: i32) -> (i32, i32) {
    %c0_i32 = arith.constant 0 : i32
    %c0_i32_0 = arith.constant 0 : i32
    %c0_i32_1 = arith.constant 0 : i32
    return %c0_i32, %c0_i32_0 : i32, i32
  }
  func.func @transform_3(%arg0: i32) -> (i32, i32) {
    %c0_i32 = arith.constant 0 : i32
    %c0_i32_0 = arith.constant 0 : i32
    return %arg0, %c0_i32 : i32, i32
  }
}

module attributes {stable_mosaic.version = 11 : i64} {
  func.func @_col_centered_sq_kernel(%arg0: i32, %arg1: memref<8x256xf32, #tpu.memory_space<vmem>>, %arg2: memref<1x256xf32, #tpu.memory_space<vmem>>, %arg3: memref<1x256xf32, #tpu.memory_space<vmem>>) attributes {dimension_semantics = [#tpu.dimension_semantics<arbitrary>], iteration_bounds = array<i64: 1>, scalar_prefetch = 0 : i64, scratch_operands = 0 : i64, tpu.core_type = #tpu.core_type<tc>, window_params = [{transform_indices = @transform_0, window_bounds = array<i64: 8, 256>}, {pipeline_mode = #tpu.pipeline_mode<synchronous>, transform_indices = @transform_1, window_bounds = array<i64: 1, 256>}, {pipeline_mode = #tpu.pipeline_mode<synchronous>, transform_indices = @transform_2, window_bounds = array<i64: 1, 256>}]} {
    %c0_i32 = arith.constant 0 : i32
    %0 = arith.cmpi eq, %arg0, %c0_i32 : i32
    %1 = arith.extui %0 : i1 to i32
    %c0_i32_0 = arith.constant 0 : i32
    %2 = arith.cmpi ne, %1, %c0_i32_0 : i32
    scf.if %2 {
      %cst_10 = arith.constant 0.000000e+00 : f32
      %21 = vector.broadcast %cst_10 : f32 to vector<1x256xf32>
      %c0_11 = arith.constant 0 : index
      %c0_12 = arith.constant 0 : index
      %22 = vector.load %arg3[%c0_11, %c0_12] : memref<1x256xf32, #tpu.memory_space<vmem>>, vector<1x256xf32>
      tpu.vector_store %arg3[%c0_11, %c0_12], %21 {strides = array<i32>} : memref<1x256xf32, #tpu.memory_space<vmem>>, vector<1x256xf32>,
    } else {
    }
    %c0 = arith.constant 0 : index
    %c0_1 = arith.constant 0 : index
    %3 = vector.load %arg1[%c0, %c0_1] : memref<8x256xf32, #tpu.memory_space<vmem>>, vector<8x256xf32>
    %c0_2 = arith.constant 0 : index
    %c0_3 = arith.constant 0 : index
    %4 = vector.load %arg2[%c0_2, %c0_3] : memref<1x256xf32, #tpu.memory_space<vmem>>, vector<1x256xf32>
    %5 = vector.broadcast %4 : vector<1x256xf32> to vector<8x256xf32>
    %6 = arith.subf %3, %5 : vector<8x256xf32>
    %c8_i32 = arith.constant 8 : i32
    %7 = arith.muli %arg0, %c8_i32 : i32
    %8 = tpu.iota {dimensions = array<i32: 0>} : vector<8x256xi32>
    %9 = vector.broadcast %7 : i32 to vector<8x256xi32>
    %10 = arith.addi %9, %8 : vector<8x256xi32>
    %c8_i32_4 = arith.constant 8 : i32
    %11 = vector.broadcast %c8_i32_4 : i32 to vector<8x256xi32>
    %12 = arith.cmpi slt, %10, %11 : vector<8x256xi32>
    %cst = arith.constant 0.000000e+00 : f32
    %13 = vector.broadcast %cst : f32 to vector<8x256xf32>
    %14 = arith.select %12, %6, %13 : vector<8x256xi1>, vector<8x256xf32>
    %c0_5 = arith.constant 0 : index
    %c0_6 = arith.constant 0 : index
    %15 = vector.load %arg3[%c0_5, %c0_6] : memref<1x256xf32, #tpu.memory_space<vmem>>, vector<1x256xf32>
    %16 = arith.mulf %14, %14 : vector<8x256xf32>
    %cst_7 = arith.constant dense<0.000000e+00> : vector<256xf32>
    %17 = vector.multi_reduction <add>, %16, %cst_7 [0] : vector<8x256xf32> to vector<256xf32>
    %18 = vector.shape_cast %17 : vector<256xf32> to vector<1x256xf32>
    %19 = arith.addf %15, %18 : vector<1x256xf32>
    %c0_8 = arith.constant 0 : index
    %c0_9 = arith.constant 0 : index
    %20 = vector.load %arg3[%c0_8, %c0_9] : memref<1x256xf32, #tpu.memory_space<vmem>>, vector<1x256xf32>
    tpu.vector_store %arg3[%c0_8, %c0_9], %19 {strides = array<i32>} : memref<1x256xf32, #tpu.memory_space<vmem>>, vector<1x256xf32>,
    return
  }
  func.func @transform_0(%arg0: i32) -> (i32, i32) {
    %c0_i32 = arith.constant 0 : i32
    %c0_i32_0 = arith.constant 0 : i32
    return %arg0, %c0_i32 : i32, i32
  }
  func.func @transform_1(%arg0: i32) -> (i32, i32) {
    %c0_i32 = arith.constant 0 : i32
    %c0_i32_0 = arith.constant 0 : i32
    %c0_i32_1 = arith.constant 0 : i32
    return %c0_i32, %c0_i32_0 : i32, i32
  }
  func.func @transform_2(%arg0: i32) -> (i32, i32) {
    %c0_i32 = arith.constant 0 : i32
    %c0_i32_0 = arith.constant 0 : i32
    %c0_i32_1 = arith.constant 0 : i32
    return %c0_i32, %c0_i32_0 : i32, i32
  }
}

module attributes {stable_mosaic.version = 11 : i64} {
  func.func @_matmul_single_k_kernel(%arg0: i32, %arg1: i32, %arg2: memref<32x576xbf16, #tpu.memory_space<vmem>>, %arg3: memref<576x128xbf16, #tpu.memory_space<vmem>>, %arg4: memref<1x128xf32, #tpu.memory_space<vmem>>, %arg5: memref<32x128xf32, #tpu.memory_space<vmem>>) attributes {dimension_semantics = [#tpu.dimension_semantics<parallel>, #tpu.dimension_semantics<parallel>], iteration_bounds = array<i64: 1, 1>, scalar_prefetch = 0 : i64, scratch_operands = 0 : i64, tpu.core_type = #tpu.core_type<tc>, window_params = [{transform_indices = @transform_0, window_bounds = array<i64: 32, 576>}, {transform_indices = @transform_1, window_bounds = array<i64: 576, 128>}, {transform_indices = @transform_2, window_bounds = array<i64: 1, 128>}, {transform_indices = @transform_3, window_bounds = array<i64: 32, 128>}]} {
    %c0 = arith.constant 0 : index
    %c0_0 = arith.constant 0 : index
    %0 = vector.load %arg2[%c0, %c0_0] : memref<32x576xbf16, #tpu.memory_space<vmem>>, vector<32x576xbf16>
    %c0_1 = arith.constant 0 : index
    %c0_2 = arith.constant 0 : index
    %1 = vector.load %arg3[%c0_1, %c0_2] : memref<576x128xbf16, #tpu.memory_space<vmem>>, vector<576x128xbf16>
    %cst = arith.constant dense<0.000000e+00> : vector<32x128xf32>
    %2 = tpu.matmul %0, %1, %cst {dimension_numbers = #tpu.dot_dimension_numbers<[1], [0], [0], [1], [0, 0, 1, 1], [], []>} : vector<32x576xbf16>, vector<576x128xbf16>, vector<32x128xf32> -> vector<32x128xf32>
    %c0_3 = arith.constant 0 : index
    %c0_4 = arith.constant 0 : index
    %3 = vector.load %arg4[%c0_3, %c0_4] : memref<1x128xf32, #tpu.memory_space<vmem>>, vector<1x128xf32>
    %4 = vector.broadcast %3 : vector<1x128xf32> to vector<32x128xf32>
    %5 = arith.addf %2, %4 : vector<32x128xf32>
    %c0_5 = arith.constant 0 : index
    %c0_6 = arith.constant 0 : index
    %6 = vector.load %arg5[%c0_5, %c0_6] : memref<32x128xf32, #tpu.memory_space<vmem>>, vector<32x128xf32>
    tpu.vector_store %arg5[%c0_5, %c0_6], %5 {strides = array<i32>} : memref<32x128xf32, #tpu.memory_space<vmem>>, vector<32x128xf32>,
    return
  }
  func.func @transform_0(%arg0: i32, %arg1: i32) -> (i32, i32) {
    %c0_i32 = arith.constant 0 : i32
    %c0_i32_0 = arith.constant 0 : i32
    return %arg0, %c0_i32 : i32, i32
  }
  func.func @transform_1(%arg0: i32, %arg1: i32) -> (i32, i32) {
    %c0_i32 = arith.constant 0 : i32
    %c0_i32_0 = arith.constant 0 : i32
    return %c0_i32, %arg1 : i32, i32
  }
  func.func @transform_2(%arg0: i32, %arg1: i32) -> (i32, i32) {
    %c0_i32 = arith.constant 0 : i32
    %c0_i32_0 = arith.constant 0 : i32
    return %c0_i32, %arg1 : i32, i32
  }
  func.func @transform_3(%arg0: i32, %arg1: i32) -> (i32, i32) {
    %c0_i32 = arith.constant 0 : i32
    return %arg0, %arg1 : i32, i32
  }
}

module attributes {stable_mosaic.version = 11 : i64} {
  func.func @_convlstm_step_kernel(%arg0: i32, %arg1: memref<8x288xbf16, #tpu.memory_space<vmem>>, %arg2: memref<288x128xbf16, #tpu.memory_space<vmem>>, %arg3: memref<8x128xf32, #tpu.memory_space<vmem>>, %arg4: memref<8x32xf32, #tpu.memory_space<vmem>>, %arg5: memref<8x32xf32, #tpu.memory_space<vmem>>, %arg6: memref<8x32xf32, #tpu.memory_space<vmem>>) attributes {dimension_semantics = [#tpu.dimension_semantics<parallel>], iteration_bounds = array<i64: 1>, scalar_prefetch = 0 : i64, scratch_operands = 0 : i64, tpu.core_type = #tpu.core_type<tc>, window_params = [{transform_indices = @transform_0, window_bounds = array<i64: 8, 288>}, {pipeline_mode = #tpu.pipeline_mode<synchronous>, transform_indices = @transform_1, window_bounds = array<i64: 288, 128>}, {transform_indices = @transform_2, window_bounds = array<i64: 8, 128>}, {transform_indices = @transform_3, window_bounds = array<i64: 8, 32>}, {transform_indices = @transform_4, window_bounds = array<i64: 8, 32>}, {transform_indices = @transform_5, window_bounds = array<i64: 8, 32>}]} {
    %c0 = arith.constant 0 : index
    %c0_0 = arith.constant 0 : index
    %0 = vector.load %arg1[%c0, %c0_0] : memref<8x288xbf16, #tpu.memory_space<vmem>>, vector<8x288xbf16>
    %c0_1 = arith.constant 0 : index
    %c0_2 = arith.constant 0 : index
    %1 = vector.load %arg2[%c0_1, %c0_2] : memref<288x128xbf16, #tpu.memory_space<vmem>>, vector<288x128xbf16>
    %cst = arith.constant dense<0.000000e+00> : vector<8x128xf32>
    %2 = tpu.matmul %0, %1, %cst {dimension_numbers = #tpu.dot_dimension_numbers<[1], [0], [0], [1], [0, 0, 1, 1], [], []>} : vector<8x288xbf16>, vector<288x128xbf16>, vector<8x128xf32> -> vector<8x128xf32>
    %c0_3 = arith.constant 0 : index
    %c0_4 = arith.constant 0 : index
    %3 = vector.load %arg3[%c0_3, %c0_4] : memref<8x128xf32, #tpu.memory_space<vmem>>, vector<8x128xf32>
    %4 = arith.addf %2, %3 : vector<8x128xf32>
    %5 = vector.extract_strided_slice %4 {offsets = [0, 0], sizes = [8, 32], strides = [1, 1]} : vector<8x128xf32> to vector<8x32xf32>
    %6 = arith.negf %5 : vector<8x32xf32>
    %7 = math.exp %6 : vector<8x32xf32>
    %cst_5 = arith.constant 1.000000e+00 : f32
    %8 = vector.broadcast %cst_5 : f32 to vector<8x32xf32>
    %9 = arith.addf %8, %7 : vector<8x32xf32>
    %10 = arith.divf %8, %9 : vector<8x32xf32>
    %11 = vector.extract_strided_slice %4 {offsets = [0, 32], sizes = [8, 32], strides = [1, 1]} : vector<8x128xf32> to vector<8x32xf32>
    %12 = arith.negf %11 : vector<8x32xf32>
    %13 = math.exp %12 : vector<8x32xf32>
    %cst_6 = arith.constant 1.000000e+00 : f32
    %14 = vector.broadcast %cst_6 : f32 to vector<8x32xf32>
    %15 = arith.addf %14, %13 : vector<8x32xf32>
    %16 = arith.divf %14, %15 : vector<8x32xf32>
    %17 = vector.extract_strided_slice %4 {offsets = [0, 64], sizes = [8, 32], strides = [1, 1]} : vector<8x128xf32> to vector<8x32xf32>
    %18 = arith.negf %17 : vector<8x32xf32>
    %19 = math.exp %18 : vector<8x32xf32>
    %cst_7 = arith.constant 1.000000e+00 : f32
    %20 = vector.broadcast %cst_7 : f32 to vector<8x32xf32>
    %21 = arith.addf %20, %19 : vector<8x32xf32>
    %22 = arith.divf %20, %21 : vector<8x32xf32>
    %23 = vector.extract_strided_slice %4 {offsets = [0, 96], sizes = [8, 32], strides = [1, 1]} : vector<8x128xf32> to vector<8x32xf32>
    %24 = math.tanh %23 : vector<8x32xf32>
    %c0_8 = arith.constant 0 : index
    %c0_9 = arith.constant 0 : index
    %25 = vector.load %arg4[%c0_8, %c0_9] : memref<8x32xf32, #tpu.memory_space<vmem>>, vector<8x32xf32>
    %26 = arith.mulf %16, %25 : vector<8x32xf32>
    %27 = arith.mulf %10, %24 : vector<8x32xf32>
    %28 = arith.addf %26, %27 : vector<8x32xf32>
    %c0_10 = arith.constant 0 : index
    %c0_11 = arith.constant 0 : index
    %29 = vector.load %arg6[%c0_10, %c0_11] : memref<8x32xf32, #tpu.memory_space<vmem>>, vector<8x32xf32>
    tpu.vector_store %arg6[%c0_10, %c0_11], %28 {strides = array<i32>} : memref<8x32xf32, #tpu.memory_space<vmem>>, vector<8x32xf32>,
    %30 = math.tanh %28 : vector<8x32xf32>
    %31 = arith.mulf %22, %30 : vector<8x32xf32>
    %c0_12 = arith.constant 0 : index
    %c0_13 = arith.constant 0 : index
    %32 = vector.load %arg5[%c0_12, %c0_13] : memref<8x32xf32, #tpu.memory_space<vmem>>, vector<8x32xf32>
    tpu.vector_store %arg5[%c0_12, %c0_13], %31 {strides = array<i32>} : memref<8x32xf32, #tpu.memory_space<vmem>>, vector<8x32xf32>,
    return
  }
  func.func @transform_0(%arg0: i32) -> (i32, i32) {
    %c0_i32 = arith.constant 0 : i32
    %c0_i32_0 = arith.constant 0 : i32
    return %arg0, %c0_i32 : i32, i32
  }
  func.func @transform_1(%arg0: i32) -> (i32, i32) {
    %c0_i32 = arith.constant 0 : i32
    %c0_i32_0 = arith.constant 0 : i32
    %c0_i32_1 = arith.constant 0 : i32
    return %c0_i32, %c0_i32_0 : i32, i32
  }
  func.func @transform_2(%arg0: i32) -> (i32, i32) {
    %c0_i32 = arith.constant 0 : i32
    %c0_i32_0 = arith.constant 0 : i32
    return %arg0, %c0_i32 : i32, i32
  }
  func.func @transform_3(%arg0: i32) -> (i32, i32) {
    %c0_i32 = arith.constant 0 : i32
    %c0_i32_0 = arith.constant 0 : i32
    return %arg0, %c0_i32 : i32, i32
  }
  func.func @transform_4(%arg0: i32) -> (i32, i32) {
    %c0_i32 = arith.constant 0 : i32
    %c0_i32_0 = arith.constant 0 : i32
    return %arg0, %c0_i32 : i32, i32
  }
  func.func @transform_5(%arg0: i32) -> (i32, i32) {
    %c0_i32 = arith.constant 0 : i32
    %c0_i32_0 = arith.constant 0 : i32
    return %arg0, %c0_i32 : i32, i32
  }
}

module attributes {stable_mosaic.version = 11 : i64} {
  func.func @_col_sum_kernel(%arg0: i32, %arg1: memref<8x128xf32, #tpu.memory_space<vmem>>, %arg2: memref<1x128xf32, #tpu.memory_space<vmem>>) attributes {dimension_semantics = [#tpu.dimension_semantics<arbitrary>], iteration_bounds = array<i64: 1>, scalar_prefetch = 0 : i64, scratch_operands = 0 : i64, tpu.core_type = #tpu.core_type<tc>, window_params = [{transform_indices = @transform_0, window_bounds = array<i64: 8, 128>}, {pipeline_mode = #tpu.pipeline_mode<synchronous>, transform_indices = @transform_1, window_bounds = array<i64: 1, 128>}]} {
    %c0_i32 = arith.constant 0 : i32
    %0 = arith.cmpi eq, %arg0, %c0_i32 : i32
    %1 = arith.extui %0 : i1 to i32
    %c0_i32_0 = arith.constant 0 : i32
    %2 = arith.cmpi ne, %1, %c0_i32_0 : i32
    scf.if %2 {
      %cst_8 = arith.constant 0.000000e+00 : f32
      %17 = vector.broadcast %cst_8 : f32 to vector<1x128xf32>
      %c0_9 = arith.constant 0 : index
      %c0_10 = arith.constant 0 : index
      %18 = vector.load %arg2[%c0_9, %c0_10] : memref<1x128xf32, #tpu.memory_space<vmem>>, vector<1x128xf32>
      tpu.vector_store %arg2[%c0_9, %c0_10], %17 {strides = array<i32>} : memref<1x128xf32, #tpu.memory_space<vmem>>, vector<1x128xf32>,
    } else {
    }
    %c0 = arith.constant 0 : index
    %c0_1 = arith.constant 0 : index
    %3 = vector.load %arg1[%c0, %c0_1] : memref<8x128xf32, #tpu.memory_space<vmem>>, vector<8x128xf32>
    %c8_i32 = arith.constant 8 : i32
    %4 = arith.muli %arg0, %c8_i32 : i32
    %5 = tpu.iota {dimensions = array<i32: 0>} : vector<8x128xi32>
    %6 = vector.broadcast %4 : i32 to vector<8x128xi32>
    %7 = arith.addi %6, %5 : vector<8x128xi32>
    %c8_i32_2 = arith.constant 8 : i32
    %8 = vector.broadcast %c8_i32_2 : i32 to vector<8x128xi32>
    %9 = arith.cmpi slt, %7, %8 : vector<8x128xi32>
    %cst = arith.constant 0.000000e+00 : f32
    %10 = vector.broadcast %cst : f32 to vector<8x128xf32>
    %11 = arith.select %9, %3, %10 : vector<8x128xi1>, vector<8x128xf32>
    %c0_3 = arith.constant 0 : index
    %c0_4 = arith.constant 0 : index
    %12 = vector.load %arg2[%c0_3, %c0_4] : memref<1x128xf32, #tpu.memory_space<vmem>>, vector<1x128xf32>
    %cst_5 = arith.constant dense<0.000000e+00> : vector<128xf32>
    %13 = vector.multi_reduction <add>, %11, %cst_5 [0] : vector<8x128xf32> to vector<128xf32>
    %14 = vector.shape_cast %13 : vector<128xf32> to vector<1x128xf32>
    %15 = arith.addf %12, %14 : vector<1x128xf32>
    %c0_6 = arith.constant 0 : index
    %c0_7 = arith.constant 0 : index
    %16 = vector.load %arg2[%c0_6, %c0_7] : memref<1x128xf32, #tpu.memory_space<vmem>>, vector<1x128xf32>
    tpu.vector_store %arg2[%c0_6, %c0_7], %15 {strides = array<i32>} : memref<1x128xf32, #tpu.memory_space<vmem>>, vector<1x128xf32>,
    return
  }
  func.func @transform_0(%arg0: i32) -> (i32, i32) {
    %c0_i32 = arith.constant 0 : i32
    %c0_i32_0 = arith.constant 0 : i32
    return %arg0, %c0_i32 : i32, i32
  }
  func.func @transform_1(%arg0: i32) -> (i32, i32) {
    %c0_i32 = arith.constant 0 : i32
    %c0_i32_0 = arith.constant 0 : i32
    %c0_i32_1 = arith.constant 0 : i32
    return %c0_i32, %c0_i32_0 : i32, i32
  }
}

module attributes {stable_mosaic.version = 11 : i64} {
  func.func @_col_centered_sq_kernel(%arg0: i32, %arg1: memref<8x128xf32, #tpu.memory_space<vmem>>, %arg2: memref<1x128xf32, #tpu.memory_space<vmem>>, %arg3: memref<1x128xf32, #tpu.memory_space<vmem>>) attributes {dimension_semantics = [#tpu.dimension_semantics<arbitrary>], iteration_bounds = array<i64: 1>, scalar_prefetch = 0 : i64, scratch_operands = 0 : i64, tpu.core_type = #tpu.core_type<tc>, window_params = [{transform_indices = @transform_0, window_bounds = array<i64: 8, 128>}, {pipeline_mode = #tpu.pipeline_mode<synchronous>, transform_indices = @transform_1, window_bounds = array<i64: 1, 128>}, {pipeline_mode = #tpu.pipeline_mode<synchronous>, transform_indices = @transform_2, window_bounds = array<i64: 1, 128>}]} {
    %c0_i32 = arith.constant 0 : i32
    %0 = arith.cmpi eq, %arg0, %c0_i32 : i32
    %1 = arith.extui %0 : i1 to i32
    %c0_i32_0 = arith.constant 0 : i32
    %2 = arith.cmpi ne, %1, %c0_i32_0 : i32
    scf.if %2 {
      %cst_10 = arith.constant 0.000000e+00 : f32
      %21 = vector.broadcast %cst_10 : f32 to vector<1x128xf32>
      %c0_11 = arith.constant 0 : index
      %c0_12 = arith.constant 0 : index
      %22 = vector.load %arg3[%c0_11, %c0_12] : memref<1x128xf32, #tpu.memory_space<vmem>>, vector<1x128xf32>
      tpu.vector_store %arg3[%c0_11, %c0_12], %21 {strides = array<i32>} : memref<1x128xf32, #tpu.memory_space<vmem>>, vector<1x128xf32>,
    } else {
    }
    %c0 = arith.constant 0 : index
    %c0_1 = arith.constant 0 : index
    %3 = vector.load %arg1[%c0, %c0_1] : memref<8x128xf32, #tpu.memory_space<vmem>>, vector<8x128xf32>
    %c0_2 = arith.constant 0 : index
    %c0_3 = arith.constant 0 : index
    %4 = vector.load %arg2[%c0_2, %c0_3] : memref<1x128xf32, #tpu.memory_space<vmem>>, vector<1x128xf32>
    %5 = vector.broadcast %4 : vector<1x128xf32> to vector<8x128xf32>
    %6 = arith.subf %3, %5 : vector<8x128xf32>
    %c8_i32 = arith.constant 8 : i32
    %7 = arith.muli %arg0, %c8_i32 : i32
    %8 = tpu.iota {dimensions = array<i32: 0>} : vector<8x128xi32>
    %9 = vector.broadcast %7 : i32 to vector<8x128xi32>
    %10 = arith.addi %9, %8 : vector<8x128xi32>
    %c8_i32_4 = arith.constant 8 : i32
    %11 = vector.broadcast %c8_i32_4 : i32 to vector<8x128xi32>
    %12 = arith.cmpi slt, %10, %11 : vector<8x128xi32>
    %cst = arith.constant 0.000000e+00 : f32
    %13 = vector.broadcast %cst : f32 to vector<8x128xf32>
    %14 = arith.select %12, %6, %13 : vector<8x128xi1>, vector<8x128xf32>
    %c0_5 = arith.constant 0 : index
    %c0_6 = arith.constant 0 : index
    %15 = vector.load %arg3[%c0_5, %c0_6] : memref<1x128xf32, #tpu.memory_space<vmem>>, vector<1x128xf32>
    %16 = arith.mulf %14, %14 : vector<8x128xf32>
    %cst_7 = arith.constant dense<0.000000e+00> : vector<128xf32>
    %17 = vector.multi_reduction <add>, %16, %cst_7 [0] : vector<8x128xf32> to vector<128xf32>
    %18 = vector.shape_cast %17 : vector<128xf32> to vector<1x128xf32>
    %19 = arith.addf %15, %18 : vector<1x128xf32>
    %c0_8 = arith.constant 0 : index
    %c0_9 = arith.constant 0 : index
    %20 = vector.load %arg3[%c0_8, %c0_9] : memref<1x128xf32, #tpu.memory_space<vmem>>, vector<1x128xf32>
    tpu.vector_store %arg3[%c0_8, %c0_9], %19 {strides = array<i32>} : memref<1x128xf32, #tpu.memory_space<vmem>>, vector<1x128xf32>,
    return
  }
  func.func @transform_0(%arg0: i32) -> (i32, i32) {
    %c0_i32 = arith.constant 0 : i32
    %c0_i32_0 = arith.constant 0 : i32
    return %arg0, %c0_i32 : i32, i32
  }
  func.func @transform_1(%arg0: i32) -> (i32, i32) {
    %c0_i32 = arith.constant 0 : i32
    %c0_i32_0 = arith.constant 0 : i32
    %c0_i32_1 = arith.constant 0 : i32
    return %c0_i32, %c0_i32_0 : i32, i32
  }
  func.func @transform_2(%arg0: i32) -> (i32, i32) {
    %c0_i32 = arith.constant 0 : i32
    %c0_i32_0 = arith.constant 0 : i32
    %c0_i32_1 = arith.constant 0 : i32
    return %c0_i32, %c0_i32_0 : i32, i32
  }
}

module attributes {stable_mosaic.version = 11 : i64} {
  func.func @_bn_norm_kernel(%arg0: i32, %arg1: memref<8x128xf32, #tpu.memory_space<vmem>>, %arg2: memref<1x128xf32, #tpu.memory_space<vmem>>, %arg3: memref<1x128xf32, #tpu.memory_space<vmem>>, %arg4: memref<8x128xf32, #tpu.memory_space<vmem>>) attributes {dimension_semantics = [#tpu.dimension_semantics<parallel>], iteration_bounds = array<i64: 1>, scalar_prefetch = 0 : i64, scratch_operands = 0 : i64, tpu.core_type = #tpu.core_type<tc>, window_params = [{transform_indices = @transform_0, window_bounds = array<i64: 8, 128>}, {pipeline_mode = #tpu.pipeline_mode<synchronous>, transform_indices = @transform_1, window_bounds = array<i64: 1, 128>}, {pipeline_mode = #tpu.pipeline_mode<synchronous>, transform_indices = @transform_2, window_bounds = array<i64: 1, 128>}, {transform_indices = @transform_3, window_bounds = array<i64: 8, 128>}]} {
    %c0 = arith.constant 0 : index
    %c0_0 = arith.constant 0 : index
    %0 = vector.load %arg1[%c0, %c0_0] : memref<8x128xf32, #tpu.memory_space<vmem>>, vector<8x128xf32>
    %c0_1 = arith.constant 0 : index
    %c0_2 = arith.constant 0 : index
    %1 = vector.load %arg2[%c0_1, %c0_2] : memref<1x128xf32, #tpu.memory_space<vmem>>, vector<1x128xf32>
    %2 = vector.broadcast %1 : vector<1x128xf32> to vector<8x128xf32>
    %3 = arith.mulf %0, %2 : vector<8x128xf32>
    %c0_3 = arith.constant 0 : index
    %c0_4 = arith.constant 0 : index
    %4 = vector.load %arg3[%c0_3, %c0_4] : memref<1x128xf32, #tpu.memory_space<vmem>>, vector<1x128xf32>
    %5 = vector.broadcast %4 : vector<1x128xf32> to vector<8x128xf32>
    %6 = arith.addf %3, %5 : vector<8x128xf32>
    %c0_5 = arith.constant 0 : index
    %c0_6 = arith.constant 0 : index
    %7 = vector.load %arg4[%c0_5, %c0_6] : memref<8x128xf32, #tpu.memory_space<vmem>>, vector<8x128xf32>
    tpu.vector_store %arg4[%c0_5, %c0_6], %6 {strides = array<i32>} : memref<8x128xf32, #tpu.memory_space<vmem>>, vector<8x128xf32>,
    return
  }
  func.func @transform_0(%arg0: i32) -> (i32, i32) {
    %c0_i32 = arith.constant 0 : i32
    %c0_i32_0 = arith.constant 0 : i32
    return %arg0, %c0_i32 : i32, i32
  }
  func.func @transform_1(%arg0: i32) -> (i32, i32) {
    %c0_i32 = arith.constant 0 : i32
    %c0_i32_0 = arith.constant 0 : i32
    %c0_i32_1 = arith.constant 0 : i32
    return %c0_i32, %c0_i32_0 : i32, i32
  }
  func.func @transform_2(%arg0: i32) -> (i32, i32) {
    %c0_i32 = arith.constant 0 : i32
    %c0_i32_0 = arith.constant 0 : i32
    %c0_i32_1 = arith.constant 0 : i32
    return %c0_i32, %c0_i32_0 : i32, i32
  }
  func.func @transform_3(%arg0: i32) -> (i32, i32) {
    %c0_i32 = arith.constant 0 : i32
    %c0_i32_0 = arith.constant 0 : i32
    return %arg0, %c0_i32 : i32, i32
  }
}

module attributes {stable_mosaic.version = 11 : i64} {
  func.func @_matmul_single_k_kernel(%arg0: i32, %arg1: i32, %arg2: memref<32x288xbf16, #tpu.memory_space<vmem>>, %arg3: memref<288x64xbf16, #tpu.memory_space<vmem>>, %arg4: memref<1x64xf32, #tpu.memory_space<vmem>>, %arg5: memref<32x64xf32, #tpu.memory_space<vmem>>) attributes {dimension_semantics = [#tpu.dimension_semantics<parallel>, #tpu.dimension_semantics<parallel>], iteration_bounds = array<i64: 1, 1>, scalar_prefetch = 0 : i64, scratch_operands = 0 : i64, tpu.core_type = #tpu.core_type<tc>, window_params = [{transform_indices = @transform_0, window_bounds = array<i64: 32, 288>}, {transform_indices = @transform_1, window_bounds = array<i64: 288, 64>}, {transform_indices = @transform_2, window_bounds = array<i64: 1, 64>}, {transform_indices = @transform_3, window_bounds = array<i64: 32, 64>}]} {
    %c0 = arith.constant 0 : index
    %c0_0 = arith.constant 0 : index
    %0 = vector.load %arg2[%c0, %c0_0] : memref<32x288xbf16, #tpu.memory_space<vmem>>, vector<32x288xbf16>
    %c0_1 = arith.constant 0 : index
    %c0_2 = arith.constant 0 : index
    %1 = vector.load %arg3[%c0_1, %c0_2] : memref<288x64xbf16, #tpu.memory_space<vmem>>, vector<288x64xbf16>
    %cst = arith.constant dense<0.000000e+00> : vector<32x64xf32>
    %2 = tpu.matmul %0, %1, %cst {dimension_numbers = #tpu.dot_dimension_numbers<[1], [0], [0], [1], [0, 0, 1, 1], [], []>} : vector<32x288xbf16>, vector<288x64xbf16>, vector<32x64xf32> -> vector<32x64xf32>
    %c0_3 = arith.constant 0 : index
    %c0_4 = arith.constant 0 : index
    %3 = vector.load %arg4[%c0_3, %c0_4] : memref<1x64xf32, #tpu.memory_space<vmem>>, vector<1x64xf32>
    %4 = vector.broadcast %3 : vector<1x64xf32> to vector<32x64xf32>
    %5 = arith.addf %2, %4 : vector<32x64xf32>
    %c0_5 = arith.constant 0 : index
    %c0_6 = arith.constant 0 : index
    %6 = vector.load %arg5[%c0_5, %c0_6] : memref<32x64xf32, #tpu.memory_space<vmem>>, vector<32x64xf32>
    tpu.vector_store %arg5[%c0_5, %c0_6], %5 {strides = array<i32>} : memref<32x64xf32, #tpu.memory_space<vmem>>, vector<32x64xf32>,
    return
  }
  func.func @transform_0(%arg0: i32, %arg1: i32) -> (i32, i32) {
    %c0_i32 = arith.constant 0 : i32
    %c0_i32_0 = arith.constant 0 : i32
    return %arg0, %c0_i32 : i32, i32
  }
  func.func @transform_1(%arg0: i32, %arg1: i32) -> (i32, i32) {
    %c0_i32 = arith.constant 0 : i32
    %c0_i32_0 = arith.constant 0 : i32
    return %c0_i32, %arg1 : i32, i32
  }
  func.func @transform_2(%arg0: i32, %arg1: i32) -> (i32, i32) {
    %c0_i32 = arith.constant 0 : i32
    %c0_i32_0 = arith.constant 0 : i32
    return %c0_i32, %arg1 : i32, i32
  }
  func.func @transform_3(%arg0: i32, %arg1: i32) -> (i32, i32) {
    %c0_i32 = arith.constant 0 : i32
    return %arg0, %arg1 : i32, i32
  }
}

module attributes {stable_mosaic.version = 11 : i64} {
  func.func @_col_sum_kernel(%arg0: i32, %arg1: memref<8x64xf32, #tpu.memory_space<vmem>>, %arg2: memref<1x64xf32, #tpu.memory_space<vmem>>) attributes {dimension_semantics = [#tpu.dimension_semantics<arbitrary>], iteration_bounds = array<i64: 1>, scalar_prefetch = 0 : i64, scratch_operands = 0 : i64, tpu.core_type = #tpu.core_type<tc>, window_params = [{transform_indices = @transform_0, window_bounds = array<i64: 8, 64>}, {pipeline_mode = #tpu.pipeline_mode<synchronous>, transform_indices = @transform_1, window_bounds = array<i64: 1, 64>}]} {
    %c0_i32 = arith.constant 0 : i32
    %0 = arith.cmpi eq, %arg0, %c0_i32 : i32
    %1 = arith.extui %0 : i1 to i32
    %c0_i32_0 = arith.constant 0 : i32
    %2 = arith.cmpi ne, %1, %c0_i32_0 : i32
    scf.if %2 {
      %cst_8 = arith.constant 0.000000e+00 : f32
      %17 = vector.broadcast %cst_8 : f32 to vector<1x64xf32>
      %c0_9 = arith.constant 0 : index
      %c0_10 = arith.constant 0 : index
      %18 = vector.load %arg2[%c0_9, %c0_10] : memref<1x64xf32, #tpu.memory_space<vmem>>, vector<1x64xf32>
      tpu.vector_store %arg2[%c0_9, %c0_10], %17 {strides = array<i32>} : memref<1x64xf32, #tpu.memory_space<vmem>>, vector<1x64xf32>,
    } else {
    }
    %c0 = arith.constant 0 : index
    %c0_1 = arith.constant 0 : index
    %3 = vector.load %arg1[%c0, %c0_1] : memref<8x64xf32, #tpu.memory_space<vmem>>, vector<8x64xf32>
    %c8_i32 = arith.constant 8 : i32
    %4 = arith.muli %arg0, %c8_i32 : i32
    %5 = tpu.iota {dimensions = array<i32: 0>} : vector<8x64xi32>
    %6 = vector.broadcast %4 : i32 to vector<8x64xi32>
    %7 = arith.addi %6, %5 : vector<8x64xi32>
    %c8_i32_2 = arith.constant 8 : i32
    %8 = vector.broadcast %c8_i32_2 : i32 to vector<8x64xi32>
    %9 = arith.cmpi slt, %7, %8 : vector<8x64xi32>
    %cst = arith.constant 0.000000e+00 : f32
    %10 = vector.broadcast %cst : f32 to vector<8x64xf32>
    %11 = arith.select %9, %3, %10 : vector<8x64xi1>, vector<8x64xf32>
    %c0_3 = arith.constant 0 : index
    %c0_4 = arith.constant 0 : index
    %12 = vector.load %arg2[%c0_3, %c0_4] : memref<1x64xf32, #tpu.memory_space<vmem>>, vector<1x64xf32>
    %cst_5 = arith.constant dense<0.000000e+00> : vector<64xf32>
    %13 = vector.multi_reduction <add>, %11, %cst_5 [0] : vector<8x64xf32> to vector<64xf32>
    %14 = vector.shape_cast %13 : vector<64xf32> to vector<1x64xf32>
    %15 = arith.addf %12, %14 : vector<1x64xf32>
    %c0_6 = arith.constant 0 : index
    %c0_7 = arith.constant 0 : index
    %16 = vector.load %arg2[%c0_6, %c0_7] : memref<1x64xf32, #tpu.memory_space<vmem>>, vector<1x64xf32>
    tpu.vector_store %arg2[%c0_6, %c0_7], %15 {strides = array<i32>} : memref<1x64xf32, #tpu.memory_space<vmem>>, vector<1x64xf32>,
    return
  }
  func.func @transform_0(%arg0: i32) -> (i32, i32) {
    %c0_i32 = arith.constant 0 : i32
    %c0_i32_0 = arith.constant 0 : i32
    return %arg0, %c0_i32 : i32, i32
  }
  func.func @transform_1(%arg0: i32) -> (i32, i32) {
    %c0_i32 = arith.constant 0 : i32
    %c0_i32_0 = arith.constant 0 : i32
    %c0_i32_1 = arith.constant 0 : i32
    return %c0_i32, %c0_i32_0 : i32, i32
  }
}

module attributes {stable_mosaic.version = 11 : i64} {
  func.func @_convlstm_step_kernel(%arg0: i32, %arg1: memref<8x144xbf16, #tpu.memory_space<vmem>>, %arg2: memref<144x64xbf16, #tpu.memory_space<vmem>>, %arg3: memref<8x64xf32, #tpu.memory_space<vmem>>, %arg4: memref<8x16xf32, #tpu.memory_space<vmem>>, %arg5: memref<8x16xf32, #tpu.memory_space<vmem>>, %arg6: memref<8x16xf32, #tpu.memory_space<vmem>>) attributes {dimension_semantics = [#tpu.dimension_semantics<parallel>], iteration_bounds = array<i64: 1>, scalar_prefetch = 0 : i64, scratch_operands = 0 : i64, tpu.core_type = #tpu.core_type<tc>, window_params = [{transform_indices = @transform_0, window_bounds = array<i64: 8, 144>}, {pipeline_mode = #tpu.pipeline_mode<synchronous>, transform_indices = @transform_1, window_bounds = array<i64: 144, 64>}, {transform_indices = @transform_2, window_bounds = array<i64: 8, 64>}, {transform_indices = @transform_3, window_bounds = array<i64: 8, 16>}, {transform_indices = @transform_4, window_bounds = array<i64: 8, 16>}, {transform_indices = @transform_5, window_bounds = array<i64: 8, 16>}]} {
    %c0 = arith.constant 0 : index
    %c0_0 = arith.constant 0 : index
    %0 = vector.load %arg1[%c0, %c0_0] : memref<8x144xbf16, #tpu.memory_space<vmem>>, vector<8x144xbf16>
    %c0_1 = arith.constant 0 : index
    %c0_2 = arith.constant 0 : index
    %1 = vector.load %arg2[%c0_1, %c0_2] : memref<144x64xbf16, #tpu.memory_space<vmem>>, vector<144x64xbf16>
    %cst = arith.constant dense<0.000000e+00> : vector<8x64xf32>
    %2 = tpu.matmul %0, %1, %cst {dimension_numbers = #tpu.dot_dimension_numbers<[1], [0], [0], [1], [0, 0, 1, 1], [], []>} : vector<8x144xbf16>, vector<144x64xbf16>, vector<8x64xf32> -> vector<8x64xf32>
    %c0_3 = arith.constant 0 : index
    %c0_4 = arith.constant 0 : index
    %3 = vector.load %arg3[%c0_3, %c0_4] : memref<8x64xf32, #tpu.memory_space<vmem>>, vector<8x64xf32>
    %4 = arith.addf %2, %3 : vector<8x64xf32>
    %5 = vector.extract_strided_slice %4 {offsets = [0, 0], sizes = [8, 16], strides = [1, 1]} : vector<8x64xf32> to vector<8x16xf32>
    %6 = arith.negf %5 : vector<8x16xf32>
    %7 = math.exp %6 : vector<8x16xf32>
    %cst_5 = arith.constant 1.000000e+00 : f32
    %8 = vector.broadcast %cst_5 : f32 to vector<8x16xf32>
    %9 = arith.addf %8, %7 : vector<8x16xf32>
    %10 = arith.divf %8, %9 : vector<8x16xf32>
    %11 = vector.extract_strided_slice %4 {offsets = [0, 16], sizes = [8, 16], strides = [1, 1]} : vector<8x64xf32> to vector<8x16xf32>
    %12 = arith.negf %11 : vector<8x16xf32>
    %13 = math.exp %12 : vector<8x16xf32>
    %cst_6 = arith.constant 1.000000e+00 : f32
    %14 = vector.broadcast %cst_6 : f32 to vector<8x16xf32>
    %15 = arith.addf %14, %13 : vector<8x16xf32>
    %16 = arith.divf %14, %15 : vector<8x16xf32>
    %17 = vector.extract_strided_slice %4 {offsets = [0, 32], sizes = [8, 16], strides = [1, 1]} : vector<8x64xf32> to vector<8x16xf32>
    %18 = arith.negf %17 : vector<8x16xf32>
    %19 = math.exp %18 : vector<8x16xf32>
    %cst_7 = arith.constant 1.000000e+00 : f32
    %20 = vector.broadcast %cst_7 : f32 to vector<8x16xf32>
    %21 = arith.addf %20, %19 : vector<8x16xf32>
    %22 = arith.divf %20, %21 : vector<8x16xf32>
    %23 = vector.extract_strided_slice %4 {offsets = [0, 48], sizes = [8, 16], strides = [1, 1]} : vector<8x64xf32> to vector<8x16xf32>
    %24 = math.tanh %23 : vector<8x16xf32>
    %c0_8 = arith.constant 0 : index
    %c0_9 = arith.constant 0 : index
    %25 = vector.load %arg4[%c0_8, %c0_9] : memref<8x16xf32, #tpu.memory_space<vmem>>, vector<8x16xf32>
    %26 = arith.mulf %16, %25 : vector<8x16xf32>
    %27 = arith.mulf %10, %24 : vector<8x16xf32>
    %28 = arith.addf %26, %27 : vector<8x16xf32>
    %c0_10 = arith.constant 0 : index
    %c0_11 = arith.constant 0 : index
    %29 = vector.load %arg6[%c0_10, %c0_11] : memref<8x16xf32, #tpu.memory_space<vmem>>, vector<8x16xf32>
    tpu.vector_store %arg6[%c0_10, %c0_11], %28 {strides = array<i32>} : memref<8x16xf32, #tpu.memory_space<vmem>>, vector<8x16xf32>,
    %30 = math.tanh %28 : vector<8x16xf32>
    %31 = arith.mulf %22, %30 : vector<8x16xf32>
    %c0_12 = arith.constant 0 : index
    %c0_13 = arith.constant 0 : index
    %32 = vector.load %arg5[%c0_12, %c0_13] : memref<8x16xf32, #tpu.memory_space<vmem>>, vector<8x16xf32>
    tpu.vector_store %arg5[%c0_12, %c0_13], %31 {strides = array<i32>} : memref<8x16xf32, #tpu.memory_space<vmem>>, vector<8x16xf32>,
    return
  }
  func.func @transform_0(%arg0: i32) -> (i32, i32) {
    %c0_i32 = arith.constant 0 : i32
    %c0_i32_0 = arith.constant 0 : i32
    return %arg0, %c0_i32 : i32, i32
  }
  func.func @transform_1(%arg0: i32) -> (i32, i32) {
    %c0_i32 = arith.constant 0 : i32
    %c0_i32_0 = arith.constant 0 : i32
    %c0_i32_1 = arith.constant 0 : i32
    return %c0_i32, %c0_i32_0 : i32, i32
  }
  func.func @transform_2(%arg0: i32) -> (i32, i32) {
    %c0_i32 = arith.constant 0 : i32
    %c0_i32_0 = arith.constant 0 : i32
    return %arg0, %c0_i32 : i32, i32
  }
  func.func @transform_3(%arg0: i32) -> (i32, i32) {
    %c0_i32 = arith.constant 0 : i32
    %c0_i32_0 = arith.constant 0 : i32
    return %arg0, %c0_i32 : i32, i32
  }
  func.func @transform_4(%arg0: i32) -> (i32, i32) {
    %c0_i32 = arith.constant 0 : i32
    %c0_i32_0 = arith.constant 0 : i32
    return %arg0, %c0_i32 : i32, i32
  }
  func.func @transform_5(%arg0: i32) -> (i32, i32) {
    %c0_i32 = arith.constant 0 : i32
    %c0_i32_0 = arith.constant 0 : i32
    return %arg0, %c0_i32 : i32, i32
  }
}

module attributes {stable_mosaic.version = 11 : i64} {
  func.func @_bn_norm_kernel(%arg0: i32, %arg1: memref<8x64xf32, #tpu.memory_space<vmem>>, %arg2: memref<1x64xf32, #tpu.memory_space<vmem>>, %arg3: memref<1x64xf32, #tpu.memory_space<vmem>>, %arg4: memref<8x64xf32, #tpu.memory_space<vmem>>) attributes {dimension_semantics = [#tpu.dimension_semantics<parallel>], iteration_bounds = array<i64: 1>, scalar_prefetch = 0 : i64, scratch_operands = 0 : i64, tpu.core_type = #tpu.core_type<tc>, window_params = [{transform_indices = @transform_0, window_bounds = array<i64: 8, 64>}, {pipeline_mode = #tpu.pipeline_mode<synchronous>, transform_indices = @transform_1, window_bounds = array<i64: 1, 64>}, {pipeline_mode = #tpu.pipeline_mode<synchronous>, transform_indices = @transform_2, window_bounds = array<i64: 1, 64>}, {transform_indices = @transform_3, window_bounds = array<i64: 8, 64>}]} {
    %c0 = arith.constant 0 : index
    %c0_0 = arith.constant 0 : index
    %0 = vector.load %arg1[%c0, %c0_0] : memref<8x64xf32, #tpu.memory_space<vmem>>, vector<8x64xf32>
    %c0_1 = arith.constant 0 : index
    %c0_2 = arith.constant 0 : index
    %1 = vector.load %arg2[%c0_1, %c0_2] : memref<1x64xf32, #tpu.memory_space<vmem>>, vector<1x64xf32>
    %2 = vector.broadcast %1 : vector<1x64xf32> to vector<8x64xf32>
    %3 = arith.mulf %0, %2 : vector<8x64xf32>
    %c0_3 = arith.constant 0 : index
    %c0_4 = arith.constant 0 : index
    %4 = vector.load %arg3[%c0_3, %c0_4] : memref<1x64xf32, #tpu.memory_space<vmem>>, vector<1x64xf32>
    %5 = vector.broadcast %4 : vector<1x64xf32> to vector<8x64xf32>
    %6 = arith.addf %3, %5 : vector<8x64xf32>
    %c0_5 = arith.constant 0 : index
    %c0_6 = arith.constant 0 : index
    %7 = vector.load %arg4[%c0_5, %c0_6] : memref<8x64xf32, #tpu.memory_space<vmem>>, vector<8x64xf32>
    tpu.vector_store %arg4[%c0_5, %c0_6], %6 {strides = array<i32>} : memref<8x64xf32, #tpu.memory_space<vmem>>, vector<8x64xf32>,
    return
  }
  func.func @transform_0(%arg0: i32) -> (i32, i32) {
    %c0_i32 = arith.constant 0 : i32
    %c0_i32_0 = arith.constant 0 : i32
    return %arg0, %c0_i32 : i32, i32
  }
  func.func @transform_1(%arg0: i32) -> (i32, i32) {
    %c0_i32 = arith.constant 0 : i32
    %c0_i32_0 = arith.constant 0 : i32
    %c0_i32_1 = arith.constant 0 : i32
    return %c0_i32, %c0_i32_0 : i32, i32
  }
  func.func @transform_2(%arg0: i32) -> (i32, i32) {
    %c0_i32 = arith.constant 0 : i32
    %c0_i32_0 = arith.constant 0 : i32
    %c0_i32_1 = arith.constant 0 : i32
    return %c0_i32, %c0_i32_0 : i32, i32
  }
  func.func @transform_3(%arg0: i32) -> (i32, i32) {
    %c0_i32 = arith.constant 0 : i32
    %c0_i32_0 = arith.constant 0 : i32
    return %arg0, %c0_i32 : i32, i32
  }
}

module attributes {stable_mosaic.version = 11 : i64} {
  func.func @_col_centered_sq_kernel(%arg0: i32, %arg1: memref<8x64xf32, #tpu.memory_space<vmem>>, %arg2: memref<1x64xf32, #tpu.memory_space<vmem>>, %arg3: memref<1x64xf32, #tpu.memory_space<vmem>>) attributes {dimension_semantics = [#tpu.dimension_semantics<arbitrary>], iteration_bounds = array<i64: 1>, scalar_prefetch = 0 : i64, scratch_operands = 0 : i64, tpu.core_type = #tpu.core_type<tc>, window_params = [{transform_indices = @transform_0, window_bounds = array<i64: 8, 64>}, {pipeline_mode = #tpu.pipeline_mode<synchronous>, transform_indices = @transform_1, window_bounds = array<i64: 1, 64>}, {pipeline_mode = #tpu.pipeline_mode<synchronous>, transform_indices = @transform_2, window_bounds = array<i64: 1, 64>}]} {
    %c0_i32 = arith.constant 0 : i32
    %0 = arith.cmpi eq, %arg0, %c0_i32 : i32
    %1 = arith.extui %0 : i1 to i32
    %c0_i32_0 = arith.constant 0 : i32
    %2 = arith.cmpi ne, %1, %c0_i32_0 : i32
    scf.if %2 {
      %cst_10 = arith.constant 0.000000e+00 : f32
      %21 = vector.broadcast %cst_10 : f32 to vector<1x64xf32>
      %c0_11 = arith.constant 0 : index
      %c0_12 = arith.constant 0 : index
      %22 = vector.load %arg3[%c0_11, %c0_12] : memref<1x64xf32, #tpu.memory_space<vmem>>, vector<1x64xf32>
      tpu.vector_store %arg3[%c0_11, %c0_12], %21 {strides = array<i32>} : memref<1x64xf32, #tpu.memory_space<vmem>>, vector<1x64xf32>,
    } else {
    }
    %c0 = arith.constant 0 : index
    %c0_1 = arith.constant 0 : index
    %3 = vector.load %arg1[%c0, %c0_1] : memref<8x64xf32, #tpu.memory_space<vmem>>, vector<8x64xf32>
    %c0_2 = arith.constant 0 : index
    %c0_3 = arith.constant 0 : index
    %4 = vector.load %arg2[%c0_2, %c0_3] : memref<1x64xf32, #tpu.memory_space<vmem>>, vector<1x64xf32>
    %5 = vector.broadcast %4 : vector<1x64xf32> to vector<8x64xf32>
    %6 = arith.subf %3, %5 : vector<8x64xf32>
    %c8_i32 = arith.constant 8 : i32
    %7 = arith.muli %arg0, %c8_i32 : i32
    %8 = tpu.iota {dimensions = array<i32: 0>} : vector<8x64xi32>
    %9 = vector.broadcast %7 : i32 to vector<8x64xi32>
    %10 = arith.addi %9, %8 : vector<8x64xi32>
    %c8_i32_4 = arith.constant 8 : i32
    %11 = vector.broadcast %c8_i32_4 : i32 to vector<8x64xi32>
    %12 = arith.cmpi slt, %10, %11 : vector<8x64xi32>
    %cst = arith.constant 0.000000e+00 : f32
    %13 = vector.broadcast %cst : f32 to vector<8x64xf32>
    %14 = arith.select %12, %6, %13 : vector<8x64xi1>, vector<8x64xf32>
    %c0_5 = arith.constant 0 : index
    %c0_6 = arith.constant 0 : index
    %15 = vector.load %arg3[%c0_5, %c0_6] : memref<1x64xf32, #tpu.memory_space<vmem>>, vector<1x64xf32>
    %16 = arith.mulf %14, %14 : vector<8x64xf32>
    %cst_7 = arith.constant dense<0.000000e+00> : vector<64xf32>
    %17 = vector.multi_reduction <add>, %16, %cst_7 [0] : vector<8x64xf32> to vector<64xf32>
    %18 = vector.shape_cast %17 : vector<64xf32> to vector<1x64xf32>
    %19 = arith.addf %15, %18 : vector<1x64xf32>
    %c0_8 = arith.constant 0 : index
    %c0_9 = arith.constant 0 : index
    %20 = vector.load %arg3[%c0_8, %c0_9] : memref<1x64xf32, #tpu.memory_space<vmem>>, vector<1x64xf32>
    tpu.vector_store %arg3[%c0_8, %c0_9], %19 {strides = array<i32>} : memref<1x64xf32, #tpu.memory_space<vmem>>, vector<1x64xf32>,
    return
  }
  func.func @transform_0(%arg0: i32) -> (i32, i32) {
    %c0_i32 = arith.constant 0 : i32
    %c0_i32_0 = arith.constant 0 : i32
    return %arg0, %c0_i32 : i32, i32
  }
  func.func @transform_1(%arg0: i32) -> (i32, i32) {
    %c0_i32 = arith.constant 0 : i32
    %c0_i32_0 = arith.constant 0 : i32
    %c0_i32_1 = arith.constant 0 : i32
    return %c0_i32, %c0_i32_0 : i32, i32
  }
  func.func @transform_2(%arg0: i32) -> (i32, i32) {
    %c0_i32 = arith.constant 0 : i32
    %c0_i32_0 = arith.constant 0 : i32
    %c0_i32_1 = arith.constant 0 : i32
    return %c0_i32, %c0_i32_0 : i32, i32
  }
}

</mosaic_0001>

<bundles_post_ra>
// kernel: encoder_lstm_forward.13
= control target key start
LH: loop header
LB: loop body
LE: loop exit
PB: predicated region body
PF: predicated region fallthrough
CT: control target
= control target key end

     0   :  { %vm259_vm0 = vcmask 1040384   ;;  %vm234_vm1 = vcmask 932864   ;;  %s752_s1 = inlined_call_operand.vmem [shape: bf16[242,128], index: 1, kind: input, shape index: {}]   ;;  %s753_s0 = inlined_call_operand.vmem [shape: bf16[128,242], index: 0, kind: input, shape index: {}]   ;;  %s754_s2 = inlined_call_operand.vmem [shape: f32[1,128], index: 2, kind: input, shape index: {}]   ;;  %s755_s3 = inlined_call_operand.vmem [shape: f32[128,128], index: 3, kind: output, shape index: {}]  }
   0x1   :  { %v519_v0 = vld [vmem:[%s752_s1 + $0x78] ss:$0 sps:$4 sm:$0x11]   ;;  %v521_v2 = vld [vmem:[%s752_s1 + $0x70] sm:$0xff]   ;;  %v523_v4 = vld [vmem:[%s752_s1 + $0x68] sm:$0xff]  }
   0x2   :  { %v520_v1 = vld [vmem:[%s752_s1 + $0x38] sm:$0xff]   ;;  %517 = vmatprep.subr.msk.bf16.mxu0 %vm259_vm0, %v519_v0  ;;  %518 = vmatprep.subr.msk.bf16.mxu1 %vm259_vm0, %v519_v0  ;;  %v522_v3 = vld [vmem:[%s752_s1 + $0x30] sm:$0xff]   ;;  %v524_v5 = vld [vmem:[%s752_s1 + $0x28] sm:$0xff]  }
   0x3   :  { %438 = vmatpush3.bf16.msra.mxu0 %v520_v1  ;;  %509 = vmatpush3.bf16.msra.mxu1 %v520_v1  ;;  %v525_v6 = vld [vmem:[%s752_s1 + $0x60] sm:$0xff]   ;;  %v527_v8 = vld [vmem:[%s752_s1 + $0x58] sm:$0xff]   ;;  %v529_v10 = vld [vmem:[%s752_s1 + $0x50] sm:$0xff]  }
   0x4   :  { %439 = vmatprep.subr.bf16.mxu0 %v521_v2  ;;  %502 = vmatprep.subr.bf16.mxu1 %v521_v2  ;;  %v526_v7 = vld [vmem:[%s752_s1 + $0x20] sm:$0xff]   ;;  %v528_v9 = vld [vmem:[%s752_s1 + $0x18] sm:$0xff]   ;;  %v530_v13 = vld [vmem:[%s752_s1 + $0x10] sm:$0xff]  }
   0x5   :  { %v537_v11 = vld [vmem:[%s753_s0 + $0x4] ss:$8 sps:$4 sm:$0xff]   ;;  %v535_v18 = vld [vmem:[%s753_s0] ss:$8 sps:$4 sm:$0xff]   ;;  %v541_v20 = vld [vmem:[%s753_s0 + $0x14] ss:$8 sps:$4 sm:$0xff]  }
   0x6   :  { %429 = vmatprep.mubr.msk.bf16.mxu0 %vm234_vm1, %v537_v11  ;;  %v540_v12 = vld [vmem:[%s753_s0 + $0x44] ss:$8 sps:$4 sm:$0xff]   ;;  %v538_v19 = vld [vmem:[%s753_s0 + $0x40] ss:$8 sps:$4 sm:$0xff]   ;;  %v543_v21 = vld [vmem:[%s753_s0 + $0x54] ss:$8 sps:$4 sm:$0xff]  }
   0x7   :  { %440 = vmatpush3.bf16.msra.mxu0 %v522_v3  ;;  %510 = vmatpush3.bf16.msra.mxu1 %v522_v3  ;;  %v531_v14 = vld [vmem:[%s752_s1 + $0x48] sm:$0xff]   ;;  %v533_v16 = vld [vmem:[%s752_s1 + $0x40] sm:$0xff]   ;;  %v545_v22 = vld [vmem:[%s753_s0 + $0x10] ss:$8 sps:$4 sm:$0xff]  }
   0x8   :  { %441 = vmatprep.subr.bf16.mxu0 %v523_v4  ;;  %503 = vmatprep.subr.bf16.mxu1 %v523_v4  ;;  %v532_v15 = vld [vmem:[%s752_s1 + $0x8] sm:$0xff]   ;;  %v534_v17 = vld [vmem:[%s752_s1] sm:$0xff]   ;;  %v546_v23 = vld [vmem:[%s753_s0 + $0x50] ss:$8 sps:$4 sm:$0xff]  }
   0x9   :  { %433 = vmatprep.mubr.msk.bf16.mxu1 %vm234_vm1, %v540_v12  ;;  %v547_v24 = vld [vmem:[%s753_s0 + $0x24] ss:$8 sps:$4 sm:$0xff]   ;;  %v551_v26 = vld [vmem:[%s753_s0 + $0x20] ss:$8 sps:$4 sm:$0xff]   ;;  %v553_v28 = vld [vmem:[%s753_s0 + $0x34] ss:$8 sps:$4 sm:$0xff]  }
   0xa   :  { %v549_v25 = vld [vmem:[%s753_s0 + $0x64] ss:$8 sps:$4 sm:$0xff]   ;;  %v552_v27 = vld [vmem:[%s753_s0 + $0x60] ss:$8 sps:$4 sm:$0xff]   ;;  %v555_v29 = vld [vmem:[%s753_s0 + $0x74] ss:$8 sps:$4 sm:$0xff]  }
   0xb   :  { %442 = vmatpush3.bf16.msra.mxu0 %v524_v5  ;;  %511 = vmatpush3.bf16.msra.mxu1 %v524_v5  ;;  %v557_v30 = vld [vmem:[%s753_s0 + $0x30] ss:$8 sps:$4 sm:$0xff]   ;;  %v686_v34 = vld [vmem:[%s754_s2] ss:$0 sm:$0xff] }
   0xc   :  { %443 = vmatprep.subr.bf16.mxu0 %v525_v6  ;;  %504 = vmatprep.subr.bf16.mxu1 %v525_v6  ;;  %v558_v31 = vld [vmem:[%s753_s0 + $0x70] ss:$8 sps:$4 sm:$0xff]  }
   0xf   :  { %444 = vmatpush3.bf16.msra.mxu0 %v526_v7  ;;  %512 = vmatpush3.bf16.msra.mxu1 %v526_v7 }
  0x10   :  { %445 = vmatprep.subr.bf16.mxu0 %v527_v8  ;;  %505 = vmatprep.subr.bf16.mxu1 %v527_v8 }
  0x13   :  { %446 = vmatpush3.bf16.msra.mxu0 %v528_v9  ;;  %513 = vmatpush3.bf16.msra.mxu1 %v528_v9 }
  0x14   :  { %447 = vmatprep.subr.bf16.mxu0 %v529_v10  ;;  %506 = vmatprep.subr.bf16.mxu1 %v529_v10 }
  0x17   :  { %448 = vmatpush3.bf16.msra.mxu0 %v530_v13  ;;  %514 = vmatpush3.bf16.msra.mxu1 %v530_v13 }
  0x18   :  { %449 = vmatprep.subr.bf16.mxu0 %v531_v14  ;;  %507 = vmatprep.subr.bf16.mxu1 %v531_v14 }
  0x1b   :  { %450 = vmatpush3.bf16.msra.mxu0 %v532_v15  ;;  %515 = vmatpush3.bf16.msra.mxu1 %v532_v15 }
  0x1c   :  { %451 = vmatprep.subr.bf16.mxu0 %v533_v16  ;;  %508 = vmatprep.subr.bf16.mxu1 %v533_v16 }
  0x1f   :  { %452 = vmatpush3.bf16.msra.mxu0 %v534_v17  ;;  %516 = vmatpush3.bf16.msra.mxu1 %v534_v17 }
  0x22   :  { %296 = vmatmul.mubr.bf16.vlgmr.msra.gmra.mxu0 %v535_v18  ;;  %328 = vmatmul.mubr.bf16.vlgmr.msra.gmra.mxu1 %v538_v19 }
  0x23   :  { %430 = vmatprep.mubr.msk.bf16.mxu0 %vm234_vm1, %v541_v20  ;;  %434 = vmatprep.mubr.msk.bf16.mxu1 %vm234_vm1, %v543_v21 }
  0x2a   :  { %304 = vmatmul.mubr.bf16.gmra.mxu0 %v545_v22  ;;  %336 = vmatmul.mubr.bf16.gmra.mxu1 %v546_v23 }
  0x2b   :  { %431 = vmatprep.mubr.msk.bf16.mxu0 %vm234_vm1, %v547_v24  ;;  %435 = vmatprep.mubr.msk.bf16.mxu1 %vm234_vm1, %v549_v25 }
  0x32   :  { %312 = vmatmul.mubr.bf16.gmra.mxu0 %v551_v26  ;;  %344 = vmatmul.mubr.bf16.gmra.mxu1 %v552_v27 }
  0x33   :  { %432 = vmatprep.mubr.msk.bf16.mxu0 %vm234_vm1, %v553_v28  ;;  %436 = vmatprep.mubr.msk.bf16.mxu1 %vm234_vm1, %v555_v29 }
  0x3a   :  { %320 = vmatmul.mubr.bf16.gmra.mxu0 %v557_v30  ;;  %352 = vmatmul.mubr.bf16.gmra.mxu1 %v558_v31 }
  0xe2   :  { %v453_v32 = vpop.f32.mrf.mxu0  ;;  %v477_v33 = vpop.f32.mrf.mxu1 }
  0xe4   :  { %v454_v35 = vpop.f32.mrf.mxu0  ;;  %v478_v36 = vpop.f32.mrf.mxu1 }
  0xe5   :  { %v455_v37 = vadd.f32 %v454_v35, %v453_v32  ;;  %v479_v38 = vadd.f32 %v478_v36, %v477_v33 }
  0xe6   :  { %v456_v39 = vpop.f32.mrf.mxu0  ;;  %v480_v40 = vpop.f32.mrf.mxu1 }
  0xe7   :  { %v298_v41 = vadd.f32 %v455_v37, %v686_v34  ;;  %v330_v42 = vadd.f32 %v479_v38, %v686_v34 }
  0xe8   :  { %v457_v43 = vpop.f32.mrf.mxu0  ;;  %v481_v44 = vpop.f32.mrf.mxu1 }
  0xe9   :  { %v360_v45 = vmax.f32 %v298_v41, 0.0  ;;  %v368_v46 = vmax.f32 %v330_v42, 0.0  ;;  %v458_v47 = vadd.f32 %v457_v43, %v456_v39  ;;  %v482_v48 = vadd.f32 %v481_v44, %v480_v40 }
  0xea   :  { %v459_v49 = vpop.f32.mrf.mxu0  ;;  %v483_v50 = vpop.f32.mrf.mxu1 }
  0xeb   :  { %376 = vst [vmem:[%s755_s3] sm:$0xff] %v360_v45  ;;  %384 = vst [vmem:[%s755_s3 + $0x40] sm:$0xff] %v368_v46  ;;  %v301_v51 = vadd.f32 %v458_v47, %v686_v34  ;;  %v333_v52 = vadd.f32 %v482_v48, %v686_v34 }
  0xec   :  { %v460_v53 = vpop.f32.mrf.mxu0  ;;  %v484_v54 = vpop.f32.mrf.mxu1 }
  0xed   :  { %v361_v55 = vmax.f32 %v301_v51, 0.0  ;;  %v369_v56 = vmax.f32 %v333_v52, 0.0  ;;  %v461_v57 = vadd.f32 %v460_v53, %v459_v49  ;;  %v485_v58 = vadd.f32 %v484_v54, %v483_v50 }
  0xee   :  { %v462_v59 = vpop.f32.mrf.mxu0  ;;  %v486_v60 = vpop.f32.mrf.mxu1 }
  0xef   :  { %377 = vst [vmem:[%s755_s3 + $0x8] sm:$0xff] %v361_v55  ;;  %385 = vst [vmem:[%s755_s3 + $0x48] sm:$0xff] %v369_v56  ;;  %v306_v61 = vadd.f32 %v461_v57, %v686_v34  ;;  %v338_v62 = vadd.f32 %v485_v58, %v686_v34 }
  0xf0   :  { %v463_v63 = vpop.f32.mrf.mxu0  ;;  %v487_v0 = vpop.f32.mrf.mxu1 }
  0xf1   :  { %v362_v1 = vmax.f32 %v306_v61, 0.0  ;;  %v370_v2 = vmax.f32 %v338_v62, 0.0  ;;  %v464_v3 = vadd.f32 %v463_v63, %v462_v59  ;;  %v488_v4 = vadd.f32 %v487_v0, %v486_v60 }
  0xf2   :  { %v465_v5 = vpop.f32.mrf.mxu0  ;;  %v489_v6 = vpop.f32.mrf.mxu1 }
  0xf3   :  { %378 = vst [vmem:[%s755_s3 + $0x10] sm:$0xff] %v362_v1  ;;  %386 = vst [vmem:[%s755_s3 + $0x50] sm:$0xff] %v370_v2  ;;  %v309_v7 = vadd.f32 %v464_v3, %v686_v34  ;;  %v341_v8 = vadd.f32 %v488_v4, %v686_v34 }
  0xf4   :  { %v466_v9 = vpop.f32.mrf.mxu0  ;;  %v490_v10 = vpop.f32.mrf.mxu1 }
  0xf5   :  { %v363_v11 = vmax.f32 %v309_v7, 0.0  ;;  %v371_v12 = vmax.f32 %v341_v8, 0.0  ;;  %v467_v13 = vadd.f32 %v466_v9, %v465_v5  ;;  %v491_v14 = vadd.f32 %v490_v10, %v489_v6 }
  0xf6   :  { %v468_v15 = vpop.f32.mrf.mxu0  ;;  %v492_v16 = vpop.f32.mrf.mxu1 }
  0xf7   :  { %379 = vst [vmem:[%s755_s3 + $0x18] sm:$0xff] %v363_v11  ;;  %387 = vst [vmem:[%s755_s3 + $0x58] sm:$0xff] %v371_v12  ;;  %v314_v17 = vadd.f32 %v467_v13, %v686_v34  ;;  %v346_v18 = vadd.f32 %v491_v14, %v686_v34 }
  0xf8   :  { %v469_v19 = vpop.f32.mrf.mxu0  ;;  %v493_v20 = vpop.f32.mrf.mxu1 }
  0xf9   :  { %v364_v21 = vmax.f32 %v314_v17, 0.0  ;;  %v372_v22 = vmax.f32 %v346_v18, 0.0  ;;  %v470_v23 = vadd.f32 %v469_v19, %v468_v15  ;;  %v494_v24 = vadd.f32 %v493_v20, %v492_v16 }
  0xfa   :  { %v471_v25 = vpop.f32.mrf.mxu0  ;;  %v495_v26 = vpop.f32.mrf.mxu1 }
  0xfb   :  { %380 = vst [vmem:[%s755_s3 + $0x20] sm:$0xff] %v364_v21  ;;  %388 = vst [vmem:[%s755_s3 + $0x60] sm:$0xff] %v372_v22  ;;  %v317_v27 = vadd.f32 %v470_v23, %v686_v34  ;;  %v349_v28 = vadd.f32 %v494_v24, %v686_v34 }
  0xfc   :  { %v472_v29 = vpop.f32.mrf.mxu0  ;;  %v496_v30 = vpop.f32.mrf.mxu1 }
  0xfd   :  { %v365_v31 = vmax.f32 %v317_v27, 0.0  ;;  %v373_v32 = vmax.f32 %v349_v28, 0.0  ;;  %v473_v33 = vadd.f32 %v472_v29, %v471_v25  ;;  %v497_v35 = vadd.f32 %v496_v30, %v495_v26 }
  0xfe   :  { %v474_v36 = vpop.f32.mrf.mxu0  ;;  %v498_v37 = vpop.f32.mrf.mxu1 }
  0xff   :  { %381 = vst [vmem:[%s755_s3 + $0x28] sm:$0xff] %v365_v31  ;;  %389 = vst [vmem:[%s755_s3 + $0x68] sm:$0xff] %v373_v32  ;;  %v322_v38 = vadd.f32 %v473_v33, %v686_v34  ;;  %v354_v39 = vadd.f32 %v497_v35, %v686_v34 }
 0x100   :  { %v475_v40 = vpop.f32.mrf.mxu0  ;;  %v499_v41 = vpop.f32.mrf.mxu1 }
 0x101   :  { %v366_v42 = vmax.f32 %v322_v38, 0.0  ;;  %v374_v43 = vmax.f32 %v354_v39, 0.0  ;;  %v476_v44 = vadd.f32 %v475_v40, %v474_v36  ;;  %v500_v45 = vadd.f32 %v499_v41, %v498_v37 }
 0x103   :  { %382 = vst [vmem:[%s755_s3 + $0x30] sm:$0xff] %v366_v42  ;;  %390 = vst [vmem:[%s755_s3 + $0x70] sm:$0xff] %v374_v43  ;;  %v325_v46 = vadd.f32 %v476_v44, %v686_v34  ;;  %v357_v47 = vadd.f32 %v500_v45, %v686_v34 }
 0x105   :  { %v367_v48 = vmax.f32 %v325_v46, 0.0  ;;  %v375_v49 = vmax.f32 %v357_v47, 0.0 }
 0x107   :  { %383 = vst [vmem:[%s755_s3 + $0x38] sm:$0xff] %v367_v48  ;;  %391 = vst [vmem:[%s755_s3 + $0x78] sm:$0xff] %v375_v49 }

// kernel: encoder_lstm_forward.14
= control target key start
LH: loop header
LB: loop body
LE: loop exit
PB: predicated region body
PF: predicated region fallthrough
CT: control target
= control target key end

     0   :  { %s1314_s12 = smov 0   ;;  %s1316_s13 = smov 0   ;;  %s1458_s0 = inlined_call_operand.vmem [shape: bf16[32,3200], index: 0, kind: input, shape index: {}]   ;;  %s1459_s1 = inlined_call_operand.vmem [shape: bf16[3200,64], index: 1, kind: input, shape index: {}]   ;;  %s1460_s2 = inlined_call_operand.vmem [shape: f32[1,64], index: 2, kind: input, shape index: {}]   ;;  %s1461_s3 = inlined_call_operand.vmem [shape: f32[32,64], index: 3, kind: output, shape index: {}]  }
   0x1   :  { %s1318_s14 = smov 0   ;;  %s1320_s15 = smov 0  }
   0x2   :  { %s1322_s16 = smov 0  }
   0x3 LB: > { %s25_s17 = sadd.s32 1, %s1287_s15  ;;  %p48_p1 = scmp.ne.s32.totalorder %s1279_s13, %s1275_s12  ;;  %s1291_s16 = sphi %s1322_s16, %s13_s16   ;;  %s1287_s15 = sphi %s1320_s15, %s1465_s15   ;;  %s1283_s14 = sphi %s1318_s14, %s1464_s14   ;;  %s1279_s13 = sphi %s1316_s13, %s1463_s13   ;;  %s1275_s12 = sphi %s1314_s12, %s1462_s12  }
   0x4   : > { %p26_p0 = scmp.ge.s32.totalorder %s25_s17, 5  ;;  %p49_p2 = scmp.eq.s32.totalorder %s1291_s16, 0 }
   0x5   : > { %s41_s19 = sadd.s32 1, %s1279_s13  ;;  %p1000_p5 = scmp.ge.s32.totalorder %s1291_s16, 5 }
   0x6   : > { %s1467_s17 = smov (%p26_p0, %s25_s17), 0  ;;  %p50_p3 = por %p49_p2, %p48_p1 }
   0x7   : > { %s37_s18 = ssub.s32 %s1287_s15, %s1467_s17  ;;  %162 = sbr.rel (%p1000_p5) target bundleno = 23 (0x17), region = 20 }
   0x8   : > { %p39_p4 = scmp.eq.s32.totalorder %s37_s18, 0 }
   0xa   : > { %s1349_s20 = scalar_select %p39_p4, %s1279_s13, %s41_s19  }
   0xc   : > { %165 = sbr.rel (!%p50_p3) target bundleno = 23 (0x17), region = 24  ;;  %s167_s21 = sand.u32 (%p50_p3), 1, %s1279_s13  }
   0xd   : > { %s1069_s22 = smul.u32 (%p50_p3), 20, %s1287_s15 }
   0xe   : > { %s1156_s23 = smul.u32 (%p50_p3), 80, %s167_s21 }
   0xf   : > { %s175_s26 = scalar_lea.vmem (%p50_p3), %s1458_s0, %s1069_s22 }
  0x10   : > { %v190_v0 = vld [vmem:[%s175_s26] sm:$0xff] (%p50_p3)  ;;  %v192_v1 = vld [vmem:[%s175_s26 + $0x8] sm:$0xff] (%p50_p3)  ;;  %s169_s27 = scalar_lea.vmem (%p50_p3), [#allocation3], %s1156_s23  ;;  %v200_v5 = vld [vmem:[%s175_s26 + $0xd0] sm:$0xff] (%p50_p3) }
  0x11   : > { %v194_v2 = vld [vmem:[%s175_s26 + $0x64] sm:$0xff]  ;;  %191 = vst [vmem:[%s169_s27] sm:$0xff] %v190_v0  ;;  %193 = vst [vmem:[%s169_s27 + $0x8] sm:$0xff] %v192_v1  ;;  %v196_v3 = vld [vmem:[%s175_s26 + $0x6c] sm:$0xff] }
  0x12   : > { %195 = vst [vmem:[%s169_s27 + $0x14] sm:$0xff] %v194_v2  ;;  %v198_v4 = vld [vmem:[%s175_s26 + $0xc8] sm:$0xff]  ;;  %197 = vst [vmem:[%s169_s27 + $0x1c] sm:$0xff] %v196_v3  ;;  %v204_v7 = vld [vmem:[%s175_s26 + $0x134] sm:$0xff] }
  0x13   : > { %199 = vst [vmem:[%s169_s27 + $0x28] sm:$0xff] %v198_v4  ;;  %201 = vst [vmem:[%s169_s27 + $0x30] sm:$0xff] %v200_v5  ;;  %v202_v6 = vld [vmem:[%s175_s26 + $0x12c] sm:$0xff]  ;;  %v1004_v9 = vld [vmem:[%s175_s26 + $0x74] sm:$0xf] }
  0x14   : > { %v1002_v8 = vld [vmem:[%s175_s26 + $0x10] sm:$0xf]  ;;  %203 = vst [vmem:[%s169_s27 + $0x3c] sm:$0xff] %v202_v6  ;;  %205 = vst [vmem:[%s169_s27 + $0x44] sm:$0xff] %v204_v7  ;;  %v1006_v10 = vld [vmem:[%s175_s26 + $0xd8] sm:$0xf] }
  0x15   : > { %1003 = vst [vmem:[%s169_s27 + $0x10] sm:$0xf] %v1002_v8  ;;  %v1008_v11 = vld [vmem:[%s175_s26 + $0x13c] sm:$0xf]  ;;  %1005 = vst [vmem:[%s169_s27 + $0x24] sm:$0xf] %v1004_v9 }
  0x16   : > { %1007 = vst [vmem:[%s169_s27 + $0x38] sm:$0xf] %v1006_v10  ;;  %1009 = vst [vmem:[%s169_s27 + $0x4c] sm:$0xf] %v1008_v11 }
  0x17 PF: > { %p1010_p6 = scmp.ge.s32.totalorder %s1291_s16, 1  ;;  %p238_p7 = scmp.lt.s32.totalorder %s1291_s16, 6 }
  0x19   : > { %p239_p8 = pnand %p1010_p6, %p238_p7 }
  0x1a   : > { %s245_s28 = sand.u32 (!%p239_p8), 1, %s1275_s12   ;;  %s284_s29 = smul.u32 (!%p239_p8), 80, %s1283_s14 }
  0x1b   : > { %242 = sbr.rel (%p239_p8) target bundleno = 320 (0x140), region = 54  ;;  %p1012_p10 = scmp.ne.s32.totalorder (!%p239_p8), %s1283_s14, 0 }
  0x1c   : > { %s1157_s30 = smul.u32 (!%p239_p8), 80, %s245_s28  ;;  %p285_p9 = scmp.lt.s32.totalorder (!%p239_p8), %s284_s29, 399 }
  0x1e   : > { %s1366_s8 = scalar_lea.vmem (!%p239_p8), [#allocation3], %s1157_s30 }
  0x20   : > { %s1469_s29 = smov (!%p285_p9, %s284_s29), 399  ;;  %309 = sbr.rel (%p1012_p10) target bundleno = 40 (0x28), region = 62 }
  0x21   : > { %s1011_s4 = sshll.u32 %s1469_s29, 2 }
  0x22   : > { %s1364_s7 = scalar_lea.vmem %s1459_s1, %s1011_s4 }
  0x25   : > { %vm310_vm0 = vcmask 523264   ;;  %v1293_v12 = vmov 0.0  }
  0x26   : > { %311 = vst.msk [vmem:[#allocation2] sm:$0xff] %vm310_vm0, %v1293_v12  ;;  %312 = vst.msk [vmem:[#allocation2 + $0x8] sm:$0xff] %vm310_vm0, %v1293_v12 }
  0x27   : > { %313 = vst.msk [vmem:[#allocation2 + $0x10] sm:$0xff] %vm310_vm0, %v1293_v12  ;;  %314 = vst.msk [vmem:[#allocation2 + $0x18] sm:$0xff] %vm310_vm0, %v1293_v12 }
  0x28 PF: > { %v1199_v13 = vld [vmem:[%s1364_s7 + $0x78] sm:$0xff]   ;;  %v1203_v17 = vld [vmem:[%s1364_s7 + $0x70] sm:$0xff]   ;;  %v1207_v21 = vld [vmem:[%s1364_s7 + $0x68] sm:$0xff]   ;;  %vm854_vm1 = vcmask 523264   ;;  %p1063_p11 = scmp.ne.s32.totalorder %s1283_s14, 4 }
  0x29   : > { %v1200_v14 = vld [vmem:[%s1364_s7 + $0xf8] sm:$0xff]   ;;  %1070 = vmatprep.subr.bf16.mxu0 %v1199_v13  ;;  %v1204_v18 = vld [vmem:[%s1364_s7 + $0xf0] sm:$0xff]   ;;  %v1208_v22 = vld [vmem:[%s1364_s7 + $0xe8] sm:$0xff]  }
  0x2a   : > { %v1201_v15 = vld [vmem:[%s1364_s7 + $0x38] sm:$0xff]   ;;  %1098 = vmatprep.subr.bf16.mxu1 %v1200_v14  ;;  %v1205_v19 = vld [vmem:[%s1364_s7 + $0x30] sm:$0xff]   ;;  %v1209_v23 = vld [vmem:[%s1364_s7 + $0x28] sm:$0xff]  }
  0x2b   : > { %v1202_v16 = vld [vmem:[%s1364_s7 + $0xb8] sm:$0xff]   ;;  %1071 = vmatpush3.bf16.msra.mxu0 %v1201_v15  ;;  %v1206_v20 = vld [vmem:[%s1364_s7 + $0xb0] sm:$0xff]   ;;  %v1210_v24 = vld [vmem:[%s1364_s7 + $0xa8] sm:$0xff]  }
  0x2c   : > { %1099 = vmatpush3.bf16.msra.mxu1 %v1202_v16  ;;  %1072 = vmatprep.subr.bf16.mxu0 %v1203_v17  ;;  %v1211_v25 = vld [vmem:[%s1364_s7 + $0x60] sm:$0xff]   ;;  %v1215_v29 = vld [vmem:[%s1364_s7 + $0x58] sm:$0xff]   ;;  %v1219_v33 = vld [vmem:[%s1364_s7 + $0x50] sm:$0xff]  }
  0x2d   : > { %1100 = vmatprep.subr.bf16.mxu1 %v1204_v18  ;;  %v1212_v26 = vld [vmem:[%s1364_s7 + $0xe0] sm:$0xff]   ;;  %v1216_v30 = vld [vmem:[%s1364_s7 + $0xd8] sm:$0xff]   ;;  %v1220_v34 = vld [vmem:[%s1364_s7 + $0xd0] sm:$0xff]  }
  0x2e   : > { %v1213_v27 = vld [vmem:[%s1364_s7 + $0x20] sm:$0xff]   ;;  %v1217_v31 = vld [vmem:[%s1364_s7 + $0x18] sm:$0xff]   ;;  %v1221_v35 = vld [vmem:[%s1364_s7 + $0x10] sm:$0xff]  }
  0x2f   : > { %1073 = vmatpush3.bf16.msra.mxu0 %v1205_v19  ;;  %v1214_v28 = vld [vmem:[%s1364_s7 + $0xa0] sm:$0xff]   ;;  %v1218_v32 = vld [vmem:[%s1364_s7 + $0x98] sm:$0xff]   ;;  %v1222_v36 = vld [vmem:[%s1364_s7 + $0x90] sm:$0xff]  }
  0x30   : > { %1101 = vmatpush3.bf16.msra.mxu1 %v1206_v20  ;;  %1074 = vmatprep.subr.bf16.mxu0 %v1207_v21  ;;  %v1223_v37 = vld [vmem:[%s1364_s7 + $0x48] sm:$0xff]   ;;  %v1227_v41 = vld [vmem:[%s1364_s7 + $0x40] sm:$0xff]   ;;  %v1237_v49 = vld [vmem:[%s1364_s7 + $0x138] sm:$0xff]  }
  0x31   : > { %1102 = vmatprep.subr.bf16.mxu1 %v1208_v22  ;;  %v1224_v38 = vld [vmem:[%s1364_s7 + $0xc8] sm:$0xff]   ;;  %v1228_v42 = vld [vmem:[%s1364_s7 + $0xc0] sm:$0xff]   ;;  %v1238_v50 = vld [vmem:[%s1364_s7 + $0x130] sm:$0xff]  }
  0x32   : > { %v1225_v39 = vld [vmem:[%s1364_s7 + $0x8] sm:$0xff]   ;;  %v1229_v43 = vld [vmem:[%s1364_s7] sm:$0xff]   ;;  %v1241_v58 = vld [vmem:[%s1364_s7 + $0x118] sm:$0xff]  }
  0x33   : > { %1075 = vmatpush3.bf16.msra.mxu0 %v1209_v23  ;;  %v1226_v40 = vld [vmem:[%s1364_s7 + $0x88] sm:$0xff]   ;;  %v1230_v44 = vld [vmem:[%s1364_s7 + $0x80] sm:$0xff]   ;;  %v1248_v59 = vld [vmem:[%s1364_s7 + $0x110] sm:$0xff]  }
  0x34   : > { %1103 = vmatpush3.bf16.msra.mxu1 %v1210_v24  ;;  %1076 = vmatprep.subr.bf16.mxu0 %v1211_v25  ;;  %v1231_v45 = vld [vmem:[%s1366_s8] ss:$20 sps:$4 sm:$0xff]   ;;  %v1233_v46 = vld [vmem:[%s1366_s8 + $0x4] ss:$20 sps:$4 sm:$0xff]   ;;  %v1234_v47 = vld [vmem:[%s1366_s8 + $0x8] ss:$20 sps:$4 sm:$0xff]  }
  0x35   : > { %1104 = vmatprep.subr.bf16.mxu1 %v1212_v26  ;;  %v1236_v48 = vld [vmem:[%s1366_s8 + $0xc] ss:$20 sps:$4 sm:$0xff]   ;;  %735 = vmatprep.mubr.bf16.mxu0 %v1233_v46  ;;  %v1244_v53 = vld [vmem:[%s1366_s8 + $0x34] ss:$20 sps:$4 sm:$0xff]   ;;  %v1247_v55 = vld [vmem:[%s1366_s8 + $0x30] ss:$20 sps:$4 sm:$0xff]  }
  0x36   : > { %784 = vmatprep.mubr.bf16.mxu1 %v1236_v48  ;;  %v1239_v51 = vld [vmem:[%s1364_s7 + $0x128] sm:$0xff]   ;;  %v1240_v56 = vld [vmem:[%s1364_s7 + $0x120] sm:$0xff]   ;;  %v317_v22 = vld [vmem:[#allocation2 + $0x10] sm:$0xff] }
  0x37   : > { %1077 = vmatpush3.bf16.msra.mxu0 %v1213_v27  ;;  %v1242_v52 = vld [vmem:[%s1366_s8 + $0x2c] ss:$20 sps:$4 sm:$0xff]   ;;  %v1246_v54 = vld [vmem:[%s1366_s8 + $0x28] ss:$20 sps:$4 sm:$0xff]   ;;  %v1251_v57 = vld [vmem:[%s1366_s8 + $0x10] ss:$20 sps:$4 sm:$0xff]  }
  0x38   : > { %1105 = vmatpush3.bf16.msra.mxu1 %v1214_v28  ;;  %1078 = vmatprep.subr.bf16.mxu0 %v1215_v29  ;;  %v1249_v60 = vld [vmem:[%s1364_s7 + $0x108] sm:$0xff]   ;;  %v1250_v61 = vld [vmem:[%s1364_s7 + $0x100] sm:$0xff]  }
  0x39   : > { %1106 = vmatprep.subr.bf16.mxu1 %v1216_v30  ;;  %v1252_v62 = vld [vmem:[%s1366_s8 + $0x38] ss:$20 sps:$4 sm:$0xff]   ;;  %v315_v28 = vld [vmem:[#allocation2] sm:$0xff] }
  0x3b   : > { %1079 = vmatpush3.bf16.msra.mxu0 %v1217_v31 }
  0x3c   : > { %1107 = vmatpush3.bf16.msra.mxu1 %v1218_v32  ;;  %1080 = vmatprep.subr.bf16.mxu0 %v1219_v33  ;;  %v318_v33 = vld [vmem:[#allocation2 + $0x18] sm:$0xff] }
  0x3d   : > { %1108 = vmatprep.subr.bf16.mxu1 %v1220_v34 }
  0x3f   : > { %1081 = vmatpush3.bf16.msra.mxu0 %v1221_v35 }
  0x40   : > { %1109 = vmatpush3.bf16.msra.mxu1 %v1222_v36  ;;  %1082 = vmatprep.subr.bf16.mxu0 %v1223_v37 }
  0x41   : > { %1110 = vmatprep.subr.bf16.mxu1 %v1224_v38  ;;  %v316_v38 = vld [vmem:[#allocation2 + $0x8] sm:$0xff] }
  0x43   : > { %1083 = vmatpush3.bf16.msra.mxu0 %v1225_v39 }
  0x44   : > { %1111 = vmatpush3.bf16.msra.mxu1 %v1226_v40  ;;  %1084 = vmatprep.subr.bf16.mxu0 %v1227_v41 }
  0x45   : > { %1112 = vmatprep.subr.bf16.mxu1 %v1228_v42 }
  0x47   : > { %1085 = vmatpush3.bf16.msra.mxu0 %v1229_v43 }
  0x48   : > { %1113 = vmatpush3.bf16.msra.mxu1 %v1230_v44  ;;  %1136 = vmatprep.subr.bf16.mxu0 %v1237_v49 }
  0x4a   : > { %736 = vmatmul.mubr.bf16.vlgmr.msra.gmra.mxu0 %v1231_v45 }
  0x4b   : > { %785 = vmatmul.mubr.bf16.vlgmr.msra.gmra.mxu1 %v1234_v47  ;;  %1137 = vmatpush3.bf16.msra.mxu0 %v1237_v49 }
  0x4c   : > { %1138 = vmatprep.subr.bf16.mxu0 %v1238_v50  ;;  %743 = vmatprep.mubr.bf16.mxu0 %v1242_v52 }
  0x4d   : > { %792 = vmatprep.mubr.bf16.mxu1 %v1244_v53 }
  0x4f   : > { %1139 = vmatpush3.bf16.msra.mxu0 %v1238_v50 }
  0x50   : > { %1140 = vmatprep.subr.bf16.mxu0 %v1239_v51 }
  0x52   : > { %744 = vmatmul.mubr.bf16.gmra.mxu0 %v1246_v54 }
  0x53   : > { %793 = vmatmul.mubr.bf16.gmra.mxu1 %v1247_v55  ;;  %1141 = vmatpush3.bf16.msra.mxu0 %v1239_v51 }
  0x54   : > { %1142 = vmatprep.subr.bf16.mxu0 %v1240_v56  ;;  %1152 = vmatprep.mubr.bf16.mxu0 %v1251_v57 }
  0x57   : > { %1143 = vmatpush3.bf16.msra.mxu0 %v1240_v56 }
  0x58   : > { %1144 = vmatprep.subr.bf16.mxu0 %v1241_v58 }
  0x5b   : > { %1145 = vmatpush3.bf16.msra.mxu0 %v1241_v58 }
  0x5c   : > { %1146 = vmatprep.subr.bf16.mxu0 %v1248_v59 }
  0x5f   : > { %1147 = vmatpush3.bf16.msra.mxu0 %v1248_v59 }
  0x60   : > { %1148 = vmatprep.subr.bf16.mxu0 %v1249_v60 }
  0x63   : > { %1149 = vmatpush3.bf16.msra.mxu0 %v1249_v60 }
  0x64   : > { %1150 = vmatprep.subr.bf16.mxu0 %v1250_v61 }
  0x67   : > { %1151 = vmatpush3.bf16.msra.mxu0 %v1250_v61 }
  0x6a   : > { %1153 = vmatmul.mubr.bf16.vlgmr.msra.gmra.mxu0 %v1252_v62 }
 0x10a   : > { %v1086_v63 = vpop.f32.mrf.mxu0 }
 0x10b   : > { %v1114_v0 = vpop.f32.mrf.mxu1 }
 0x10c   : > { %v1087_v1 = vpop.f32.mrf.mxu0 }
 0x10d   : > { %v1115_v2 = vpop.f32.mrf.mxu1  ;;  %v1088_v17 = vadd.f32 %v1087_v1, %v1086_v63 }
 0x10e   : > { %v1089_v3 = vpop.f32.mrf.mxu0  ;;  %v1116_v18 = vadd.f32 %v1115_v2, %v1114_v0 }
 0x10f   : > { %v1117_v4 = vpop.f32.mrf.mxu1 }
 0x110   : > { %v1090_v5 = vpop.f32.mrf.mxu0  ;;  %v787_v27 = vadd.f32 %v1116_v18, %v1088_v17 }
 0x111   : > { %v1118_v6 = vpop.f32.mrf.mxu1  ;;  %v1091_v24 = vadd.f32 %v1090_v5, %v1089_v3 }
 0x112   : > { %v1092_v7 = vpop.f32.mrf.mxu0  ;;  %v1119_v25 = vadd.f32 %v1118_v6, %v1117_v4 }
 0x113   : > { %v1120_v8 = vpop.f32.mrf.mxu1 }
 0x114   : > { %v1093_v9 = vpop.f32.mrf.mxu0  ;;  %v790_v37 = vadd.f32 %v1119_v25, %v1091_v24 }
 0x115   : > { %v1121_v10 = vpop.f32.mrf.mxu1  ;;  %v1094_v13 = vadd.f32 %v1093_v9, %v1092_v7 }
 0x116   : > { %v1095_v11 = vpop.f32.mrf.mxu0  ;;  %v1122_v14 = vadd.f32 %v1121_v10, %v1120_v8 }
 0x117   : > { %v1123_v12 = vpop.f32.mrf.mxu1 }
 0x118   : > { %v1096_v15 = vpop.f32.mrf.mxu0  ;;  %v795_v21 = vadd.f32 %v1122_v14, %v1094_v13 }
 0x119   : > { %v1124_v16 = vpop.f32.mrf.mxu1  ;;  %v1097_v19 = vadd.f32 %v1096_v15, %v1095_v11 }
 0x11a   : > { %v1125_v20 = vadd.f32 %v1124_v16, %v1123_v12 }
 0x11c   : > { %v798_v32 = vadd.f32 %v1125_v20, %v1097_v19 }
 0x12a   : > { %v1154_v23 = vpop.f32.mrf.mxu0 }
 0x12b   : > { %v844_v26 = vadd.f32 %v1154_v23, %v795_v21 }
 0x12c   : > { %v835_v29 = vpop.f32.mrf.mxu0 }
 0x12d   : > { %v852_v30 = vadd.f32 %v844_v26, %v317_v22  ;;  %v836_v31 = vadd.f32 %v835_v29, %v787_v27 }
 0x12e   : > { %v1155_v34 = vpop.f32.mrf.mxu0 }
 0x12f   : > { %857 = vst.msk [vmem:[#allocation2 + $0x10] sm:$0xff] %vm854_vm1, %v852_v30  ;;  %v850_v35 = vadd.f32 %v836_v31, %v315_v28  ;;  %v847_v36 = vadd.f32 %v1155_v34, %v798_v32 }
 0x130   : > { %v838_v39 = vpop.f32.mrf.mxu0 }
 0x131   : > { %855 = vst.msk [vmem:[#allocation2] sm:$0xff] %vm854_vm1, %v850_v35  ;;  %v853_v40 = vadd.f32 %v847_v36, %v318_v33  ;;  %v839_v41 = vadd.f32 %v838_v39, %v790_v37  ;;  %862 = sbr.rel (%p1063_p11) target bundleno = 320 (0x140), region = 66 }
 0x133   : > { %858 = vst.msk [vmem:[#allocation2 + $0x18] sm:$0xff] %vm854_vm1, %v853_v40  ;;  %v851_v42 = vadd.f32 %v839_v41, %v316_v38 }
 0x135   : > { %856 = vst.msk [vmem:[#allocation2 + $0x8] sm:$0xff] %vm854_vm1, %v851_v42 }
 0x136   : > { %v1064_v44 = vld [vmem:[%s1460_s2] ss:$0 sm:$0xff]  ;;  %v865_v48 = vld [vmem:[#allocation2 + $0x10] sm:$0xff] }
 0x137   : > { %v876_v50 = vadd.f32 %v1064_v44, %v865_v48 }
 0x138   : > { %v863_v43 = vld [vmem:[#allocation2] sm:$0xff] }
 0x139   : > { %v874_v46 = vadd.f32 %v1064_v44, %v863_v43  ;;  %880 = vst.msk [vmem:[%s1461_s3 + $0x10] sm:$0xff] %vm854_vm1, %v876_v50 }
 0x13a   : > { %v866_v49 = vld [vmem:[#allocation2 + $0x18] sm:$0xff] }
 0x13b   : > { %v877_v51 = vadd.f32 %v1064_v44, %v866_v49  ;;  %878 = vst.msk [vmem:[%s1461_s3] sm:$0xff] %vm854_vm1, %v874_v46 }
 0x13c   : > { %v864_v45 = vld [vmem:[#allocation2 + $0x8] sm:$0xff] }
 0x13d   : > { %v875_v47 = vadd.f32 %v1064_v44, %v864_v45  ;;  %881 = vst.msk [vmem:[%s1461_s3 + $0x18] sm:$0xff] %vm854_vm1, %v877_v51 }
 0x13f   : > { %879 = vst.msk [vmem:[%s1461_s3 + $0x8] sm:$0xff] %vm854_vm1, %v875_v47 }
 0x140 PF: > { %s13_s16 = sadd.s32 1, %s1291_s16   ;;  %s1462_s12 = smov %s1279_s13 }
 0x141   : > { %p10_p12 = scmp.ge.s32.totalorder %s13_s16, 7   ;;  %s1463_s13 = smov %s1349_s20 }
 0x142   : > { %s1464_s14 = smov %s1287_s15  ;;  %s1465_s15 = smov %s1467_s17 }
 0x143   :  { %12 = sbr.rel (!%p10_p12) target bundleno = 3 (0x3), region = 113 }

// kernel: encoder_lstm_forward.15
= control target key start
LH: loop header
LB: loop body
LE: loop exit
PB: predicated region body
PF: predicated region fallthrough
CT: control target
= control target key end

     0   :  { %v12_v0 = vlaneseq  ;;  %v70_v6 = vmov 0.0   ;;  %v71_v9 = vmov 1966171168   ;;  %s105_s0 = inlined_call_operand.vmem [shape: f32[8,256], index: 0, kind: input, shape index: {}]   ;;  %s106_s1 = inlined_call_operand.vmem [shape: f32[1,256], index: 1, kind: output, shape index: {}]  }
   0x1   :  { %v17_v1 = vld [vmem:[%s105_s0] sm:$0xff]  ;;  %v18_v2 = vld [vmem:[%s105_s0 + $0x8] sm:$0xff]  ;;  %v44_v10 = vunpack.c.l.s4 %v71_v9 }
   0x2   :  { %vm88_vm0 = vcmp.lt.s32.totalorder %v12_v0, 256  ;;  %v28_v4 = vrot.slane %v17_v1, 4  ;;  %v34_v5 = vrot.slane %v18_v2, 4  ;;  %v47_v16 = vshrl.u32 %v12_v0, 7 }
   0x3   :  { %16 = vst.msk [vmem:[%s106_s1] sm:$0x3] %vm88_vm0, %v70_v6  ;;  %v45_v15 = vunpack.c.0.s8 %v44_v10 }
   0x4   :  { %v29_v7 = vadd.f32 %v28_v4, %v17_v1  ;;  %v35_v8 = vadd.f32 %v34_v5, %v18_v2 }
   0x5   :  { %v48_v21 = vsub.s32 %v45_v15, %v47_v16 }
   0x6   :  { %v30_v11 = vrot.slane %v29_v7, 2  ;;  %v36_v12 = vrot.slane %v35_v8, 2 }
   0x8   :  { %v31_v13 = vadd.f32 %v30_v11, %v29_v7  ;;  %v37_v14 = vadd.f32 %v36_v12, %v35_v8 }
   0xa   :  { %v32_v17 = vrot.slane %v31_v13, 1  ;;  %v38_v18 = vrot.slane %v37_v14, 1  ;;  %v27_v24 = vld [vmem:[%s106_s1] sm:$0x3] }
   0xc   :  { %v33_v19 = vadd.f32 %v32_v17, %v31_v13  ;;  %v39_v20 = vadd.f32 %v38_v18, %v37_v14 }
   0xe   :  { %v42_v22 = vcombine.low %v33_v19, %v39_v20 }
  0x10   :  { %v49_v23 = vrot.slane %v42_v22, %v48_v21 }
  0x12   :  { %v56_v25 = vrot.slane %v49_v23, %v48_v21 }
  0x14   :  { %v58_v26 = vadd.f32 %v56_v25, %v27_v24 }
  0x16   :  { %63 = vst.msk [vmem:[%s106_s1] sm:$0x3] %vm88_vm0, %v58_v26 }

// kernel: tile.48
= control target key start
LH: loop header
LB: loop body
LE: loop exit
PB: predicated region body
PF: predicated region fallthrough
CT: control target
= control target key end

     0   :  { %s22_s0 = inlined_call_operand.vmem [shape: f32[64], index: 0, kind: input, shape index: {}]   ;;  %s23_s1 = inlined_call_operand.vmem [shape: f32[4,64], index: 1, kind: output, shape index: {}]  }
   0x1   :  { %v4_v0 = vld [vmem:[%s22_s0] ss:$0 sm:$0xff] }
   0x2   :  { %5 = vst [vmem:[%s23_s1] sm:$0xf] %v4_v0 }

// kernel: tile.49
= control target key start
LH: loop header
LB: loop body
LE: loop exit
PB: predicated region body
PF: predicated region fallthrough
CT: control target
= control target key end

     0   :  { %s7_s8 = smov 3  ;;  %vm9_vm0 = vcmask 523264   ;;  %s34_s9 = smov 64   ;;  %vm16_vm1 = vcmask 1048064   ;;  %s54_s0 = inlined_call_operand.vmem [shape: f32[4,64], index: 0, kind: input, shape index: {}]   ;;  %s55_s1 = inlined_call_operand.vmem [shape: f32[1,256], index: 1, kind: output, shape index: {}]  }
   0x1   :  { %v5_v0 = vld [vmem:[%s54_s0] sm:$0xf]  ;;  %s12_s0 = smov 3 }
   0x2   :  { %6 = vst [vmem:[#allocation1] sm:$0xf] %v5_v0 }
   0x9   :  { %v13_v1 = vld [vmem:[#allocation1 + $0x1] ss:$2 sm:%s12_s0]   ;;  %v8_v2 = vld [vmem:[#allocation1] ss:$2 sm:%s7_s8]  }
   0xa   :  { %14 = vrot.lane.b32.xlu0 %v13_v1, %s34_s9  ;;  %10 = vst.msk [vmem:[#allocation0] ss:$8 sm:$0x3] %vm9_vm0, %v8_v2  }
  0x7c   :  { %v15_v3 = vpop.permute.xlu0 %14  }
  0x7d   :  { %17 = vst.msk [vmem:[#allocation0] ss:$8 sm:$0x3] %vm16_vm1, %v15_v3  }
  0x84   :  { %v22_v4 = vld [vmem:[#allocation0] sm:$0x1]  ;;  %v27_v5 = vld [vmem:[#allocation0 + $0x8] sm:$0x1] }
  0x85   :  { %25 = vst [vmem:[%s55_s1] sm:$0x1] %v22_v4  ;;  %32 = vst [vmem:[%s55_s1 + $0x1] sm:$0x1] %v27_v5 }

// kernel: encoder_lstm_forward.17
= control target key start
LH: loop header
LB: loop body
LE: loop exit
PB: predicated region body
PF: predicated region fallthrough
CT: control target
= control target key end

     0   :  { %v18_v0 = vlaneseq  ;;  %s90_s1 = inlined_call_operand.vmem [shape: f32[1,256], index: 1, kind: input, shape index: {}]   ;;  %s91_s2 = inlined_call_operand.vmem [shape: f32[1,256], index: 2, kind: input, shape index: {}]   ;;  %s92_s0 = inlined_call_operand.vmem [shape: f32[8,256], index: 0, kind: input, shape index: {}]   ;;  %s93_s3 = inlined_call_operand.vmem [shape: f32[8,256], index: 3, kind: output, shape index: {}]  }
   0x1   :  { %v16_v2 = vld [vmem:[%s90_s1] sm:$0x3]  ;;  %v15_v7 = vld [vmem:[%s92_s0 + $0x8] sm:$0xff] }
   0x2   :  { %v19_v1 = vshrl.u32 %v18_v0, 7  ;;  %v30_v3 = vld [vmem:[%s91_s2] sm:$0x3] }
   0x3   :  { %v14_v6 = vld [vmem:[%s92_s0] sm:$0xff] }
   0x4   :  { %v20_v4 = vsub.s32 0, %v19_v1  ;;  %v24_v5 = vsub.s32 1, %v19_v1 }
   0x6   :  { %v21_v8 = vrot.slane %v16_v2, %v20_v4  ;;  %v35_v9 = vrot.slane %v30_v3, %v20_v4  ;;  %v25_v10 = vrot.slane %v16_v2, %v24_v5  ;;  %v39_v11 = vrot.slane %v30_v3, %v24_v5 }
   0x8   :  { %v28_v12 = vmul.f32 %v21_v8, %v14_v6  ;;  %v29_v13 = vmul.f32 %v25_v10, %v15_v7 }
   0xa   :  { %v42_v14 = vadd.f32 %v35_v9, %v28_v12  ;;  %v43_v15 = vadd.f32 %v39_v11, %v29_v13 }
   0xc   :  { %v44_v16 = vmax.f32 %v42_v14, 0.0  ;;  %v45_v17 = vmax.f32 %v43_v15, 0.0 }
   0xe   :  { %46 = vst [vmem:[%s93_s3] sm:$0xff] %v44_v16  ;;  %47 = vst [vmem:[%s93_s3 + $0x8] sm:$0xff] %v45_v17 }

// kernel: encoder_lstm_forward.16
= control target key start
LH: loop header
LB: loop body
LE: loop exit
PB: predicated region body
PF: predicated region fallthrough
CT: control target
= control target key end

     0   :  { %v15_v0 = vlaneseq  ;;  %v89_v3 = vmov 0.0   ;;  %v90_v19 = vmov 1966171168   ;;  %s132_s1 = inlined_call_operand.vmem [shape: f32[1,256], index: 1, kind: input, shape index: {}]   ;;  %s133_s2 = inlined_call_operand.vmem [shape: f32[1,256], index: 2, kind: output, shape index: {}]   ;;  %s134_s0 = inlined_call_operand.vmem [shape: f32[8,256], index: 0, kind: input, shape index: {}]  }
   0x1   :  { %v22_v4 = vld [vmem:[%s132_s1] sm:$0x3]  ;;  %v21_v8 = vld [vmem:[%s134_s0 + $0x8] sm:$0xff]  ;;  %v63_v20 = vunpack.c.l.s4 %v90_v19 }
   0x2   :  { %vm106_vm0 = vcmp.lt.s32.totalorder %v15_v0, 256  ;;  %v25_v2 = vshrl.u32 %v15_v0, 7  ;;  %v20_v7 = vld [vmem:[%s134_s0] sm:$0xff] }
   0x3   :  { %19 = vst.msk [vmem:[%s133_s2] sm:$0x3] %vm106_vm0, %v89_v3  ;;  %v64_v25 = vunpack.c.0.s8 %v63_v20 }
   0x4   :  { %v26_v5 = vsub.s32 0, %v25_v2  ;;  %v30_v6 = vsub.s32 1, %v25_v2 }
   0x5   :  { %v67_v30 = vsub.s32 %v64_v25, %v25_v2 }
   0x6   :  { %v27_v9 = vrot.slane %v22_v4, %v26_v5  ;;  %v31_v10 = vrot.slane %v22_v4, %v30_v6 }
   0x8   :  { %v34_v11 = vsub.f32 %v20_v7, %v27_v9  ;;  %v35_v12 = vsub.f32 %v21_v8, %v31_v10 }
   0xa   :  { %v45_v13 = vmul.f32 %v34_v11, %v34_v11  ;;  %v46_v14 = vmul.f32 %v35_v12, %v35_v12  ;;  %v44_v33 = vld [vmem:[%s133_s2] sm:$0x3] }
   0xc   :  { %v47_v15 = vrot.slane %v45_v13, 4  ;;  %v53_v16 = vrot.slane %v46_v14, 4 }
   0xe   :  { %v48_v17 = vadd.f32 %v47_v15, %v45_v13  ;;  %v54_v18 = vadd.f32 %v53_v16, %v46_v14 }
  0x10   :  { %v49_v21 = vrot.slane %v48_v17, 2  ;;  %v55_v22 = vrot.slane %v54_v18, 2 }
  0x12   :  { %v50_v23 = vadd.f32 %v49_v21, %v48_v17  ;;  %v56_v24 = vadd.f32 %v55_v22, %v54_v18 }
  0x14   :  { %v51_v26 = vrot.slane %v50_v23, 1  ;;  %v57_v27 = vrot.slane %v56_v24, 1 }
  0x16   :  { %v52_v28 = vadd.f32 %v51_v26, %v50_v23  ;;  %v58_v29 = vadd.f32 %v57_v27, %v56_v24 }
  0x18   :  { %v61_v31 = vcombine.low %v52_v28, %v58_v29 }
  0x1a   :  { %v68_v32 = vrot.slane %v61_v31, %v67_v30 }
  0x1c   :  { %v75_v34 = vrot.slane %v68_v32, %v67_v30 }
  0x1e   :  { %v77_v35 = vadd.f32 %v75_v34, %v44_v33 }
  0x20   :  { %82 = vst.msk [vmem:[%s133_s2] sm:$0x3] %vm106_vm0, %v77_v35 }

// kernel: custom-call.6
= control target key start
LH: loop header
LB: loop body
LE: loop exit
PB: predicated region body
PF: predicated region fallthrough
CT: control target
= control target key end

     0   :  { %s6_s0 = inlined_call_operand.vmem [shape: f32[4,8,32], index: 0, kind: output, shape index: {}]  }

// kernel: encoder_lstm_forward.18
= control target key start
LH: loop header
LB: loop body
LE: loop exit
PB: predicated region body
PF: predicated region fallthrough
CT: control target
= control target key end

     0   :  { %vm372_vm0 = vcmask 523264   ;;  %s880_s1 = inlined_call_operand.vmem [shape: bf16[576,128], index: 1, kind: input, shape index: {}]   ;;  %s881_s0 = inlined_call_operand.vmem [shape: bf16[32,576], index: 0, kind: input, shape index: {}]   ;;  %s882_s2 = inlined_call_operand.vmem [shape: f32[1,128], index: 2, kind: input, shape index: {}]   ;;  %s883_s3 = inlined_call_operand.vmem [shape: f32[32,128], index: 3, kind: output, shape index: {}]  }
   0x1   :  { %v657_v0 = vld [vmem:[%s880_s1 + $0x78] sm:$0xff]   ;;  %v661_v4 = vld [vmem:[%s880_s1 + $0x70] sm:$0xff]   ;;  %v665_v8 = vld [vmem:[%s880_s1 + $0x68] sm:$0xff]  }
   0x2   :  { %v658_v1 = vld [vmem:[%s880_s1 + $0xf8] sm:$0xff]   ;;  %583 = vmatprep.subr.bf16.mxu0 %v657_v0  ;;  %v662_v5 = vld [vmem:[%s880_s1 + $0xf0] sm:$0xff]   ;;  %v666_v9 = vld [vmem:[%s880_s1 + $0xe8] sm:$0xff]  }
   0x3   :  { %v659_v2 = vld [vmem:[%s880_s1 + $0x38] sm:$0xff]   ;;  %611 = vmatprep.subr.bf16.mxu1 %v658_v1  ;;  %v663_v6 = vld [vmem:[%s880_s1 + $0x30] sm:$0xff]   ;;  %v667_v10 = vld [vmem:[%s880_s1 + $0x28] sm:$0xff]  }
   0x4   :  { %v660_v3 = vld [vmem:[%s880_s1 + $0xb8] sm:$0xff]   ;;  %584 = vmatpush3.bf16.msra.mxu0 %v659_v2  ;;  %v664_v7 = vld [vmem:[%s880_s1 + $0xb0] sm:$0xff]   ;;  %v668_v11 = vld [vmem:[%s880_s1 + $0xa8] sm:$0xff]  }
   0x5   :  { %612 = vmatpush3.bf16.msra.mxu1 %v660_v3  ;;  %585 = vmatprep.subr.bf16.mxu0 %v661_v4  ;;  %v669_v12 = vld [vmem:[%s880_s1 + $0x60] sm:$0xff]   ;;  %v673_v16 = vld [vmem:[%s880_s1 + $0x58] sm:$0xff]   ;;  %v677_v20 = vld [vmem:[%s880_s1 + $0x50] sm:$0xff]  }
   0x6   :  { %613 = vmatprep.subr.bf16.mxu1 %v662_v5  ;;  %v670_v13 = vld [vmem:[%s880_s1 + $0xe0] sm:$0xff]   ;;  %v674_v17 = vld [vmem:[%s880_s1 + $0xd8] sm:$0xff]   ;;  %v678_v21 = vld [vmem:[%s880_s1 + $0xd0] sm:$0xff]  }
   0x7   :  { %v671_v14 = vld [vmem:[%s880_s1 + $0x20] sm:$0xff]   ;;  %v675_v18 = vld [vmem:[%s880_s1 + $0x18] sm:$0xff]   ;;  %v679_v22 = vld [vmem:[%s880_s1 + $0x10] sm:$0xff]  }
   0x8   :  { %586 = vmatpush3.bf16.msra.mxu0 %v663_v6  ;;  %v672_v15 = vld [vmem:[%s880_s1 + $0xa0] sm:$0xff]   ;;  %v676_v19 = vld [vmem:[%s880_s1 + $0x98] sm:$0xff]   ;;  %v680_v23 = vld [vmem:[%s880_s1 + $0x90] sm:$0xff]  }
   0x9   :  { %614 = vmatpush3.bf16.msra.mxu1 %v664_v7  ;;  %587 = vmatprep.subr.bf16.mxu0 %v665_v8  ;;  %v681_v24 = vld [vmem:[%s880_s1 + $0x48] sm:$0xff]   ;;  %v685_v28 = vld [vmem:[%s880_s1 + $0x40] sm:$0xff]   ;;  %v695_v36 = vld [vmem:[%s880_s1 + $0x118] sm:$0xff]  }
   0xa   :  { %615 = vmatprep.subr.bf16.mxu1 %v666_v9  ;;  %v682_v25 = vld [vmem:[%s880_s1 + $0xc8] sm:$0xff]   ;;  %v686_v29 = vld [vmem:[%s880_s1 + $0xc0] sm:$0xff]   ;;  %v696_v37 = vld [vmem:[%s880_s1 + $0x110] sm:$0xff]  }
   0xb   :  { %v683_v26 = vld [vmem:[%s880_s1 + $0x8] sm:$0xff]   ;;  %v687_v30 = vld [vmem:[%s880_s1] sm:$0xff]  }
   0xc   :  { %588 = vmatpush3.bf16.msra.mxu0 %v667_v10  ;;  %v684_v27 = vld [vmem:[%s880_s1 + $0x88] sm:$0xff]   ;;  %v688_v31 = vld [vmem:[%s880_s1 + $0x80] sm:$0xff]  }
   0xd   :  { %616 = vmatpush3.bf16.msra.mxu1 %v668_v11  ;;  %589 = vmatprep.subr.bf16.mxu0 %v669_v12  ;;  %v689_v32 = vld [vmem:[%s881_s0] ss:$20 sps:$4 sm:$0xff]   ;;  %v691_v33 = vld [vmem:[%s881_s0 + $0x4] ss:$20 sps:$4 sm:$0xff]   ;;  %v692_v34 = vld [vmem:[%s881_s0 + $0x8] ss:$20 sps:$4 sm:$0xff]  }
   0xe   :  { %617 = vmatprep.subr.bf16.mxu1 %v670_v13  ;;  %v694_v35 = vld [vmem:[%s881_s0 + $0xc] ss:$20 sps:$4 sm:$0xff]   ;;  %411 = vmatprep.mubr.bf16.mxu0 %v691_v33  ;;  %v699_v39 = vld [vmem:[%s881_s0 + $0x34] ss:$20 sps:$4 sm:$0xff]   ;;  %v702_v42 = vld [vmem:[%s881_s0 + $0x30] ss:$20 sps:$4 sm:$0xff]  }
   0xf   :  { %460 = vmatprep.mubr.bf16.mxu1 %v694_v35  ;;  %v697_v38 = vld [vmem:[%s881_s0 + $0x2c] ss:$20 sps:$4 sm:$0xff]   ;;  %v701_v40 = vld [vmem:[%s881_s0 + $0x28] ss:$20 sps:$4 sm:$0xff]   ;;  %v705_v43 = vld [vmem:[%s881_s0 + $0x10] ss:$20 sps:$4 sm:$0xff]  }
  0x10   :  { %590 = vmatpush3.bf16.msra.mxu0 %v671_v14  ;;  %v703_v41 = vld [vmem:[%s880_s1 + $0x108] sm:$0xff]   ;;  %v704_v44 = vld [vmem:[%s880_s1 + $0x100] sm:$0xff]  }
  0x11   :  { %618 = vmatpush3.bf16.msra.mxu1 %v672_v15  ;;  %591 = vmatprep.subr.bf16.mxu0 %v673_v16  ;;  %v706_v45 = vld [vmem:[%s881_s0 + $0x38] ss:$20 sps:$4 sm:$0xff]   ;;  %v534_v58 = vld [vmem:[%s882_s2] ss:$0 sm:$0xff] }
  0x12   :  { %619 = vmatprep.subr.bf16.mxu1 %v674_v17 }
  0x14   :  { %592 = vmatpush3.bf16.msra.mxu0 %v675_v18 }
  0x15   :  { %620 = vmatpush3.bf16.msra.mxu1 %v676_v19  ;;  %593 = vmatprep.subr.bf16.mxu0 %v677_v20 }
  0x16   :  { %621 = vmatprep.subr.bf16.mxu1 %v678_v21 }
  0x18   :  { %594 = vmatpush3.bf16.msra.mxu0 %v679_v22 }
  0x19   :  { %622 = vmatpush3.bf16.msra.mxu1 %v680_v23  ;;  %595 = vmatprep.subr.bf16.mxu0 %v681_v24 }
  0x1a   :  { %623 = vmatprep.subr.bf16.mxu1 %v682_v25 }
  0x1c   :  { %596 = vmatpush3.bf16.msra.mxu0 %v683_v26 }
  0x1d   :  { %624 = vmatpush3.bf16.msra.mxu1 %v684_v27  ;;  %597 = vmatprep.subr.bf16.mxu0 %v685_v28 }
  0x1e   :  { %625 = vmatprep.subr.bf16.mxu1 %v686_v29 }
  0x20   :  { %598 = vmatpush3.bf16.msra.mxu0 %v687_v30 }
  0x21   :  { %626 = vmatpush3.bf16.msra.mxu1 %v688_v31  ;;  %645 = vmatprep.subr.bf16.mxu0 %v695_v36 }
  0x23   :  { %412 = vmatmul.mubr.bf16.vlgmr.msra.gmra.mxu0 %v689_v32 }
  0x24   :  { %461 = vmatmul.mubr.bf16.vlgmr.msra.gmra.mxu1 %v692_v34  ;;  %646 = vmatpush3.bf16.msra.mxu0 %v695_v36 }
  0x25   :  { %647 = vmatprep.subr.bf16.mxu0 %v696_v37  ;;  %419 = vmatprep.mubr.bf16.mxu0 %v697_v38 }
  0x26   :  { %468 = vmatprep.mubr.bf16.mxu1 %v699_v39 }
  0x28   :  { %648 = vmatpush3.bf16.msra.mxu0 %v696_v37 }
  0x29   :  { %649 = vmatprep.subr.bf16.mxu0 %v703_v41 }
  0x2b   :  { %420 = vmatmul.mubr.bf16.gmra.mxu0 %v701_v40 }
  0x2c   :  { %469 = vmatmul.mubr.bf16.gmra.mxu1 %v702_v42  ;;  %653 = vmatprep.mubr.msk.bf16.mxu0 %vm372_vm0, %v705_v43 }
  0x2d   :  { %650 = vmatpush3.bf16.msra.mxu0 %v703_v41 }
  0x2e   :  { %651 = vmatprep.subr.bf16.mxu0 %v704_v44 }
  0x31   :  { %652 = vmatpush3.bf16.msra.mxu0 %v704_v44 }
  0x34   :  { %654 = vmatmul.mubr.msk.bf16.vlgmr.msra.gmra.mxu0 %vm372_vm0, %v706_v45 }
  0xe3   :  { %v599_v46 = vpop.f32.mrf.mxu0 }
  0xe4   :  { %v627_v47 = vpop.f32.mrf.mxu1 }
  0xe5   :  { %v600_v48 = vpop.f32.mrf.mxu0 }
  0xe6   :  { %v628_v49 = vpop.f32.mrf.mxu1  ;;  %v601_v56 = vadd.f32 %v600_v48, %v599_v46 }
  0xe7   :  { %v602_v50 = vpop.f32.mrf.mxu0  ;;  %v629_v2 = vadd.f32 %v628_v49, %v627_v47 }
  0xe8   :  { %v630_v51 = vpop.f32.mrf.mxu1  ;;  %v414_v1 = vadd.f32 %v601_v56, %v534_v58 }
  0xe9   :  { %v603_v52 = vpop.f32.mrf.mxu0 }
  0xea   :  { %v631_v53 = vpop.f32.mrf.mxu1  ;;  %v604_v3 = vadd.f32 %v603_v52, %v602_v50  ;;  %v463_v13 = vadd.f32 %v629_v2, %v414_v1 }
  0xeb   :  { %v605_v54 = vpop.f32.mrf.mxu0  ;;  %v632_v16 = vadd.f32 %v631_v53, %v630_v51 }
  0xec   :  { %v633_v55 = vpop.f32.mrf.mxu1  ;;  %v417_v11 = vadd.f32 %v604_v3, %v534_v58 }
  0xed   :  { %v606_v57 = vpop.f32.mrf.mxu0 }
  0xee   :  { %v607_v59 = vadd.f32 %v606_v57, %v605_v54  ;;  %v634_v60 = vpop.f32.mrf.mxu1  ;;  %v466_v20 = vadd.f32 %v632_v16, %v417_v11 }
  0xef   :  { %v635_v61 = vadd.f32 %v634_v60, %v633_v55  ;;  %v608_v62 = vpop.f32.mrf.mxu0 }
  0xf0   :  { %v422_v63 = vadd.f32 %v607_v59, %v534_v58  ;;  %v636_v0 = vpop.f32.mrf.mxu1 }
  0xf1   :  { %v609_v4 = vpop.f32.mrf.mxu0 }
  0xf2   :  { %v610_v5 = vadd.f32 %v609_v4, %v608_v62  ;;  %v637_v6 = vpop.f32.mrf.mxu1  ;;  %v471_v7 = vadd.f32 %v635_v61, %v422_v63 }
  0xf3   :  { %v638_v9 = vadd.f32 %v637_v6, %v636_v0 }
  0xf4   :  { %v425_v8 = vadd.f32 %v610_v5, %v534_v58  ;;  %v655_v10 = vpop.f32.mrf.mxu0 }
  0xf5   :  { %v520_v12 = vadd.f32 %v655_v10, %v471_v7 }
  0xf6   :  { %v511_v14 = vpop.f32.mrf.mxu0  ;;  %v474_v15 = vadd.f32 %v638_v9, %v425_v8 }
  0xf7   :  { %528 = vst [vmem:[%s883_s3 + $0x10] sm:$0xff] %v520_v12  ;;  %v512_v17 = vadd.f32 %v511_v14, %v463_v13 }
  0xf8   :  { %v656_v18 = vpop.f32.mrf.mxu0 }
  0xf9   :  { %526 = vst [vmem:[%s883_s3] sm:$0xff] %v512_v17  ;;  %v523_v19 = vadd.f32 %v656_v18, %v474_v15 }
  0xfa   :  { %v514_v21 = vpop.f32.mrf.mxu0 }
  0xfb   :  { %529 = vst [vmem:[%s883_s3 + $0x18] sm:$0xff] %v523_v19  ;;  %v515_v22 = vadd.f32 %v514_v21, %v466_v20 }
  0xfd   :  { %527 = vst [vmem:[%s883_s3 + $0x8] sm:$0xff] %v515_v22 }

// kernel: tile.63
= control target key start
LH: loop header
LB: loop body
LE: loop exit
PB: predicated region body
PF: predicated region fallthrough
CT: control target
= control target key end

     0   :  { %s22_s0 = inlined_call_operand.vmem [shape: f32[32], index: 0, kind: input, shape index: {}]   ;;  %s23_s1 = inlined_call_operand.vmem [shape: f32[4,32], index: 1, kind: output, shape index: {}]  }
   0x1   :  { %v4_v0 = vld [vmem:[%s22_s0] ss:$0 sm:$0xff] }
   0x2   :  { %5 = vst [vmem:[%s23_s1] sm:$0xf] %v4_v0 }

// kernel: tile.64
= control target key start
LH: loop header
LB: loop body
LE: loop exit
PB: predicated region body
PF: predicated region fallthrough
CT: control target
= control target key end

     0   :  { %vm8_vm0 = vcmask 261120   ;;  %s40_s8 = smov 32   ;;  %s41_s9 = smov 64   ;;  %vm14_vm1 = vcmask 1048320   ;;  %vm20_vm2 = vcmask 785920   ;;  %vm26_vm3 = vcmask 523520   ;;  %s58_s0 = inlined_call_operand.vmem [shape: f32[4,32], index: 0, kind: input, shape index: {}]   ;;  %s59_s1 = inlined_call_operand.vmem [shape: f32[1,128], index: 1, kind: output, shape index: {}]  }
   0x1   :  { %v5_v0 = vld [vmem:[%s58_s0] sm:$0xf]  ;;  %s39_s0 = smov 96  }
   0x2   :  { %6 = vst [vmem:[#allocation1] sm:$0xf] %v5_v0 }
   0x9   :  { %v11_v1 = vld [vmem:[#allocation1 + $0x3] sm:$0x1]   ;;  %v23_v2 = vld [vmem:[#allocation1 + $0x1] sm:$0x1]   ;;  %v7_v3 = vld [vmem:[#allocation1] sm:$0x1]  }
   0xa   :  { %12 = vrot.lane.b32.xlu0 %v11_v1, %s39_s0  ;;  %24 = vrot.lane.b32.xlu1 %v23_v2, %s40_s8  ;;  %v17_v4 = vld [vmem:[#allocation1 + $0x2] sm:$0x1]   ;;  %9 = vst.msk [vmem:[#allocation0] sm:$0x1] %vm8_vm0, %v7_v3  }
   0xe   :  { %18 = vrot.lane.b32.xlu0 %v17_v4, %s41_s9 }
  0x7c   :  { %v13_v5 = vpop.permute.xlu0 %12   ;;  %v25_v6 = vpop.permute.xlu1 %24  }
  0x7d   :  { %15 = vst.msk [vmem:[#allocation0] sm:$0x1] %vm14_vm1, %v13_v5  }
  0x80   :  { %v19_v7 = vpop.permute.xlu0 %18  }
  0x81   :  { %21 = vst.msk [vmem:[#allocation0] sm:$0x1] %vm20_vm2, %v19_v7  }
  0x82   :  { %27 = vst.msk [vmem:[#allocation0] sm:$0x1] %vm26_vm3, %v25_v6  }
  0x89   :  { %v32_v8 = vld [vmem:[#allocation0] sm:$0x1] }
  0x8a   :  { %35 = vst [vmem:[%s59_s1] sm:$0x1] %v32_v8 }

// kernel: encoder_lstm_forward.19
= control target key start
LH: loop header
LB: loop body
LE: loop exit
PB: predicated region body
PF: predicated region fallthrough
CT: control target
= control target key end

     0   :  { %v35_v0 = vmov 0.0   ;;  %s58_s1 = inlined_call_operand.vmem [shape: f32[1,128], index: 1, kind: output, shape index: {}]   ;;  %s59_s0 = inlined_call_operand.vmem [shape: f32[8,128], index: 0, kind: input, shape index: {}]  }
   0x1   :  { %12 = vst [vmem:[%s58_s1] sm:$0x1] %v35_v0  ;;  %v13_v1 = vld [vmem:[%s59_s0] sm:$0xff] }
   0x2   :  { %v22_v2 = vrot.slane %v13_v1, 4 }
   0x4   :  { %v23_v3 = vadd.f32 %v22_v2, %v13_v1 }
   0x6   :  { %v24_v4 = vrot.slane %v23_v3, 2 }
   0x8   :  { %v25_v5 = vadd.f32 %v24_v4, %v23_v3  ;;  %v21_v7 = vld [vmem:[%s58_s1] sm:$0x1] }
   0xa   :  { %v26_v6 = vrot.slane %v25_v5, 1 }
   0xc   :  { %v27_v8 = vadd.f32 %v26_v6, %v25_v5 }
   0xe   :  { %v28_v9 = vadd.f32 %v27_v8, %v21_v7 }
  0x10   :  { %29 = vst [vmem:[%s58_s1] sm:$0x1] %v28_v9 }

// kernel: closed_call.24
= control target key start
LH: loop header
LB: loop body
LE: loop exit
PB: predicated region body
PF: predicated region fallthrough
CT: control target
= control target key end

     0   :  { %v398_v1 = vmov 0.0   ;;  %vm399_vm0 = vmmov 0   ;;  %vm177_vm1 = vcmask 261120   ;;  %s402_s12 = smov 64   ;;  %s508_s1 = inlined_call_operand.vmem [shape: bf16[288,128], index: 1, kind: input, shape index: {}]   ;;  %s509_s0 = inlined_call_operand.vmem [shape: bf16[8,288], index: 0, kind: input, shape index: {}]   ;;  %s510_s2 = inlined_call_operand.vmem [shape: f32[8,128], index: 2, kind: input, shape index: {}]   ;;  %s511_s3 = inlined_call_operand.vmem [shape: f32[8,32], index: 3, kind: input, shape index: {}]   ;;  %s512_s5 = inlined_call_operand.vmem [shape: f32[8,32], index: 5, kind: output, shape index: {1}]   ;;  %s513_s4 = inlined_call_operand.vmem [shape: f32[8,32], index: 4, kind: output, shape index: {0}]  }
   0x1   :  { %v369_v0 = vld [vmem:[%s508_s1 + $0x78] sm:$0xff]   ;;  %356 = vmatprep.subr.bf16.mxu1 %v398_v1  ;;  %360 = vmatprep.mubr.msk.bf16.mxu1 %vm399_vm0, %v398_v1  ;;  %v371_v3 = vld [vmem:[%s508_s1 + $0x70] sm:$0xff]   ;;  %v373_v5 = vld [vmem:[%s508_s1 + $0x68] sm:$0xff]  }
   0x2   :  { %v370_v2 = vld [vmem:[%s508_s1 + $0x38] sm:$0xff]   ;;  %331 = vmatprep.subr.bf16.mxu0 %v369_v0  ;;  %v372_v4 = vld [vmem:[%s508_s1 + $0x30] sm:$0xff]   ;;  %v374_v6 = vld [vmem:[%s508_s1 + $0x28] sm:$0xff]  }
   0x3   :  { %332 = vmatpush3.bf16.msra.mxu0 %v370_v2  ;;  %v375_v7 = vld [vmem:[%s508_s1 + $0x60] sm:$0xff]   ;;  %v377_v9 = vld [vmem:[%s508_s1 + $0x58] sm:$0xff]   ;;  %v383_v10 = vld [vmem:[%s508_s1 + $0x88] sm:$0xff]  }
   0x4   :  { %333 = vmatprep.subr.bf16.mxu0 %v371_v3  ;;  %v376_v8 = vld [vmem:[%s508_s1 + $0x20] sm:$0xff]   ;;  %v378_v11 = vld [vmem:[%s508_s1 + $0x18] sm:$0xff]   ;;  %v379_v12 = vld [vmem:[%s508_s1 + $0x50] sm:$0xff]   ;;  %357 = vmatpush3.bf16.msra.mxu1 %v383_v10 }
   0x5   :  { %358 = vmatprep.subr.bf16.mxu1 %v398_v1  ;;  %v386_v13 = vld [vmem:[%s508_s1 + $0x80] sm:$0xff]   ;;  %v380_v15 = vld [vmem:[%s508_s1 + $0x10] sm:$0xff]   ;;  %v389_v17 = vld [vmem:[%s509_s0 + $0x8] ss:$0 sps:$4 sm:$0xff]  }
   0x6   :  { %v20_v14 = vld [vmem:[%s509_s0] sm:$0xff]  ;;  %v381_v18 = vld [vmem:[%s508_s1 + $0x48] sm:$0xff]  }
   0x7   :  { %334 = vmatpush3.bf16.msra.mxu0 %v372_v4  ;;  %v309_v16 = vcombine.high %v20_v14, %v20_v14  ;;  %v382_v19 = vld [vmem:[%s508_s1 + $0x8] sm:$0xff]   ;;  %v384_v20 = vld [vmem:[%s508_s1 + $0x40] sm:$0xff]   ;;  %v308_v22 = vcombine.low %v20_v14, %v20_v14 }
   0x8   :  { %335 = vmatprep.subr.bf16.mxu0 %v373_v5  ;;  %359 = vmatpush3.bf16.msra.mxu1 %v386_v13  ;;  %v385_v21 = vld [vmem:[%s508_s1] sm:$0xff]   ;;  %s400_s1 = smov 32  }
   0x9   :  { %213 = vmatprep.mubr.bf16.mxu0 %v309_v16  ;;  %v58_v28 = vld [vmem:[%s510_s2] sm:$0xff]  ;;  %s401_s2 = smov 96  }
   0xa   :  { %v268_v36 = vld [vmem:[%s511_s3] sm:$0xff] }
   0xb   :  { %336 = vmatpush3.bf16.msra.mxu0 %v374_v6  ;;  %361 = vmatmul.mubr.msk.bf16.vlgmr.msra.gmra.mxu1 %vm177_vm1, %v389_v17 }
   0xc   :  { %337 = vmatprep.subr.bf16.mxu0 %v375_v7 }
   0xf   :  { %338 = vmatpush3.bf16.msra.mxu0 %v376_v8 }
  0x10   :  { %339 = vmatprep.subr.bf16.mxu0 %v377_v9 }
  0x13   :  { %340 = vmatpush3.bf16.msra.mxu0 %v378_v11 }
  0x14   :  { %341 = vmatprep.subr.bf16.mxu0 %v379_v12 }
  0x17   :  { %342 = vmatpush3.bf16.msra.mxu0 %v380_v15 }
  0x18   :  { %343 = vmatprep.subr.bf16.mxu0 %v381_v18 }
  0x1b   :  { %344 = vmatpush3.bf16.msra.mxu0 %v382_v19 }
  0x1c   :  { %345 = vmatprep.subr.bf16.mxu0 %v384_v20 }
  0x1f   :  { %346 = vmatpush3.bf16.msra.mxu0 %v385_v21 }
  0x22   :  { %214 = vmatmul.mubr.bf16.vlgmr.msra.gmra.mxu0 %v308_v22 }
  0xcb   :  { %v255_v23 = vpop.f32.mrf.mxu1 }
  0xcd   :  { %v362_v24 = vpop.f32.mrf.mxu1 }
  0xcf   :  { %v258_v25 = vpop.f32.mrf.mxu1 }
  0xd1   :  { %v363_v26 = vpop.f32.mrf.mxu1 }
  0xe2   :  { %v347_v27 = vpop.f32.mrf.mxu0 }
  0xe4   :  { %v348_v29 = vpop.f32.mrf.mxu0 }
  0xe5   :  { %v349_v30 = vadd.f32 %v348_v29, %v347_v27 }
  0xe6   :  { %v350_v31 = vpop.f32.mrf.mxu0 }
  0xe7   :  { %v216_v32 = vadd.f32 %v349_v30, %v58_v28 }
  0xe8   :  { %v351_v33 = vpop.f32.mrf.mxu0 }
  0xe9   :  { %v256_v34 = vadd.f32 %v255_v23, %v216_v32 }
  0xeb   :  { %390 = vtanh.f32 %v256_v34  ;;  %v330_v37 = vmul.f32 -1.442695, %v256_v34 }
  0xed   :  { %392 = vpow2.f32 %v330_v37 }
  0xf8   :  { %v391_v35 = vpop.eup %390 }
  0xf9   :  { %275 = vrot.lane.b32.xlu0 %v391_v35, %s400_s1 }
  0xfa   :  { %v393_v38 = vpop.eup %392 }
  0xfb   :  { %v264_v39 = vadd.f32 1.0, %v393_v38 }
  0xfd   :  { %270 = vrot.lane.b32.xlu0 %v268_v36, %s400_s1  ;;  %394 = vrcp.f32 %v264_v39 }
 0x10a   :  { %v395_v40 = vpop.eup %394 }
 0x16b   :  { %v276_v41 = vpop.permute.xlu0 %275 }
 0x16c   :  { %v278_v42 = vmul.f32 %v395_v40, %v276_v41 }
 0x16e   :  { %280 = vrot.lane.b32.xlu1 %v278_v42, %s400_s1 }
 0x16f   :  { %v271_v43 = vpop.permute.xlu0 %270 }
 0x170   :  { %v273_v44 = vmul.f32 %v395_v40, %v271_v43 }
 0x1e0   :  { %v281_v45 = vpop.permute.xlu1 %280 }
 0x1e1   :  { %v283_v46 = vadd.f32 %v281_v45, %v273_v44 }
 0x1e3   :  { %396 = vtanh.f32 %v283_v46  ;;  %285 = vrot.lane.b32.xlu0 %v283_v46, %s401_s2 }
 0x1f0   :  { %v397_v47 = vpop.eup %396 }
 0x1f1   :  { %291 = vrot.lane.b32.xlu1 %v397_v47, %s400_s1 }
 0x255   :  { %v286_v48 = vpop.permute.xlu0 %285 }
 0x256   :  { %288 = vst.msk [vmem:[%s512_s5] sm:$0xff] %vm177_vm1, %v286_v48 }
 0x263   :  { %v292_v49 = vpop.permute.xlu1 %291 }
 0x264   :  { %v294_v50 = vmul.f32 %v395_v40, %v292_v49 }
 0x266   :  { %296 = vrot.lane.b32.xlu1 %v294_v50, %s402_s12 }
 0x2d8   :  { %v297_v51 = vpop.permute.xlu1 %296 }
 0x2d9   :  { %299 = vst.msk [vmem:[%s513_s4] sm:$0xff] %vm177_vm1, %v297_v51 }

// kernel: encoder_lstm_forward.20
= control target key start
LH: loop header
LB: loop body
LE: loop exit
PB: predicated region body
PF: predicated region fallthrough
CT: control target
= control target key end

     0   :  { %v48_v0 = vmov 0.0   ;;  %s79_s2 = inlined_call_operand.vmem [shape: f32[1,128], index: 2, kind: output, shape index: {}]   ;;  %s80_s0 = inlined_call_operand.vmem [shape: f32[8,128], index: 0, kind: input, shape index: {}]   ;;  %s81_s1 = inlined_call_operand.vmem [shape: f32[1,128], index: 1, kind: input, shape index: {}]  }
   0x1   :  { %15 = vst [vmem:[%s79_s2] sm:$0x1] %v48_v0  ;;  %v16_v1 = vld [vmem:[%s80_s0] sm:$0xff] }
   0x2   :  { %v46_v2 = vld [vmem:[%s81_s1] ss:$0 sm:$0xff] }
   0x3   :  { %v24_v3 = vsub.f32 %v16_v1, %v46_v2 }
   0x5   :  { %v33_v4 = vmul.f32 %v24_v3, %v24_v3 }
   0x7   :  { %v34_v5 = vrot.slane %v33_v4, 4 }
   0x8   :  { %v32_v10 = vld [vmem:[%s79_s2] sm:$0x1] }
   0x9   :  { %v35_v6 = vadd.f32 %v34_v5, %v33_v4 }
   0xb   :  { %v36_v7 = vrot.slane %v35_v6, 2 }
   0xd   :  { %v37_v8 = vadd.f32 %v36_v7, %v35_v6 }
   0xf   :  { %v38_v9 = vrot.slane %v37_v8, 1 }
  0x11   :  { %v39_v11 = vadd.f32 %v38_v9, %v37_v8 }
  0x13   :  { %v40_v12 = vadd.f32 %v39_v11, %v32_v10 }
  0x15   :  { %41 = vst [vmem:[%s79_s2] sm:$0x1] %v40_v12 }

// kernel: encoder_lstm_forward.21
= control target key start
LH: loop header
LB: loop body
LE: loop exit
PB: predicated region body
PF: predicated region fallthrough
CT: control target
= control target key end

     0   :  { %s70_s0 = inlined_call_operand.vmem [shape: f32[8,128], index: 0, kind: input, shape index: {}]   ;;  %s71_s1 = inlined_call_operand.vmem [shape: f32[1,128], index: 1, kind: input, shape index: {}]   ;;  %s72_s2 = inlined_call_operand.vmem [shape: f32[1,128], index: 2, kind: input, shape index: {}]   ;;  %s73_s3 = inlined_call_operand.vmem [shape: f32[8,128], index: 3, kind: output, shape index: {}]  }
   0x1   :  { %v14_v0 = vld [vmem:[%s70_s0] sm:$0xff] }
   0x2   :  { %v36_v1 = vld [vmem:[%s71_s1] ss:$0 sm:$0xff] }
   0x3   :  { %v37_v2 = vld [vmem:[%s72_s2] ss:$0 sm:$0xff]  ;;  %v22_v3 = vmul.f32 %v36_v1, %v14_v0 }
   0x5   :  { %v30_v4 = vadd.f32 %v37_v2, %v22_v3 }
   0x7   :  { %31 = vst [vmem:[%s73_s3] sm:$0xff] %v30_v4 }

// kernel: custom-call.7
= control target key start
LH: loop header
LB: loop body
LE: loop exit
PB: predicated region body
PF: predicated region fallthrough
CT: control target
= control target key end

     0   :  { %s6_s0 = inlined_call_operand.vmem [shape: f32[4,8,16], index: 0, kind: output, shape index: {}]  }

// kernel: encoder_lstm_forward.22
= control target key start
LH: loop header
LB: loop body
LE: loop exit
PB: predicated region body
PF: predicated region fallthrough
CT: control target
= control target key end

     0   :  { %vm204_vm0 = vcmask 261120   ;;  %vm309_vm1 = vcmask 523264   ;;  %s522_s1 = inlined_call_operand.vmem [shape: bf16[288,64], index: 1, kind: input, shape index: {}]   ;;  %s523_s0 = inlined_call_operand.vmem [shape: bf16[32,288], index: 0, kind: input, shape index: {}]   ;;  %s524_s2 = inlined_call_operand.vmem [shape: f32[1,64], index: 2, kind: input, shape index: {}]   ;;  %s525_s3 = inlined_call_operand.vmem [shape: f32[32,64], index: 3, kind: output, shape index: {}]  }
   0x1   :  { %v385_v0 = vld [vmem:[%s522_s1 + $0x78] sm:$0xff]   ;;  %v387_v2 = vld [vmem:[%s522_s1 + $0x70] sm:$0xff]   ;;  %v389_v4 = vld [vmem:[%s522_s1 + $0x68] sm:$0xff]  }
   0x2   :  { %v386_v1 = vld [vmem:[%s522_s1 + $0x38] sm:$0xff]   ;;  %345 = vmatprep.subr.bf16.mxu0 %v385_v0  ;;  %v388_v3 = vld [vmem:[%s522_s1 + $0x30] sm:$0xff]   ;;  %v390_v5 = vld [vmem:[%s522_s1 + $0x28] sm:$0xff]  }
   0x3   :  { %346 = vmatpush3.bf16.msra.mxu0 %v386_v1  ;;  %v391_v6 = vld [vmem:[%s522_s1 + $0x60] sm:$0xff]   ;;  %v393_v8 = vld [vmem:[%s522_s1 + $0x58] sm:$0xff]   ;;  %v400_v10 = vld [vmem:[%s522_s1 + $0x88] sm:$0xff]  }
   0x4   :  { %347 = vmatprep.subr.bf16.mxu0 %v387_v2  ;;  %v392_v7 = vld [vmem:[%s522_s1 + $0x20] sm:$0xff]   ;;  %v394_v9 = vld [vmem:[%s522_s1 + $0x18] sm:$0xff]   ;;  %v395_v11 = vld [vmem:[%s522_s1 + $0x50] sm:$0xff]   ;;  %377 = vmatprep.subr.bf16.mxu1 %v400_v10 }
   0x5   :  { %v396_v12 = vld [vmem:[%s522_s1 + $0x10] sm:$0xff]   ;;  %v397_v13 = vld [vmem:[%s522_s1 + $0x48] sm:$0xff]   ;;  %378 = vmatpush3.bf16.msra.mxu1 %v400_v10  ;;  %v405_v15 = vld [vmem:[%s522_s1 + $0x80] sm:$0xff]  }
   0x6   :  { %v404_v14 = vld [vmem:[%s523_s0 + $0x4] ss:$12 sps:$4 sm:$0xff]   ;;  %v406_v16 = vld [vmem:[%s523_s0 + $0x8] ss:$12 sps:$4 sm:$0xff]   ;;  %379 = vmatprep.subr.bf16.mxu1 %v405_v15  ;;  %v407_v17 = vld [vmem:[%s523_s0 + $0x20] ss:$12 sps:$4 sm:$0xff]  }
   0x7   :  { %348 = vmatpush3.bf16.msra.mxu0 %v388_v3  ;;  %243 = vmatprep.mubr.bf16.mxu0 %v404_v14  ;;  %v398_v18 = vld [vmem:[%s522_s1 + $0x8] sm:$0xff]   ;;  %v399_v19 = vld [vmem:[%s522_s1 + $0x40] sm:$0xff]  }
   0x8   :  { %349 = vmatprep.subr.bf16.mxu0 %v389_v4  ;;  %381 = vmatprep.mubr.msk.bf16.mxu1 %vm204_vm0, %v406_v16  ;;  %v401_v20 = vld [vmem:[%s522_s1] sm:$0xff]   ;;  %v408_v22 = vld [vmem:[%s523_s0 + $0x1c] ss:$12 sps:$4 sm:$0xff]  }
   0x9   :  { %380 = vmatpush3.bf16.msra.mxu1 %v405_v15  ;;  %v402_v21 = vld [vmem:[%s523_s0] ss:$12 sps:$4 sm:$0xff]   ;;  %v410_v23 = vld [vmem:[%s523_s0 + $0x18] ss:$12 sps:$4 sm:$0xff]  }
   0xa   :  { %v318_v28 = vld [vmem:[%s524_s2] ss:$0 sm:$0xff] }
   0xb   :  { %350 = vmatpush3.bf16.msra.mxu0 %v390_v5 }
   0xc   :  { %351 = vmatprep.subr.bf16.mxu0 %v391_v6  ;;  %382 = vmatmul.mubr.msk.bf16.vlgmr.msra.gmra.mxu1 %vm204_vm0, %v407_v17 }
   0xf   :  { %352 = vmatpush3.bf16.msra.mxu0 %v392_v7 }
  0x10   :  { %353 = vmatprep.subr.bf16.mxu0 %v393_v8 }
  0x13   :  { %354 = vmatpush3.bf16.msra.mxu0 %v394_v9 }
  0x14   :  { %355 = vmatprep.subr.bf16.mxu0 %v395_v11 }
  0x17   :  { %356 = vmatpush3.bf16.msra.mxu0 %v396_v12 }
  0x18   :  { %357 = vmatprep.subr.bf16.mxu0 %v397_v13 }
  0x1b   :  { %358 = vmatpush3.bf16.msra.mxu0 %v398_v18 }
  0x1c   :  { %359 = vmatprep.subr.bf16.mxu0 %v399_v19 }
  0x1f   :  { %360 = vmatpush3.bf16.msra.mxu0 %v401_v20 }
  0x22   :  { %244 = vmatmul.mubr.bf16.vlgmr.msra.gmra.mxu0 %v402_v21 }
  0x23   :  { %251 = vmatprep.mubr.bf16.mxu0 %v408_v22 }
  0x2a   :  { %252 = vmatmul.mubr.bf16.gmra.mxu0 %v410_v23 }
  0xcc   :  { %v383_v24 = vpop.f32.mrf.mxu1 }
  0xce   :  { %v294_v26 = vpop.f32.mrf.mxu1 }
  0xd0   :  { %v384_v31 = vpop.f32.mrf.mxu1 }
  0xd2   :  { %v297_v37 = vpop.f32.mrf.mxu1 }
  0xe2   :  { %v361_v25 = vpop.f32.mrf.mxu0 }
  0xe4   :  { %v362_v27 = vpop.f32.mrf.mxu0 }
  0xe5   :  { %v363_v29 = vadd.f32 %v362_v27, %v361_v25 }
  0xe6   :  { %v364_v30 = vpop.f32.mrf.mxu0 }
  0xe7   :  { %v246_v32 = vadd.f32 %v363_v29, %v318_v28 }
  0xe8   :  { %v365_v33 = vpop.f32.mrf.mxu0 }
  0xe9   :  { %v366_v34 = vadd.f32 %v365_v33, %v364_v30  ;;  %v295_v35 = vadd.f32 %v294_v26, %v246_v32 }
  0xea   :  { %v367_v36 = vpop.f32.mrf.mxu0 }
  0xeb   :  { %310 = vst.msk [vmem:[%s525_s3] sm:$0xff] %vm309_vm1, %v295_v35  ;;  %v249_v38 = vadd.f32 %v366_v34, %v318_v28 }
  0xec   :  { %v368_v39 = vpop.f32.mrf.mxu0 }
  0xed   :  { %v369_v40 = vadd.f32 %v368_v39, %v367_v36  ;;  %v298_v41 = vadd.f32 %v297_v37, %v249_v38 }
  0xee   :  { %v370_v42 = vpop.f32.mrf.mxu0 }
  0xef   :  { %v254_v43 = vadd.f32 %v369_v40, %v318_v28  ;;  %311 = vst.msk [vmem:[%s525_s3 + $0x8] sm:$0xff] %vm309_vm1, %v298_v41 }
  0xf0   :  { %v371_v44 = vpop.f32.mrf.mxu0 }
  0xf1   :  { %v303_v45 = vadd.f32 %v383_v24, %v254_v43  ;;  %v372_v46 = vadd.f32 %v371_v44, %v370_v42 }
  0xf3   :  { %312 = vst.msk [vmem:[%s525_s3 + $0x10] sm:$0xff] %vm309_vm1, %v303_v45  ;;  %v257_v47 = vadd.f32 %v372_v46, %v318_v28 }
  0xf5   :  { %v306_v48 = vadd.f32 %v384_v31, %v257_v47 }
  0xf7   :  { %313 = vst.msk [vmem:[%s525_s3 + $0x18] sm:$0xff] %vm309_vm1, %v306_v48 }

// kernel: tile.78
= control target key start
LH: loop header
LB: loop body
LE: loop exit
PB: predicated region body
PF: predicated region fallthrough
CT: control target
= control target key end

     0   :  { %s22_s0 = inlined_call_operand.vmem [shape: f32[16], index: 0, kind: input, shape index: {}]   ;;  %s23_s1 = inlined_call_operand.vmem [shape: f32[4,16], index: 1, kind: output, shape index: {}]  }
   0x1   :  { %v4_v0 = vld [vmem:[%s22_s0] ss:$0 sm:$0xff] }
   0x2   :  { %5 = vst [vmem:[%s23_s1] sm:$0xf] %v4_v0 }

// kernel: tile.79
= control target key start
LH: loop header
LB: loop body
LE: loop exit
PB: predicated region body
PF: predicated region fallthrough
CT: control target
= control target key end

     0   :  { %vm8_vm0 = vcmask 130048   ;;  %s40_s8 = smov 16   ;;  %s41_s9 = smov 32   ;;  %vm14_vm1 = vcmask 523648   ;;  %vm20_vm2 = vcmask 392448   ;;  %vm26_vm3 = vcmask 261248   ;;  %s58_s0 = inlined_call_operand.vmem [shape: f32[4,16], index: 0, kind: input, shape index: {}]   ;;  %s59_s1 = inlined_call_operand.vmem [shape: f32[1,64], index: 1, kind: output, shape index: {}]  }
   0x1   :  { %v5_v0 = vld [vmem:[%s58_s0] sm:$0xf]  ;;  %s39_s0 = smov 48  }
   0x2   :  { %6 = vst [vmem:[#allocation1] sm:$0xf] %v5_v0 }
   0x9   :  { %v11_v1 = vld [vmem:[#allocation1 + $0x3] sm:$0x1]   ;;  %v23_v2 = vld [vmem:[#allocation1 + $0x1] sm:$0x1]   ;;  %v7_v3 = vld [vmem:[#allocation1] sm:$0x1]  }
   0xa   :  { %12 = vrot.lane.b32.xlu0 %v11_v1, %s39_s0  ;;  %24 = vrot.lane.b32.xlu1 %v23_v2, %s40_s8  ;;  %v17_v4 = vld [vmem:[#allocation1 + $0x2] sm:$0x1]   ;;  %9 = vst.msk [vmem:[#allocation0] sm:$0x1] %vm8_vm0, %v7_v3  }
   0xe   :  { %18 = vrot.lane.b32.xlu0 %v17_v4, %s41_s9 }
  0x7c   :  { %v13_v5 = vpop.permute.xlu0 %12   ;;  %v25_v6 = vpop.permute.xlu1 %24  }
  0x7d   :  { %15 = vst.msk [vmem:[#allocation0] sm:$0x1] %vm14_vm1, %v13_v5  }
  0x80   :  { %v19_v7 = vpop.permute.xlu0 %18  }
  0x81   :  { %21 = vst.msk [vmem:[#allocation0] sm:$0x1] %vm20_vm2, %v19_v7  }
  0x82   :  { %27 = vst.msk [vmem:[#allocation0] sm:$0x1] %vm26_vm3, %v25_v6  }
  0x89   :  { %v32_v8 = vld [vmem:[#allocation0] sm:$0x1] }
  0x8a   :  { %35 = vst [vmem:[%s59_s1] sm:$0x1] %v32_v8 }

// kernel: encoder_lstm_forward.23
= control target key start
LH: loop header
LB: loop body
LE: loop exit
PB: predicated region body
PF: predicated region fallthrough
CT: control target
= control target key end

     0   :  { %vm12_vm0 = vcmask 516096   ;;  %vm23_vm1 = vcmask 523264   ;;  %v39_v0 = vmov 0.0   ;;  %s62_s0 = inlined_call_operand.vmem [shape: f32[8,64], index: 0, kind: input, shape index: {}]   ;;  %s63_s1 = inlined_call_operand.vmem [shape: f32[1,64], index: 1, kind: output, shape index: {}]  }
   0x1   :  { %13 = vst.msk [vmem:[%s63_s1] sm:$0x1] %vm12_vm0, %v39_v0  ;;  %v14_v1 = vld [vmem:[%s62_s0] sm:$0xff] }
   0x2   :  { %v24_v2 = vsel %vm23_vm1, %v14_v1, 0.0 }
   0x3   :  { %v25_v3 = vrot.slane %v24_v2, 4 }
   0x5   :  { %v26_v4 = vadd.f32 %v25_v3, %v24_v2 }
   0x7   :  { %v27_v5 = vrot.slane %v26_v4, 2 }
   0x8   :  { %v22_v8 = vld [vmem:[%s63_s1] sm:$0x1] }
   0x9   :  { %v28_v6 = vadd.f32 %v27_v5, %v26_v4 }
   0xb   :  { %v29_v7 = vrot.slane %v28_v6, 1 }
   0xd   :  { %v30_v9 = vadd.f32 %v29_v7, %v28_v6 }
   0xf   :  { %v31_v10 = vadd.f32 %v30_v9, %v22_v8 }
  0x11   :  { %33 = vst.msk [vmem:[%s63_s1] sm:$0x1] %vm12_vm0, %v31_v10 }

// kernel: encoder_lstm_forward.25
= control target key start
LH: loop header
LB: loop body
LE: loop exit
PB: predicated region body
PF: predicated region fallthrough
CT: control target
= control target key end

     0   :  { %vm31_vm0 = vcmask 523264   ;;  %s71_s0 = inlined_call_operand.vmem [shape: f32[8,64], index: 0, kind: input, shape index: {}]   ;;  %s72_s1 = inlined_call_operand.vmem [shape: f32[1,64], index: 1, kind: input, shape index: {}]   ;;  %s73_s2 = inlined_call_operand.vmem [shape: f32[1,64], index: 2, kind: input, shape index: {}]   ;;  %s74_s3 = inlined_call_operand.vmem [shape: f32[8,64], index: 3, kind: output, shape index: {}]  }
   0x1   :  { %v14_v0 = vld [vmem:[%s71_s0] sm:$0xff] }
   0x2   :  { %v37_v1 = vld [vmem:[%s72_s1] ss:$0 sm:$0xff] }
   0x3   :  { %v38_v2 = vld [vmem:[%s73_s2] ss:$0 sm:$0xff]  ;;  %v22_v3 = vmul.f32 %v37_v1, %v14_v0 }
   0x5   :  { %v30_v4 = vadd.f32 %v38_v2, %v22_v3 }
   0x7   :  { %32 = vst.msk [vmem:[%s74_s3] sm:$0xff] %vm31_vm0, %v30_v4 }

// kernel: closed_call.25
= control target key start
LH: loop header
LB: loop body
LE: loop exit
PB: predicated region body
PF: predicated region fallthrough
CT: control target
= control target key end

     0   :  { %v228_v0 = vmov 0   ;;  %vm100_vm0 = vcmask 130048   ;;  %s229_s14 = smov 80   ;;  %s232_s18 = smov 96   ;;  %s308_s1 = inlined_call_operand.vmem [shape: bf16[144,64], index: 1, kind: input, shape index: {}]   ;;  %s309_s0 = inlined_call_operand.vmem [shape: bf16[8,144], index: 0, kind: input, shape index: {}]   ;;  %s310_s2 = inlined_call_operand.vmem [shape: f32[8,64], index: 2, kind: input, shape index: {}]   ;;  %s311_s3 = inlined_call_operand.vmem [shape: f32[8,16], index: 3, kind: input, shape index: {}]   ;;  %s312_s5 = inlined_call_operand.vmem [shape: f32[8,16], index: 5, kind: output, shape index: {1}]   ;;  %s313_s4 = inlined_call_operand.vmem [shape: f32[8,16], index: 4, kind: output, shape index: {0}]  }
   0x1   :  { %104 = vmatprep.subr.bf16.mxu0 %v228_v0  ;;  %v209_v1 = vld [vmem:[%s308_s1 + $0x38] sm:$0xff]   ;;  %v210_v2 = vld [vmem:[%s308_s1 + $0x30] sm:$0xff]   ;;  %v211_v3 = vld [vmem:[%s308_s1 + $0x28] sm:$0xff]  }
   0x2   :  { %105 = vmatpush1.bf16.msra.mxu0 %v209_v1  ;;  %v20_v4 = vld [vmem:[%s309_s0] sm:$0xff]  ;;  %v213_v7 = vld [vmem:[%s308_s1 + $0x18] sm:$0xff]   ;;  %v214_v8 = vld [vmem:[%s308_s1 + $0x10] sm:$0xff]  }
   0x3   :  { %106 = vmatprep.subr.bf16.mxu0 %v228_v0  ;;  %v212_v5 = vld [vmem:[%s308_s1 + $0x20] sm:$0xff]   ;;  %v192_v6 = vcombine.high %v20_v4, %v20_v4  ;;  %v215_v9 = vld [vmem:[%s308_s1 + $0x8] sm:$0xff]   ;;  %v191_v12 = vcombine.low %v20_v4, %v20_v4 }
   0x4   :  { %v216_v10 = vld [vmem:[%s308_s1] sm:$0xff]  }
   0x5   :  { %202 = vmatprep.mubr.msk.bf16.mxu0 %vm100_vm0, %v192_v6  ;;  %v217_v11 = vld [vmem:[%s308_s1 + $0x40] sm:$0xff]   ;;  %s230_s1 = smov 16  }
   0x6   :  { %107 = vmatpush1.bf16.msra.mxu0 %v210_v2  ;;  %v39_v13 = vld [vmem:[%s310_s2] sm:$0xff]  ;;  %s231_s2 = smov 112  }
   0x7   :  { %108 = vmatprep.subr.bf16.mxu0 %v228_v0  ;;  %v151_v20 = vld [vmem:[%s311_s3] sm:$0xff] }
   0xa   :  { %109 = vmatpush1.bf16.msra.mxu0 %v211_v3 }
   0xb   :  { %110 = vmatprep.subr.bf16.mxu0 %v228_v0 }
   0xe   :  { %111 = vmatpush1.bf16.msra.mxu0 %v212_v5 }
   0xf   :  { %112 = vmatprep.subr.bf16.mxu0 %v228_v0 }
  0x12   :  { %113 = vmatpush1.bf16.msra.mxu0 %v213_v7 }
  0x13   :  { %114 = vmatprep.subr.bf16.mxu0 %v228_v0 }
  0x16   :  { %115 = vmatpush1.bf16.msra.mxu0 %v214_v8 }
  0x17   :  { %116 = vmatprep.subr.bf16.mxu0 %v228_v0 }
  0x1a   :  { %117 = vmatpush1.bf16.msra.mxu0 %v215_v9 }
  0x1b   :  { %118 = vmatprep.subr.bf16.mxu0 %v228_v0 }
  0x1e   :  { %119 = vmatpush1.bf16.msra.mxu0 %v216_v10 }
  0x1f   :  { %134 = vmatprep.subr.bf16.mxu0 %v228_v0 }
  0x22   :  { %135 = vmatpush2.bf16.msra.mxu0 %v217_v11 }
  0x25   :  { %137 = vmatmul.mubr.bf16.vlgmr.msra.gmra.mxu0 %v191_v12 }
  0xe5   :  { %v138_v14 = vpop.f32.mrf.mxu0 }
  0xe6   :  { %v139_v15 = vadd.f32 %v138_v14, %v39_v13 }
  0xe7   :  { %v140_v16 = vpop.f32.mrf.mxu0 }
  0xe8   :  { %220 = vtanh.f32 %v139_v15  ;;  %v203_v21 = vmul.f32 -1.442695, %v139_v15 }
  0xe9   :  { %v141_v17 = vpop.f32.mrf.mxu0 }
  0xea   :  { %222 = vpow2.f32 %v203_v21 }
  0xeb   :  { %v142_v18 = vpop.f32.mrf.mxu0 }
  0xf5   :  { %v221_v19 = vpop.eup %220 }
  0xf6   :  { %158 = vrot.lane.b32.xlu0 %v221_v19, %s229_s14 }
  0xf7   :  { %v223_v22 = vpop.eup %222 }
  0xf8   :  { %v147_v23 = vadd.f32 1.0, %v223_v22 }
  0xfa   :  { %153 = vrot.lane.b32.xlu0 %v151_v20, %s230_s1  ;;  %224 = vrcp.f32 %v147_v23 }
 0x107   :  { %v225_v24 = vpop.eup %224 }
 0x168   :  { %v159_v25 = vpop.permute.xlu0 %158 }
 0x169   :  { %v161_v26 = vmul.f32 %v225_v24, %v159_v25 }
 0x16b   :  { %163 = vrot.lane.b32.xlu1 %v161_v26, %s230_s1 }
 0x16c   :  { %v154_v27 = vpop.permute.xlu0 %153 }
 0x16d   :  { %v156_v28 = vmul.f32 %v225_v24, %v154_v27 }
 0x1dd   :  { %v164_v29 = vpop.permute.xlu1 %163 }
 0x1de   :  { %v166_v30 = vadd.f32 %v164_v29, %v156_v28 }
 0x1e0   :  { %226 = vtanh.f32 %v166_v30  ;;  %168 = vrot.lane.b32.xlu0 %v166_v30, %s231_s2 }
 0x1ed   :  { %v227_v31 = vpop.eup %226 }
 0x1ee   :  { %174 = vrot.lane.b32.xlu1 %v227_v31, %s230_s1 }
 0x252   :  { %v169_v32 = vpop.permute.xlu0 %168 }
 0x253   :  { %171 = vst.msk [vmem:[%s312_s5] sm:$0xff] %vm100_vm0, %v169_v32 }
 0x260   :  { %v175_v33 = vpop.permute.xlu1 %174 }
 0x261   :  { %v177_v34 = vmul.f32 %v225_v24, %v175_v33 }
 0x263   :  { %179 = vrot.lane.b32.xlu1 %v177_v34, %s232_s18 }
 0x2d5   :  { %v180_v35 = vpop.permute.xlu1 %179 }
 0x2d6   :  { %182 = vst.msk [vmem:[%s313_s4] sm:$0xff] %vm100_vm0, %v180_v35 }

// kernel: encoder_lstm_forward.24
= control target key start
LH: loop header
LB: loop body
LE: loop exit
PB: predicated region body
PF: predicated region fallthrough
CT: control target
= control target key end

     0   :  { %vm15_vm0 = vcmask 516096   ;;  %v52_v0 = vmov 0.0   ;;  %vm35_vm1 = vcmask 523264   ;;  %s85_s0 = inlined_call_operand.vmem [shape: f32[8,64], index: 0, kind: input, shape index: {}]   ;;  %s86_s1 = inlined_call_operand.vmem [shape: f32[1,64], index: 1, kind: input, shape index: {}]   ;;  %s87_s2 = inlined_call_operand.vmem [shape: f32[1,64], index: 2, kind: output, shape index: {}]  }
   0x1   :  { %16 = vst.msk [vmem:[%s87_s2] sm:$0x1] %vm15_vm0, %v52_v0  ;;  %v17_v1 = vld [vmem:[%s85_s0] sm:$0xff] }
   0x2   :  { %v50_v2 = vld [vmem:[%s86_s1] ss:$0 sm:$0xff] }
   0x3   :  { %v25_v3 = vsub.f32 %v17_v1, %v50_v2 }
   0x5   :  { %v34_v4 = vmul.f32 %v25_v3, %v25_v3 }
   0x7   :  { %v36_v5 = vsel %vm35_vm1, %v34_v4, 0.0 }
   0x8   :  { %v37_v6 = vrot.slane %v36_v5, 4  ;;  %v33_v11 = vld [vmem:[%s87_s2] sm:$0x1] }
   0xa   :  { %v38_v7 = vadd.f32 %v37_v6, %v36_v5 }
   0xc   :  { %v39_v8 = vrot.slane %v38_v7, 2 }
   0xe   :  { %v40_v9 = vadd.f32 %v39_v8, %v38_v7 }
  0x10   :  { %v41_v10 = vrot.slane %v40_v9, 1 }
  0x12   :  { %v42_v12 = vadd.f32 %v41_v10, %v40_v9 }
  0x14   :  { %v43_v13 = vadd.f32 %v42_v12, %v33_v11 }
  0x16   :  { %45 = vst.msk [vmem:[%s87_s2] sm:$0x1] %vm15_vm0, %v43_v13 }

</bundles_post_ra>
